<compile_context>
chip_gen: v5e
topology: v5e:2x2
jax: 0.10.0
libtpu: 0.0.40
codegen_flags: <defaults>
</compile_context>

<pallas_src>
import functools
import string

import jax
import jax.numpy as jnp
from jax import lax
from jax.experimental import pallas as pl
from jax.experimental.pallas import tpu as pltpu

LANE = 128          # padded logits width (lane-dense output)
NEG_INF = -1e30     # mask value for padded logit columns


def rnn_group_kernel(idx_ref, len_ref, wx_ref, wh_ref, out_ref, hfin_ref):
    """One grid step == one group of B names, full (padded) sequence.

    idx_ref : (T_pad, B, 1) int32  clamped letter indices (pad steps = 0).
    len_ref : (B, 1)        int32  true name lengths.
    wx_ref  : (L_pad, H+128) f32   one-hot -> [hidden | logits] weights, with
              the fused bias and the -1e30 logit-pad mask folded into each row.
    wh_ref  : (H, H+128)    f32   hidden -> [hidden | logits] weights
              (padded logit columns are zero).
    out_ref : (T_pad, B, 128) f32 per-step log-softmax (lane padded).
    hfin_ref: (B, H)        f32   hidden state after each name's last char.
    """
    T_pad, B, _ = idx_ref.shape
    H = wh_ref.shape[0]
    L_pad = wx_ref.shape[0]

    lens = len_ref[...]                                         # (B, 1) i32
    # Hoisted out of the loop (broadcast_in_dim is not CSE'd by JAX).
    col_iota = lax.broadcasted_iota(jnp.int32, (B, L_pad), 1)

    def step(t, h):
        idx_t = idx_ref[t]                                      # (B, 1) i32
        one_hot = (col_iota == idx_t).astype(jnp.float32)       # (B, L_pad)
        # combined @ [W_i2h^T | W_i2o^T] + b  ==  one_hot @ Wx + h @ Wh
        # (bias + pad mask are pre-folded into every Wx row, picked exactly
        #  once because one_hot has exactly one 1).
        y = (jnp.dot(one_hot, wx_ref[...], preferred_element_type=jnp.float32)
             + jnp.dot(h, wh_ref[...], preferred_element_type=jnp.float32))
        # Output uses the PRE-update hidden, exactly like the module.
        logits = y[:, H:]                                       # pad cols ~ -1e30
        m = jnp.max(logits, axis=-1, keepdims=True)
        shifted = logits - m
        lse = jnp.log(jnp.sum(jnp.exp(shifted), axis=-1, keepdims=True))
        out_ref[t] = (shifted - lse).astype(out_ref.dtype)      # dense (B,128) store
        # Hidden update (no activation, as in the module); freeze once the
        # name has ended so padding does not perturb the final hidden state.
        active = t < lens                                       # (B, 1) bool
        return jnp.where(active, y[:, :H], h)

    h0 = jnp.zeros((B, H), jnp.float32)       # module's init_hidden() == zeros
    h_final = lax.fori_loop(0, T_pad, step, h0, unroll=True)
    hfin_ref[...] = h_final


def init_params(key, input_size, hidden_size, output_size):
    """Deterministic init matching nn.Linear shapes (uniform +-1/sqrt(fan_in))."""
    f = input_size + hidden_size
    k1, k2, k3, k4 = jax.random.split(key, 4)
    bound = 1.0 / jnp.sqrt(jnp.float32(f))
    w_i2h = jax.random.uniform(k1, (hidden_size, f), jnp.float32, -bound, bound)
    b_i2h = jax.random.uniform(k2, (hidden_size,), jnp.float32, -bound, bound)
    w_i2o = jax.random.uniform(k3, (output_size, f), jnp.float32, -bound, bound)
    b_i2o = jax.random.uniform(k4, (output_size,), jnp.float32, -bound, bound)
    return w_i2h, b_i2h, w_i2o, b_i2o


def prepare_params(params, input_size, hidden_size, output_size):
    """One-time layout transform: transpose to (in,out), fuse i2h|i2o, pad the
    logits to a full lane, fold bias + pad mask into the input-weight rows."""
    w_i2h, b_i2h, w_i2o, b_i2o = params
    ho = hidden_size + LANE                       # fused output width (256)

    # fused (in, out) weight slab: columns = [hidden | logits(padded)]
    w_f = jnp.zeros((input_size + hidden_size, ho), jnp.float32)
    w_f = w_f.at[:, :hidden_size].set(w_i2h.T)
    w_f = w_f.at[:, hidden_size:hidden_size + output_size].set(w_i2o.T)

    # fused bias; padded logit columns masked to -1e30 so log_softmax ignores them
    b_f = jnp.full((ho,), NEG_INF, jnp.float32)
    b_f = b_f.at[:hidden_size].set(b_i2h)
    b_f = b_f.at[hidden_size:hidden_size + output_size].set(b_i2o)

    # input part: one-hot matmul picks exactly one row, so pre-add the bias to
    # every row (hoists the bias add out of the per-step loop).  Rows padded
    # to a sublane multiple.
    l_pad = ((input_size + 7) // 8) * 8           # 57 -> 64
    wx = jnp.zeros((l_pad, ho), jnp.float32)
    wx = wx.at[:input_size].set(w_f[:input_size] + b_f[None, :])

    wh = w_f[input_size:]                         # (hidden, ho) MXU operand
    return wx, wh


def bucket_len(n, buckets=(16, 32, 64)):
    """Pad sequence length to a small set of buckets to limit recompiles."""
    for b in buckets:
        if n <= b:
            return b
    return -(-n // 64) * 64


@functools.partial(jax.jit, static_argnames=("output_size",))
def rnn_forward_names(idx_g, len_g, wx, wh, *, output_size):
    """Runs G groups of B names through the RNN in a single pallas_call.

    idx_g : (G, T_pad, B, 1) int32 clamped letter indices (0-padded).
    len_g : (G, B, 1)        int32 true lengths.
    Returns (log_probs, final_hidden):
      log_probs[g, t, b]   == log_softmax(i2o(cat(onehot(letter_t), h_t)))
                              for t < len (pad positions are don't-care).
      final_hidden[g, b]   == hidden after that name's last character.
    """
    G, T_pad, B, _ = idx_g.shape
    L_pad, HO = wx.shape
    H = wh.shape[0]
    OP = HO - H                                   # padded logits width (128)

    out_padded, h_final = pl.pallas_call(
        rnn_group_kernel,
        out_shape=(
            jax.ShapeDtypeStruct((G, T_pad, B, OP), jnp.float32),
            jax.ShapeDtypeStruct((G, B, H), jnp.float32),
        ),
        grid=(G,),
        in_specs=[
            # per-group letter indices / lengths (whole group resident)
            pl.BlockSpec((None, T_pad, B, 1), lambda g: (g, 0, 0, 0)),
            pl.BlockSpec((None, B, 1), lambda g: (g, 0, 0)),
            # weight slabs: constant blocks -> DMA'd once, stay VMEM-resident
            pl.BlockSpec((L_pad, HO), lambda g: (0, 0)),
            pl.BlockSpec((H, HO), lambda g: (0, 0)),
        ],
        out_specs=(
            pl.BlockSpec((None, T_pad, B, OP), lambda g: (g, 0, 0, 0)),
            pl.BlockSpec((None, B, H), lambda g: (g, 0, 0)),
        ),
        compiler_params=pltpu.CompilerParams(
            # Group axis is independent -> parallel (uses both TCs on v7x).
            # The time recurrence is entirely inside the kernel, so this is safe.
            dimension_semantics=("parallel",)),
    )(idx_g, len_g, wx, wh)

    return out_padded[..., :output_size], h_final


if __name__ == "__main__":
    ALL_LETTERS = string.ascii_letters + ".,;'"
    N_LETTERS = len(ALL_LETTERS)
    N_HIDDEN = 128
    N_CATEGORIES = 18               # classic name-classification dataset size

    key = jax.random.PRNGKey(0)
    params = init_params(key, N_LETTERS, N_HIDDEN, N_CATEGORIES)
    wx, wh = prepare_params(params, N_LETTERS, N_HIDDEN, N_CATEGORIES)

    base_names = ["Anderson", "Yamamoto", "Okafor", "Nguyen",
                  "Smith", "O'Brien", "Schmidt", "Zhao"]
    GROUPS, GROUP_B = 2, 8          # 2 groups x 8 names = 16 names
    names = (base_names * 2)[:GROUPS * GROUP_B]

    def letter_to_index(c):
        i = ALL_LETTERS.find(c)
        # torch's tensor[0][-1] = 1 wraps an OOV (-1) to the last letter;
        # mimic that and clamp so no invalid index ever reaches the kernel.
        return i if 0 <= i < N_LETTERS else N_LETTERS - 1

    ids_all = [[letter_to_index(c) for c in n] for n in names]
    T_PAD = bucket_len(max(len(i) for i in ids_all))

    idx_np = [[[[ids_all[g * GROUP_B + b][t] if t < len(ids_all[g * GROUP_B + b]) else 0]
                for b in range(GROUP_B)]
               for t in range(T_PAD)]
              for g in range(GROUPS)]
    len_np = [[[len(ids_all[g * GROUP_B + b])] for b in range(GROUP_B)]
              for g in range(GROUPS)]
    idx_g = jnp.array(idx_np, dtype=jnp.int32)    # (G, T_pad, B, 1)
    len_g = jnp.array(len_np, dtype=jnp.int32)    # (G, B, 1)

    log_probs, h_final = rnn_forward_names(
        idx_g, len_g, wx, wh, output_size=N_CATEGORIES)
    jax.block_until_ready((log_probs, h_final))

    assert log_probs.shape == (GROUPS, T_PAD, GROUP_B, N_CATEGORIES), log_probs.shape
    assert h_final.shape == (GROUPS, GROUP_B, N_HIDDEN), h_final.shape

    # --- reference: step-by-step forward of the original module in plain JAX ---
    w_i2h, b_i2h, w_i2o, b_i2o = params
    max_err_out = 0.0
    max_err_hid = 0.0
    for g in range(GROUPS):
        for b in range(GROUP_B):
            ids = ids_all[g * GROUP_B + b]
            h = jnp.zeros((1, N_HIDDEN), jnp.float32)
            for t, li in enumerate(ids):
                x = jnp.zeros((1, N_LETTERS), jnp.float32).at[0, li].set(1.0)
                combined = jnp.concatenate([x, h], axis=1)
                logits = combined @ w_i2o.T + b_i2o
                h = combined @ w_i2h.T + b_i2h
                ref_lp = jax.nn.log_softmax(logits, axis=1)[0]
                got = log_probs[g, t, b]
                max_err_out = max(max_err_out,
                                  float(jnp.max(jnp.abs(got - ref_lp))))
                psum = float(jnp.sum(jnp.exp(got)))
                assert abs(psum - 1.0) < 1e-3, psum
            max_err_hid = max(max_err_hid,
                              float(jnp.max(jnp.abs(h_final[g, b] - h[0]))))

    assert max_err_out < 5e-4, max_err_out
    assert max_err_hid < 5e-4, max_err_hid

    print("KERNEL_OK")
</pallas_src>

<mosaic_0001>
module attributes {stable_mosaic.version = 11 : i64} {
  func.func @rnn_group_kernel(%arg0: i32, %arg1: memref<1x16x8x1xi32, #tpu.memory_space<vmem>>, %arg2: memref<1x8x1xi32, #tpu.memory_space<vmem>>, %arg3: memref<56x256xf32, #tpu.memory_space<vmem>>, %arg4: memref<128x256xf32, #tpu.memory_space<vmem>>, %arg5: memref<1x16x8x128xf32, #tpu.memory_space<vmem>>, %arg6: memref<1x8x128xf32, #tpu.memory_space<vmem>>) attributes {dimension_semantics = [#tpu.dimension_semantics<parallel>], iteration_bounds = array<i64: 2>, scalar_prefetch = 0 : i64, scratch_operands = 0 : i64, tpu.core_type = #tpu.core_type<tc>, window_params = [{transform_indices = @transform_0, window_bounds = array<i64: 1, 16, 8, 1>}, {transform_indices = @transform_1, window_bounds = array<i64: 1, 8, 1>}, {pipeline_mode = #tpu.pipeline_mode<synchronous>, transform_indices = @transform_2, window_bounds = array<i64: 56, 256>}, {pipeline_mode = #tpu.pipeline_mode<synchronous>, transform_indices = @transform_3, window_bounds = array<i64: 128, 256>}, {transform_indices = @transform_4, window_bounds = array<i64: 1, 16, 8, 128>}, {transform_indices = @transform_5, window_bounds = array<i64: 1, 8, 128>}]} {
    %c0 = arith.constant 0 : index
    %c0_0 = arith.constant 0 : index
    %c0_1 = arith.constant 0 : index
    %0 = vector.load %arg2[%c0, %c0_0, %c0_1] : memref<1x8x1xi32, #tpu.memory_space<vmem>>, vector<1x8x1xi32>
    %1 = vector.shape_cast %0 : vector<1x8x1xi32> to vector<8x1xi32>
    %2 = tpu.iota {dimensions = array<i32: 1>} : vector<8x56xi32>
    %cst = arith.constant 0.000000e+00 : f32
    %3 = vector.broadcast %cst : f32 to vector<8x128xf32>
    %c0_i32 = arith.constant 0 : i32
    %c0_2 = arith.constant 0 : index
    %4 = arith.index_cast %c0_i32 : i32 to index
    %c0_3 = arith.constant 0 : index
    %c0_4 = arith.constant 0 : index
    %5 = vector.load %arg1[%c0_2, %4, %c0_3, %c0_4] : memref<1x16x8x1xi32, #tpu.memory_space<vmem>>, vector<1x1x8x1xi32>
    %6 = vector.shape_cast %5 : vector<1x1x8x1xi32> to vector<8x1xi32>
    %7 = vector.broadcast %6 : vector<8x1xi32> to vector<8x56xi32>
    %8 = arith.cmpi eq, %2, %7 : vector<8x56xi32>
    %9 = arith.extui %8 : vector<8x56xi1> to vector<8x56xi32>
    %10 = arith.sitofp %9 : vector<8x56xi32> to vector<8x56xf32>
    %c0_5 = arith.constant 0 : index
    %c0_6 = arith.constant 0 : index
    %11 = vector.load %arg3[%c0_5, %c0_6] : memref<56x256xf32, #tpu.memory_space<vmem>>, vector<56x256xf32>
    %cst_7 = arith.constant dense<0.000000e+00> : vector<8x256xf32>
    %12 = tpu.matmul %10, %11, %cst_7 {dimension_numbers = #tpu.dot_dimension_numbers<[1], [0], [0], [1], [0, 0, 1, 1], [], []>} : vector<8x56xf32>, vector<56x256xf32>, vector<8x256xf32> -> vector<8x256xf32>
    %c0_8 = arith.constant 0 : index
    %c0_9 = arith.constant 0 : index
    %13 = vector.load %arg4[%c0_8, %c0_9] : memref<128x256xf32, #tpu.memory_space<vmem>>, vector<128x256xf32>
    %cst_10 = arith.constant dense<0.000000e+00> : vector<8x256xf32>
    %14 = tpu.matmul %3, %13, %cst_10 {dimension_numbers = #tpu.dot_dimension_numbers<[1], [0], [0], [1], [0, 0, 1, 1], [], []>} : vector<8x128xf32>, vector<128x256xf32>, vector<8x256xf32> -> vector<8x256xf32>
    %15 = arith.addf %12, %14 : vector<8x256xf32>
    %16 = vector.extract_strided_slice %15 {offsets = [0, 128], sizes = [8, 128], strides = [1, 1]} : vector<8x256xf32> to vector<8x128xf32>
    %cst_11 = arith.constant dense<0xFF800000> : vector<8xf32>
    %17 = vector.multi_reduction <maximumf>, %16, %cst_11 [1] : vector<8x128xf32> to vector<8xf32>
    %18 = vector.shape_cast %17 : vector<8xf32> to vector<8x1xf32>
    %19 = vector.broadcast %18 : vector<8x1xf32> to vector<8x128xf32>
    %20 = arith.subf %16, %19 : vector<8x128xf32>
    %21 = math.exp %20 : vector<8x128xf32>
    %cst_12 = arith.constant dense<0.000000e+00> : vector<8xf32>
    %22 = vector.multi_reduction <add>, %21, %cst_12 [1] : vector<8x128xf32> to vector<8xf32>
    %23 = vector.shape_cast %22 : vector<8xf32> to vector<8x1xf32>
    %24 = math.log %23 : vector<8x1xf32>
    %25 = vector.broadcast %24 : vector<8x1xf32> to vector<8x128xf32>
    %26 = arith.subf %20, %25 : vector<8x128xf32>
    %c0_13 = arith.constant 0 : index
    %27 = arith.index_cast %c0_i32 : i32 to index
    %c0_14 = arith.constant 0 : index
    %c0_15 = arith.constant 0 : index
    %28 = vector.load %arg5[%c0_13, %27, %c0_14, %c0_15] : memref<1x16x8x128xf32, #tpu.memory_space<vmem>>, vector<1x1x8x128xf32>
    %29 = vector.shape_cast %28 : vector<1x1x8x128xf32> to vector<8x128xf32>
    %30 = vector.shape_cast %26 : vector<8x128xf32> to vector<1x1x8x128xf32>
    tpu.vector_store %arg5[%c0_13, %27, %c0_14, %c0_15], %30 {strides = array<i32>} : memref<1x16x8x128xf32, #tpu.memory_space<vmem>>, vector<1x1x8x128xf32>,
    %31 = vector.broadcast %c0_i32 : i32 to vector<8x1xi32>
    %32 = arith.cmpi slt, %31, %1 : vector<8x1xi32>
    %33 = vector.extract_strided_slice %15 {offsets = [0, 0], sizes = [8, 128], strides = [1, 1]} : vector<8x256xf32> to vector<8x128xf32>
    %34 = vector.shape_cast %32 : vector<8x1xi1> to vector<8x1xi1>
    %35 = vector.broadcast %34 : vector<8x1xi1> to vector<8x128xi1>
    %36 = arith.select %35, %33, %3 : vector<8x128xi1>, vector<8x128xf32>
    %c1_i32 = arith.constant 1 : i32
    %c0_16 = arith.constant 0 : index
    %37 = arith.index_cast %c1_i32 : i32 to index
    %c0_17 = arith.constant 0 : index
    %c0_18 = arith.constant 0 : index
    %38 = vector.load %arg1[%c0_16, %37, %c0_17, %c0_18] : memref<1x16x8x1xi32, #tpu.memory_space<vmem>>, vector<1x1x8x1xi32>
    %39 = vector.shape_cast %38 : vector<1x1x8x1xi32> to vector<8x1xi32>
    %40 = vector.broadcast %39 : vector<8x1xi32> to vector<8x56xi32>
    %41 = arith.cmpi eq, %2, %40 : vector<8x56xi32>
    %42 = arith.extui %41 : vector<8x56xi1> to vector<8x56xi32>
    %43 = arith.sitofp %42 : vector<8x56xi32> to vector<8x56xf32>
    %c0_19 = arith.constant 0 : index
    %c0_20 = arith.constant 0 : index
    %44 = vector.load %arg3[%c0_19, %c0_20] : memref<56x256xf32, #tpu.memory_space<vmem>>, vector<56x256xf32>
    %cst_21 = arith.constant dense<0.000000e+00> : vector<8x256xf32>
    %45 = tpu.matmul %43, %44, %cst_21 {dimension_numbers = #tpu.dot_dimension_numbers<[1], [0], [0], [1], [0, 0, 1, 1], [], []>} : vector<8x56xf32>, vector<56x256xf32>, vector<8x256xf32> -> vector<8x256xf32>
    %c0_22 = arith.constant 0 : index
    %c0_23 = arith.constant 0 : index
    %46 = vector.load %arg4[%c0_22, %c0_23] : memref<128x256xf32, #tpu.memory_space<vmem>>, vector<128x256xf32>
    %cst_24 = arith.constant dense<0.000000e+00> : vector<8x256xf32>
    %47 = tpu.matmul %36, %46, %cst_24 {dimension_numbers = #tpu.dot_dimension_numbers<[1], [0], [0], [1], [0, 0, 1, 1], [], []>} : vector<8x128xf32>, vector<128x256xf32>, vector<8x256xf32> -> vector<8x256xf32>
    %48 = arith.addf %45, %47 : vector<8x256xf32>
    %49 = vector.extract_strided_slice %48 {offsets = [0, 128], sizes = [8, 128], strides = [1, 1]} : vector<8x256xf32> to vector<8x128xf32>
    %cst_25 = arith.constant dense<0xFF800000> : vector<8xf32>
    %50 = vector.multi_reduction <maximumf>, %49, %cst_25 [1] : vector<8x128xf32> to vector<8xf32>
    %51 = vector.shape_cast %50 : vector<8xf32> to vector<8x1xf32>
    %52 = vector.broadcast %51 : vector<8x1xf32> to vector<8x128xf32>
    %53 = arith.subf %49, %52 : vector<8x128xf32>
    %54 = math.exp %53 : vector<8x128xf32>
    %cst_26 = arith.constant dense<0.000000e+00> : vector<8xf32>
    %55 = vector.multi_reduction <add>, %54, %cst_26 [1] : vector<8x128xf32> to vector<8xf32>
    %56 = vector.shape_cast %55 : vector<8xf32> to vector<8x1xf32>
    %57 = math.log %56 : vector<8x1xf32>
    %58 = vector.broadcast %57 : vector<8x1xf32> to vector<8x128xf32>
    %59 = arith.subf %53, %58 : vector<8x128xf32>
    %c0_27 = arith.constant 0 : index
    %60 = arith.index_cast %c1_i32 : i32 to index
    %c0_28 = arith.constant 0 : index
    %c0_29 = arith.constant 0 : index
    %61 = vector.load %arg5[%c0_27, %60, %c0_28, %c0_29] : memref<1x16x8x128xf32, #tpu.memory_space<vmem>>, vector<1x1x8x128xf32>
    %62 = vector.shape_cast %61 : vector<1x1x8x128xf32> to vector<8x128xf32>
    %63 = vector.shape_cast %59 : vector<8x128xf32> to vector<1x1x8x128xf32>
    tpu.vector_store %arg5[%c0_27, %60, %c0_28, %c0_29], %63 {strides = array<i32>} : memref<1x16x8x128xf32, #tpu.memory_space<vmem>>, vector<1x1x8x128xf32>,
    %64 = vector.broadcast %c1_i32 : i32 to vector<8x1xi32>
    %65 = arith.cmpi slt, %64, %1 : vector<8x1xi32>
    %66 = vector.extract_strided_slice %48 {offsets = [0, 0], sizes = [8, 128], strides = [1, 1]} : vector<8x256xf32> to vector<8x128xf32>
    %67 = vector.shape_cast %65 : vector<8x1xi1> to vector<8x1xi1>
    %68 = vector.broadcast %67 : vector<8x1xi1> to vector<8x128xi1>
    %69 = arith.select %68, %66, %36 : vector<8x128xi1>, vector<8x128xf32>
    %c2_i32 = arith.constant 2 : i32
    %c0_30 = arith.constant 0 : index
    %70 = arith.index_cast %c2_i32 : i32 to index
    %c0_31 = arith.constant 0 : index
    %c0_32 = arith.constant 0 : index
    %71 = vector.load %arg1[%c0_30, %70, %c0_31, %c0_32] : memref<1x16x8x1xi32, #tpu.memory_space<vmem>>, vector<1x1x8x1xi32>
    %72 = vector.shape_cast %71 : vector<1x1x8x1xi32> to vector<8x1xi32>
    %73 = vector.broadcast %72 : vector<8x1xi32> to vector<8x56xi32>
    %74 = arith.cmpi eq, %2, %73 : vector<8x56xi32>
    %75 = arith.extui %74 : vector<8x56xi1> to vector<8x56xi32>
    %76 = arith.sitofp %75 : vector<8x56xi32> to vector<8x56xf32>
    %c0_33 = arith.constant 0 : index
    %c0_34 = arith.constant 0 : index
    %77 = vector.load %arg3[%c0_33, %c0_34] : memref<56x256xf32, #tpu.memory_space<vmem>>, vector<56x256xf32>
    %cst_35 = arith.constant dense<0.000000e+00> : vector<8x256xf32>
    %78 = tpu.matmul %76, %77, %cst_35 {dimension_numbers = #tpu.dot_dimension_numbers<[1], [0], [0], [1], [0, 0, 1, 1], [], []>} : vector<8x56xf32>, vector<56x256xf32>, vector<8x256xf32> -> vector<8x256xf32>
    %c0_36 = arith.constant 0 : index
    %c0_37 = arith.constant 0 : index
    %79 = vector.load %arg4[%c0_36, %c0_37] : memref<128x256xf32, #tpu.memory_space<vmem>>, vector<128x256xf32>
    %cst_38 = arith.constant dense<0.000000e+00> : vector<8x256xf32>
    %80 = tpu.matmul %69, %79, %cst_38 {dimension_numbers = #tpu.dot_dimension_numbers<[1], [0], [0], [1], [0, 0, 1, 1], [], []>} : vector<8x128xf32>, vector<128x256xf32>, vector<8x256xf32> -> vector<8x256xf32>
    %81 = arith.addf %78, %80 : vector<8x256xf32>
    %82 = vector.extract_strided_slice %81 {offsets = [0, 128], sizes = [8, 128], strides = [1, 1]} : vector<8x256xf32> to vector<8x128xf32>
    %cst_39 = arith.constant dense<0xFF800000> : vector<8xf32>
    %83 = vector.multi_reduction <maximumf>, %82, %cst_39 [1] : vector<8x128xf32> to vector<8xf32>
    %84 = vector.shape_cast %83 : vector<8xf32> to vector<8x1xf32>
    %85 = vector.broadcast %84 : vector<8x1xf32> to vector<8x128xf32>
    %86 = arith.subf %82, %85 : vector<8x128xf32>
    %87 = math.exp %86 : vector<8x128xf32>
    %cst_40 = arith.constant dense<0.000000e+00> : vector<8xf32>
    %88 = vector.multi_reduction <add>, %87, %cst_40 [1] : vector<8x128xf32> to vector<8xf32>
    %89 = vector.shape_cast %88 : vector<8xf32> to vector<8x1xf32>
    %90 = math.log %89 : vector<8x1xf32>
    %91 = vector.broadcast %90 : vector<8x1xf32> to vector<8x128xf32>
    %92 = arith.subf %86, %91 : vector<8x128xf32>
    %c0_41 = arith.constant 0 : index
    %93 = arith.index_cast %c2_i32 : i32 to index
    %c0_42 = arith.constant 0 : index
    %c0_43 = arith.constant 0 : index
    %94 = vector.load %arg5[%c0_41, %93, %c0_42, %c0_43] : memref<1x16x8x128xf32, #tpu.memory_space<vmem>>, vector<1x1x8x128xf32>
    %95 = vector.shape_cast %94 : vector<1x1x8x128xf32> to vector<8x128xf32>
    %96 = vector.shape_cast %92 : vector<8x128xf32> to vector<1x1x8x128xf32>
    tpu.vector_store %arg5[%c0_41, %93, %c0_42, %c0_43], %96 {strides = array<i32>} : memref<1x16x8x128xf32, #tpu.memory_space<vmem>>, vector<1x1x8x128xf32>,
    %97 = vector.broadcast %c2_i32 : i32 to vector<8x1xi32>
    %98 = arith.cmpi slt, %97, %1 : vector<8x1xi32>
    %99 = vector.extract_strided_slice %81 {offsets = [0, 0], sizes = [8, 128], strides = [1, 1]} : vector<8x256xf32> to vector<8x128xf32>
    %100 = vector.shape_cast %98 : vector<8x1xi1> to vector<8x1xi1>
    %101 = vector.broadcast %100 : vector<8x1xi1> to vector<8x128xi1>
    %102 = arith.select %101, %99, %69 : vector<8x128xi1>, vector<8x128xf32>
    %c3_i32 = arith.constant 3 : i32
    %c0_44 = arith.constant 0 : index
    %103 = arith.index_cast %c3_i32 : i32 to index
    %c0_45 = arith.constant 0 : index
    %c0_46 = arith.constant 0 : index
    %104 = vector.load %arg1[%c0_44, %103, %c0_45, %c0_46] : memref<1x16x8x1xi32, #tpu.memory_space<vmem>>, vector<1x1x8x1xi32>
    %105 = vector.shape_cast %104 : vector<1x1x8x1xi32> to vector<8x1xi32>
    %106 = vector.broadcast %105 : vector<8x1xi32> to vector<8x56xi32>
    %107 = arith.cmpi eq, %2, %106 : vector<8x56xi32>
    %108 = arith.extui %107 : vector<8x56xi1> to vector<8x56xi32>
    %109 = arith.sitofp %108 : vector<8x56xi32> to vector<8x56xf32>
    %c0_47 = arith.constant 0 : index
    %c0_48 = arith.constant 0 : index
    %110 = vector.load %arg3[%c0_47, %c0_48] : memref<56x256xf32, #tpu.memory_space<vmem>>, vector<56x256xf32>
    %cst_49 = arith.constant dense<0.000000e+00> : vector<8x256xf32>
    %111 = tpu.matmul %109, %110, %cst_49 {dimension_numbers = #tpu.dot_dimension_numbers<[1], [0], [0], [1], [0, 0, 1, 1], [], []>} : vector<8x56xf32>, vector<56x256xf32>, vector<8x256xf32> -> vector<8x256xf32>
    %c0_50 = arith.constant 0 : index
    %c0_51 = arith.constant 0 : index
    %112 = vector.load %arg4[%c0_50, %c0_51] : memref<128x256xf32, #tpu.memory_space<vmem>>, vector<128x256xf32>
    %cst_52 = arith.constant dense<0.000000e+00> : vector<8x256xf32>
    %113 = tpu.matmul %102, %112, %cst_52 {dimension_numbers = #tpu.dot_dimension_numbers<[1], [0], [0], [1], [0, 0, 1, 1], [], []>} : vector<8x128xf32>, vector<128x256xf32>, vector<8x256xf32> -> vector<8x256xf32>
    %114 = arith.addf %111, %113 : vector<8x256xf32>
    %115 = vector.extract_strided_slice %114 {offsets = [0, 128], sizes = [8, 128], strides = [1, 1]} : vector<8x256xf32> to vector<8x128xf32>
    %cst_53 = arith.constant dense<0xFF800000> : vector<8xf32>
    %116 = vector.multi_reduction <maximumf>, %115, %cst_53 [1] : vector<8x128xf32> to vector<8xf32>
    %117 = vector.shape_cast %116 : vector<8xf32> to vector<8x1xf32>
    %118 = vector.broadcast %117 : vector<8x1xf32> to vector<8x128xf32>
    %119 = arith.subf %115, %118 : vector<8x128xf32>
    %120 = math.exp %119 : vector<8x128xf32>
    %cst_54 = arith.constant dense<0.000000e+00> : vector<8xf32>
    %121 = vector.multi_reduction <add>, %120, %cst_54 [1] : vector<8x128xf32> to vector<8xf32>
    %122 = vector.shape_cast %121 : vector<8xf32> to vector<8x1xf32>
    %123 = math.log %122 : vector<8x1xf32>
    %124 = vector.broadcast %123 : vector<8x1xf32> to vector<8x128xf32>
    %125 = arith.subf %119, %124 : vector<8x128xf32>
    %c0_55 = arith.constant 0 : index
    %126 = arith.index_cast %c3_i32 : i32 to index
    %c0_56 = arith.constant 0 : index
    %c0_57 = arith.constant 0 : index
    %127 = vector.load %arg5[%c0_55, %126, %c0_56, %c0_57] : memref<1x16x8x128xf32, #tpu.memory_space<vmem>>, vector<1x1x8x128xf32>
    %128 = vector.shape_cast %127 : vector<1x1x8x128xf32> to vector<8x128xf32>
    %129 = vector.shape_cast %125 : vector<8x128xf32> to vector<1x1x8x128xf32>
    tpu.vector_store %arg5[%c0_55, %126, %c0_56, %c0_57], %129 {strides = array<i32>} : memref<1x16x8x128xf32, #tpu.memory_space<vmem>>, vector<1x1x8x128xf32>,
    %130 = vector.broadcast %c3_i32 : i32 to vector<8x1xi32>
    %131 = arith.cmpi slt, %130, %1 : vector<8x1xi32>
    %132 = vector.extract_strided_slice %114 {offsets = [0, 0], sizes = [8, 128], strides = [1, 1]} : vector<8x256xf32> to vector<8x128xf32>
    %133 = vector.shape_cast %131 : vector<8x1xi1> to vector<8x1xi1>
    %134 = vector.broadcast %133 : vector<8x1xi1> to vector<8x128xi1>
    %135 = arith.select %134, %132, %102 : vector<8x128xi1>, vector<8x128xf32>
    %c4_i32 = arith.constant 4 : i32
    %c0_58 = arith.constant 0 : index
    %136 = arith.index_cast %c4_i32 : i32 to index
    %c0_59 = arith.constant 0 : index
    %c0_60 = arith.constant 0 : index
    %137 = vector.load %arg1[%c0_58, %136, %c0_59, %c0_60] : memref<1x16x8x1xi32, #tpu.memory_space<vmem>>, vector<1x1x8x1xi32>
    %138 = vector.shape_cast %137 : vector<1x1x8x1xi32> to vector<8x1xi32>
    %139 = vector.broadcast %138 : vector<8x1xi32> to vector<8x56xi32>
    %140 = arith.cmpi eq, %2, %139 : vector<8x56xi32>
    %141 = arith.extui %140 : vector<8x56xi1> to vector<8x56xi32>
    %142 = arith.sitofp %141 : vector<8x56xi32> to vector<8x56xf32>
    %c0_61 = arith.constant 0 : index
    %c0_62 = arith.constant 0 : index
    %143 = vector.load %arg3[%c0_61, %c0_62] : memref<56x256xf32, #tpu.memory_space<vmem>>, vector<56x256xf32>
    %cst_63 = arith.constant dense<0.000000e+00> : vector<8x256xf32>
    %144 = tpu.matmul %142, %143, %cst_63 {dimension_numbers = #tpu.dot_dimension_numbers<[1], [0], [0], [1], [0, 0, 1, 1], [], []>} : vector<8x56xf32>, vector<56x256xf32>, vector<8x256xf32> -> vector<8x256xf32>
    %c0_64 = arith.constant 0 : index
    %c0_65 = arith.constant 0 : index
    %145 = vector.load %arg4[%c0_64, %c0_65] : memref<128x256xf32, #tpu.memory_space<vmem>>, vector<128x256xf32>
    %cst_66 = arith.constant dense<0.000000e+00> : vector<8x256xf32>
    %146 = tpu.matmul %135, %145, %cst_66 {dimension_numbers = #tpu.dot_dimension_numbers<[1], [0], [0], [1], [0, 0, 1, 1], [], []>} : vector<8x128xf32>, vector<128x256xf32>, vector<8x256xf32> -> vector<8x256xf32>
    %147 = arith.addf %144, %146 : vector<8x256xf32>
    %148 = vector.extract_strided_slice %147 {offsets = [0, 128], sizes = [8, 128], strides = [1, 1]} : vector<8x256xf32> to vector<8x128xf32>
    %cst_67 = arith.constant dense<0xFF800000> : vector<8xf32>
    %149 = vector.multi_reduction <maximumf>, %148, %cst_67 [1] : vector<8x128xf32> to vector<8xf32>
    %150 = vector.shape_cast %149 : vector<8xf32> to vector<8x1xf32>
    %151 = vector.broadcast %150 : vector<8x1xf32> to vector<8x128xf32>
    %152 = arith.subf %148, %151 : vector<8x128xf32>
    %153 = math.exp %152 : vector<8x128xf32>
    %cst_68 = arith.constant dense<0.000000e+00> : vector<8xf32>
    %154 = vector.multi_reduction <add>, %153, %cst_68 [1] : vector<8x128xf32> to vector<8xf32>
    %155 = vector.shape_cast %154 : vector<8xf32> to vector<8x1xf32>
    %156 = math.log %155 : vector<8x1xf32>
    %157 = vector.broadcast %156 : vector<8x1xf32> to vector<8x128xf32>
    %158 = arith.subf %152, %157 : vector<8x128xf32>
    %c0_69 = arith.constant 0 : index
    %159 = arith.index_cast %c4_i32 : i32 to index
    %c0_70 = arith.constant 0 : index
    %c0_71 = arith.constant 0 : index
    %160 = vector.load %arg5[%c0_69, %159, %c0_70, %c0_71] : memref<1x16x8x128xf32, #tpu.memory_space<vmem>>, vector<1x1x8x128xf32>
    %161 = vector.shape_cast %160 : vector<1x1x8x128xf32> to vector<8x128xf32>
    %162 = vector.shape_cast %158 : vector<8x128xf32> to vector<1x1x8x128xf32>
    tpu.vector_store %arg5[%c0_69, %159, %c0_70, %c0_71], %162 {strides = array<i32>} : memref<1x16x8x128xf32, #tpu.memory_space<vmem>>, vector<1x1x8x128xf32>,
    %163 = vector.broadcast %c4_i32 : i32 to vector<8x1xi32>
    %164 = arith.cmpi slt, %163, %1 : vector<8x1xi32>
    %165 = vector.extract_strided_slice %147 {offsets = [0, 0], sizes = [8, 128], strides = [1, 1]} : vector<8x256xf32> to vector<8x128xf32>
    %166 = vector.shape_cast %164 : vector<8x1xi1> to vector<8x1xi1>
    %167 = vector.broadcast %166 : vector<8x1xi1> to vector<8x128xi1>
    %168 = arith.select %167, %165, %135 : vector<8x128xi1>, vector<8x128xf32>
    %c5_i32 = arith.constant 5 : i32
    %c0_72 = arith.constant 0 : index
    %169 = arith.index_cast %c5_i32 : i32 to index
    %c0_73 = arith.constant 0 : index
    %c0_74 = arith.constant 0 : index
    %170 = vector.load %arg1[%c0_72, %169, %c0_73, %c0_74] : memref<1x16x8x1xi32, #tpu.memory_space<vmem>>, vector<1x1x8x1xi32>
    %171 = vector.shape_cast %170 : vector<1x1x8x1xi32> to vector<8x1xi32>
    %172 = vector.broadcast %171 : vector<8x1xi32> to vector<8x56xi32>
    %173 = arith.cmpi eq, %2, %172 : vector<8x56xi32>
    %174 = arith.extui %173 : vector<8x56xi1> to vector<8x56xi32>
    %175 = arith.sitofp %174 : vector<8x56xi32> to vector<8x56xf32>
    %c0_75 = arith.constant 0 : index
    %c0_76 = arith.constant 0 : index
    %176 = vector.load %arg3[%c0_75, %c0_76] : memref<56x256xf32, #tpu.memory_space<vmem>>, vector<56x256xf32>
    %cst_77 = arith.constant dense<0.000000e+00> : vector<8x256xf32>
    %177 = tpu.matmul %175, %176, %cst_77 {dimension_numbers = #tpu.dot_dimension_numbers<[1], [0], [0], [1], [0, 0, 1, 1], [], []>} : vector<8x56xf32>, vector<56x256xf32>, vector<8x256xf32> -> vector<8x256xf32>
    %c0_78 = arith.constant 0 : index
    %c0_79 = arith.constant 0 : index
    %178 = vector.load %arg4[%c0_78, %c0_79] : memref<128x256xf32, #tpu.memory_space<vmem>>, vector<128x256xf32>
    %cst_80 = arith.constant dense<0.000000e+00> : vector<8x256xf32>
    %179 = tpu.matmul %168, %178, %cst_80 {dimension_numbers = #tpu.dot_dimension_numbers<[1], [0], [0], [1], [0, 0, 1, 1], [], []>} : vector<8x128xf32>, vector<128x256xf32>, vector<8x256xf32> -> vector<8x256xf32>
    %180 = arith.addf %177, %179 : vector<8x256xf32>
    %181 = vector.extract_strided_slice %180 {offsets = [0, 128], sizes = [8, 128], strides = [1, 1]} : vector<8x256xf32> to vector<8x128xf32>
    %cst_81 = arith.constant dense<0xFF800000> : vector<8xf32>
    %182 = vector.multi_reduction <maximumf>, %181, %cst_81 [1] : vector<8x128xf32> to vector<8xf32>
    %183 = vector.shape_cast %182 : vector<8xf32> to vector<8x1xf32>
    %184 = vector.broadcast %183 : vector<8x1xf32> to vector<8x128xf32>
    %185 = arith.subf %181, %184 : vector<8x128xf32>
    %186 = math.exp %185 : vector<8x128xf32>
    %cst_82 = arith.constant dense<0.000000e+00> : vector<8xf32>
    %187 = vector.multi_reduction <add>, %186, %cst_82 [1] : vector<8x128xf32> to vector<8xf32>
    %188 = vector.shape_cast %187 : vector<8xf32> to vector<8x1xf32>
    %189 = math.log %188 : vector<8x1xf32>
    %190 = vector.broadcast %189 : vector<8x1xf32> to vector<8x128xf32>
    %191 = arith.subf %185, %190 : vector<8x128xf32>
    %c0_83 = arith.constant 0 : index
    %192 = arith.index_cast %c5_i32 : i32 to index
    %c0_84 = arith.constant 0 : index
    %c0_85 = arith.constant 0 : index
    %193 = vector.load %arg5[%c0_83, %192, %c0_84, %c0_85] : memref<1x16x8x128xf32, #tpu.memory_space<vmem>>, vector<1x1x8x128xf32>
    %194 = vector.shape_cast %193 : vector<1x1x8x128xf32> to vector<8x128xf32>
    %195 = vector.shape_cast %191 : vector<8x128xf32> to vector<1x1x8x128xf32>
    tpu.vector_store %arg5[%c0_83, %192, %c0_84, %c0_85], %195 {strides = array<i32>} : memref<1x16x8x128xf32, #tpu.memory_space<vmem>>, vector<1x1x8x128xf32>,
    %196 = vector.broadcast %c5_i32 : i32 to vector<8x1xi32>
    %197 = arith.cmpi slt, %196, %1 : vector<8x1xi32>
    %198 = vector.extract_strided_slice %180 {offsets = [0, 0], sizes = [8, 128], strides = [1, 1]} : vector<8x256xf32> to vector<8x128xf32>
    %199 = vector.shape_cast %197 : vector<8x1xi1> to vector<8x1xi1>
    %200 = vector.broadcast %199 : vector<8x1xi1> to vector<8x128xi1>
    %201 = arith.select %200, %198, %168 : vector<8x128xi1>, vector<8x128xf32>
    %c6_i32 = arith.constant 6 : i32
    %c0_86 = arith.constant 0 : index
    %202 = arith.index_cast %c6_i32 : i32 to index
    %c0_87 = arith.constant 0 : index
    %c0_88 = arith.constant 0 : index
    %203 = vector.load %arg1[%c0_86, %202, %c0_87, %c0_88] : memref<1x16x8x1xi32, #tpu.memory_space<vmem>>, vector<1x1x8x1xi32>
    %204 = vector.shape_cast %203 : vector<1x1x8x1xi32> to vector<8x1xi32>
    %205 = vector.broadcast %204 : vector<8x1xi32> to vector<8x56xi32>
    %206 = arith.cmpi eq, %2, %205 : vector<8x56xi32>
    %207 = arith.extui %206 : vector<8x56xi1> to vector<8x56xi32>
    %208 = arith.sitofp %207 : vector<8x56xi32> to vector<8x56xf32>
    %c0_89 = arith.constant 0 : index
    %c0_90 = arith.constant 0 : index
    %209 = vector.load %arg3[%c0_89, %c0_90] : memref<56x256xf32, #tpu.memory_space<vmem>>, vector<56x256xf32>
    %cst_91 = arith.constant dense<0.000000e+00> : vector<8x256xf32>
    %210 = tpu.matmul %208, %209, %cst_91 {dimension_numbers = #tpu.dot_dimension_numbers<[1], [0], [0], [1], [0, 0, 1, 1], [], []>} : vector<8x56xf32>, vector<56x256xf32>, vector<8x256xf32> -> vector<8x256xf32>
    %c0_92 = arith.constant 0 : index
    %c0_93 = arith.constant 0 : index
    %211 = vector.load %arg4[%c0_92, %c0_93] : memref<128x256xf32, #tpu.memory_space<vmem>>, vector<128x256xf32>
    %cst_94 = arith.constant dense<0.000000e+00> : vector<8x256xf32>
    %212 = tpu.matmul %201, %211, %cst_94 {dimension_numbers = #tpu.dot_dimension_numbers<[1], [0], [0], [1], [0, 0, 1, 1], [], []>} : vector<8x128xf32>, vector<128x256xf32>, vector<8x256xf32> -> vector<8x256xf32>
    %213 = arith.addf %210, %212 : vector<8x256xf32>
    %214 = vector.extract_strided_slice %213 {offsets = [0, 128], sizes = [8, 128], strides = [1, 1]} : vector<8x256xf32> to vector<8x128xf32>
    %cst_95 = arith.constant dense<0xFF800000> : vector<8xf32>
    %215 = vector.multi_reduction <maximumf>, %214, %cst_95 [1] : vector<8x128xf32> to vector<8xf32>
    %216 = vector.shape_cast %215 : vector<8xf32> to vector<8x1xf32>
    %217 = vector.broadcast %216 : vector<8x1xf32> to vector<8x128xf32>
    %218 = arith.subf %214, %217 : vector<8x128xf32>
    %219 = math.exp %218 : vector<8x128xf32>
    %cst_96 = arith.constant dense<0.000000e+00> : vector<8xf32>
    %220 = vector.multi_reduction <add>, %219, %cst_96 [1] : vector<8x128xf32> to vector<8xf32>
    %221 = vector.shape_cast %220 : vector<8xf32> to vector<8x1xf32>
    %222 = math.log %221 : vector<8x1xf32>
    %223 = vector.broadcast %222 : vector<8x1xf32> to vector<8x128xf32>
    %224 = arith.subf %218, %223 : vector<8x128xf32>
    %c0_97 = arith.constant 0 : index
    %225 = arith.index_cast %c6_i32 : i32 to index
    %c0_98 = arith.constant 0 : index
    %c0_99 = arith.constant 0 : index
    %226 = vector.load %arg5[%c0_97, %225, %c0_98, %c0_99] : memref<1x16x8x128xf32, #tpu.memory_space<vmem>>, vector<1x1x8x128xf32>
    %227 = vector.shape_cast %226 : vector<1x1x8x128xf32> to vector<8x128xf32>
    %228 = vector.shape_cast %224 : vector<8x128xf32> to vector<1x1x8x128xf32>
    tpu.vector_store %arg5[%c0_97, %225, %c0_98, %c0_99], %228 {strides = array<i32>} : memref<1x16x8x128xf32, #tpu.memory_space<vmem>>, vector<1x1x8x128xf32>,
    %229 = vector.broadcast %c6_i32 : i32 to vector<8x1xi32>
    %230 = arith.cmpi slt, %229, %1 : vector<8x1xi32>
    %231 = vector.extract_strided_slice %213 {offsets = [0, 0], sizes = [8, 128], strides = [1, 1]} : vector<8x256xf32> to vector<8x128xf32>
    %232 = vector.shape_cast %230 : vector<8x1xi1> to vector<8x1xi1>
    %233 = vector.broadcast %232 : vector<8x1xi1> to vector<8x128xi1>
    %234 = arith.select %233, %231, %201 : vector<8x128xi1>, vector<8x128xf32>
    %c7_i32 = arith.constant 7 : i32
    %c0_100 = arith.constant 0 : index
    %235 = arith.index_cast %c7_i32 : i32 to index
    %c0_101 = arith.constant 0 : index
    %c0_102 = arith.constant 0 : index
    %236 = vector.load %arg1[%c0_100, %235, %c0_101, %c0_102] : memref<1x16x8x1xi32, #tpu.memory_space<vmem>>, vector<1x1x8x1xi32>
    %237 = vector.shape_cast %236 : vector<1x1x8x1xi32> to vector<8x1xi32>
    %238 = vector.broadcast %237 : vector<8x1xi32> to vector<8x56xi32>
    %239 = arith.cmpi eq, %2, %238 : vector<8x56xi32>
    %240 = arith.extui %239 : vector<8x56xi1> to vector<8x56xi32>
    %241 = arith.sitofp %240 : vector<8x56xi32> to vector<8x56xf32>
    %c0_103 = arith.constant 0 : index
    %c0_104 = arith.constant 0 : index
    %242 = vector.load %arg3[%c0_103, %c0_104] : memref<56x256xf32, #tpu.memory_space<vmem>>, vector<56x256xf32>
    %cst_105 = arith.constant dense<0.000000e+00> : vector<8x256xf32>
    %243 = tpu.matmul %241, %242, %cst_105 {dimension_numbers = #tpu.dot_dimension_numbers<[1], [0], [0], [1], [0, 0, 1, 1], [], []>} : vector<8x56xf32>, vector<56x256xf32>, vector<8x256xf32> -> vector<8x256xf32>
    %c0_106 = arith.constant 0 : index
    %c0_107 = arith.constant 0 : index
    %244 = vector.load %arg4[%c0_106, %c0_107] : memref<128x256xf32, #tpu.memory_space<vmem>>, vector<128x256xf32>
    %cst_108 = arith.constant dense<0.000000e+00> : vector<8x256xf32>
    %245 = tpu.matmul %234, %244, %cst_108 {dimension_numbers = #tpu.dot_dimension_numbers<[1], [0], [0], [1], [0, 0, 1, 1], [], []>} : vector<8x128xf32>, vector<128x256xf32>, vector<8x256xf32> -> vector<8x256xf32>
    %246 = arith.addf %243, %245 : vector<8x256xf32>
    %247 = vector.extract_strided_slice %246 {offsets = [0, 128], sizes = [8, 128], strides = [1, 1]} : vector<8x256xf32> to vector<8x128xf32>
    %cst_109 = arith.constant dense<0xFF800000> : vector<8xf32>
    %248 = vector.multi_reduction <maximumf>, %247, %cst_109 [1] : vector<8x128xf32> to vector<8xf32>
    %249 = vector.shape_cast %248 : vector<8xf32> to vector<8x1xf32>
    %250 = vector.broadcast %249 : vector<8x1xf32> to vector<8x128xf32>
    %251 = arith.subf %247, %250 : vector<8x128xf32>
    %252 = math.exp %251 : vector<8x128xf32>
    %cst_110 = arith.constant dense<0.000000e+00> : vector<8xf32>
    %253 = vector.multi_reduction <add>, %252, %cst_110 [1] : vector<8x128xf32> to vector<8xf32>
    %254 = vector.shape_cast %253 : vector<8xf32> to vector<8x1xf32>
    %255 = math.log %254 : vector<8x1xf32>
    %256 = vector.broadcast %255 : vector<8x1xf32> to vector<8x128xf32>
    %257 = arith.subf %251, %256 : vector<8x128xf32>
    %c0_111 = arith.constant 0 : index
    %258 = arith.index_cast %c7_i32 : i32 to index
    %c0_112 = arith.constant 0 : index
    %c0_113 = arith.constant 0 : index
    %259 = vector.load %arg5[%c0_111, %258, %c0_112, %c0_113] : memref<1x16x8x128xf32, #tpu.memory_space<vmem>>, vector<1x1x8x128xf32>
    %260 = vector.shape_cast %259 : vector<1x1x8x128xf32> to vector<8x128xf32>
    %261 = vector.shape_cast %257 : vector<8x128xf32> to vector<1x1x8x128xf32>
    tpu.vector_store %arg5[%c0_111, %258, %c0_112, %c0_113], %261 {strides = array<i32>} : memref<1x16x8x128xf32, #tpu.memory_space<vmem>>, vector<1x1x8x128xf32>,
    %262 = vector.broadcast %c7_i32 : i32 to vector<8x1xi32>
    %263 = arith.cmpi slt, %262, %1 : vector<8x1xi32>
    %264 = vector.extract_strided_slice %246 {offsets = [0, 0], sizes = [8, 128], strides = [1, 1]} : vector<8x256xf32> to vector<8x128xf32>
    %265 = vector.shape_cast %263 : vector<8x1xi1> to vector<8x1xi1>
    %266 = vector.broadcast %265 : vector<8x1xi1> to vector<8x128xi1>
    %267 = arith.select %266, %264, %234 : vector<8x128xi1>, vector<8x128xf32>
    %c8_i32 = arith.constant 8 : i32
    %c0_114 = arith.constant 0 : index
    %268 = arith.index_cast %c8_i32 : i32 to index
    %c0_115 = arith.constant 0 : index
    %c0_116 = arith.constant 0 : index
    %269 = vector.load %arg1[%c0_114, %268, %c0_115, %c0_116] : memref<1x16x8x1xi32, #tpu.memory_space<vmem>>, vector<1x1x8x1xi32>
    %270 = vector.shape_cast %269 : vector<1x1x8x1xi32> to vector<8x1xi32>
    %271 = vector.broadcast %270 : vector<8x1xi32> to vector<8x56xi32>
    %272 = arith.cmpi eq, %2, %271 : vector<8x56xi32>
    %273 = arith.extui %272 : vector<8x56xi1> to vector<8x56xi32>
    %274 = arith.sitofp %273 : vector<8x56xi32> to vector<8x56xf32>
    %c0_117 = arith.constant 0 : index
    %c0_118 = arith.constant 0 : index
    %275 = vector.load %arg3[%c0_117, %c0_118] : memref<56x256xf32, #tpu.memory_space<vmem>>, vector<56x256xf32>
    %cst_119 = arith.constant dense<0.000000e+00> : vector<8x256xf32>
    %276 = tpu.matmul %274, %275, %cst_119 {dimension_numbers = #tpu.dot_dimension_numbers<[1], [0], [0], [1], [0, 0, 1, 1], [], []>} : vector<8x56xf32>, vector<56x256xf32>, vector<8x256xf32> -> vector<8x256xf32>
    %c0_120 = arith.constant 0 : index
    %c0_121 = arith.constant 0 : index
    %277 = vector.load %arg4[%c0_120, %c0_121] : memref<128x256xf32, #tpu.memory_space<vmem>>, vector<128x256xf32>
    %cst_122 = arith.constant dense<0.000000e+00> : vector<8x256xf32>
    %278 = tpu.matmul %267, %277, %cst_122 {dimension_numbers = #tpu.dot_dimension_numbers<[1], [0], [0], [1], [0, 0, 1, 1], [], []>} : vector<8x128xf32>, vector<128x256xf32>, vector<8x256xf32> -> vector<8x256xf32>
    %279 = arith.addf %276, %278 : vector<8x256xf32>
    %280 = vector.extract_strided_slice %279 {offsets = [0, 128], sizes = [8, 128], strides = [1, 1]} : vector<8x256xf32> to vector<8x128xf32>
    %cst_123 = arith.constant dense<0xFF800000> : vector<8xf32>
    %281 = vector.multi_reduction <maximumf>, %280, %cst_123 [1] : vector<8x128xf32> to vector<8xf32>
    %282 = vector.shape_cast %281 : vector<8xf32> to vector<8x1xf32>
    %283 = vector.broadcast %282 : vector<8x1xf32> to vector<8x128xf32>
    %284 = arith.subf %280, %283 : vector<8x128xf32>
    %285 = math.exp %284 : vector<8x128xf32>
    %cst_124 = arith.constant dense<0.000000e+00> : vector<8xf32>
    %286 = vector.multi_reduction <add>, %285, %cst_124 [1] : vector<8x128xf32> to vector<8xf32>
    %287 = vector.shape_cast %286 : vector<8xf32> to vector<8x1xf32>
    %288 = math.log %287 : vector<8x1xf32>
    %289 = vector.broadcast %288 : vector<8x1xf32> to vector<8x128xf32>
    %290 = arith.subf %284, %289 : vector<8x128xf32>
    %c0_125 = arith.constant 0 : index
    %291 = arith.index_cast %c8_i32 : i32 to index
    %c0_126 = arith.constant 0 : index
    %c0_127 = arith.constant 0 : index
    %292 = vector.load %arg5[%c0_125, %291, %c0_126, %c0_127] : memref<1x16x8x128xf32, #tpu.memory_space<vmem>>, vector<1x1x8x128xf32>
    %293 = vector.shape_cast %292 : vector<1x1x8x128xf32> to vector<8x128xf32>
    %294 = vector.shape_cast %290 : vector<8x128xf32> to vector<1x1x8x128xf32>
    tpu.vector_store %arg5[%c0_125, %291, %c0_126, %c0_127], %294 {strides = array<i32>} : memref<1x16x8x128xf32, #tpu.memory_space<vmem>>, vector<1x1x8x128xf32>,
    %295 = vector.broadcast %c8_i32 : i32 to vector<8x1xi32>
    %296 = arith.cmpi slt, %295, %1 : vector<8x1xi32>
    %297 = vector.extract_strided_slice %279 {offsets = [0, 0], sizes = [8, 128], strides = [1, 1]} : vector<8x256xf32> to vector<8x128xf32>
    %298 = vector.shape_cast %296 : vector<8x1xi1> to vector<8x1xi1>
    %299 = vector.broadcast %298 : vector<8x1xi1> to vector<8x128xi1>
    %300 = arith.select %299, %297, %267 : vector<8x128xi1>, vector<8x128xf32>
    %c9_i32 = arith.constant 9 : i32
    %c0_128 = arith.constant 0 : index
    %301 = arith.index_cast %c9_i32 : i32 to index
    %c0_129 = arith.constant 0 : index
    %c0_130 = arith.constant 0 : index
    %302 = vector.load %arg1[%c0_128, %301, %c0_129, %c0_130] : memref<1x16x8x1xi32, #tpu.memory_space<vmem>>, vector<1x1x8x1xi32>
    %303 = vector.shape_cast %302 : vector<1x1x8x1xi32> to vector<8x1xi32>
    %304 = vector.broadcast %303 : vector<8x1xi32> to vector<8x56xi32>
    %305 = arith.cmpi eq, %2, %304 : vector<8x56xi32>
    %306 = arith.extui %305 : vector<8x56xi1> to vector<8x56xi32>
    %307 = arith.sitofp %306 : vector<8x56xi32> to vector<8x56xf32>
    %c0_131 = arith.constant 0 : index
    %c0_132 = arith.constant 0 : index
    %308 = vector.load %arg3[%c0_131, %c0_132] : memref<56x256xf32, #tpu.memory_space<vmem>>, vector<56x256xf32>
    %cst_133 = arith.constant dense<0.000000e+00> : vector<8x256xf32>
    %309 = tpu.matmul %307, %308, %cst_133 {dimension_numbers = #tpu.dot_dimension_numbers<[1], [0], [0], [1], [0, 0, 1, 1], [], []>} : vector<8x56xf32>, vector<56x256xf32>, vector<8x256xf32> -> vector<8x256xf32>
    %c0_134 = arith.constant 0 : index
    %c0_135 = arith.constant 0 : index
    %310 = vector.load %arg4[%c0_134, %c0_135] : memref<128x256xf32, #tpu.memory_space<vmem>>, vector<128x256xf32>
    %cst_136 = arith.constant dense<0.000000e+00> : vector<8x256xf32>
    %311 = tpu.matmul %300, %310, %cst_136 {dimension_numbers = #tpu.dot_dimension_numbers<[1], [0], [0], [1], [0, 0, 1, 1], [], []>} : vector<8x128xf32>, vector<128x256xf32>, vector<8x256xf32> -> vector<8x256xf32>
    %312 = arith.addf %309, %311 : vector<8x256xf32>
    %313 = vector.extract_strided_slice %312 {offsets = [0, 128], sizes = [8, 128], strides = [1, 1]} : vector<8x256xf32> to vector<8x128xf32>
    %cst_137 = arith.constant dense<0xFF800000> : vector<8xf32>
    %314 = vector.multi_reduction <maximumf>, %313, %cst_137 [1] : vector<8x128xf32> to vector<8xf32>
    %315 = vector.shape_cast %314 : vector<8xf32> to vector<8x1xf32>
    %316 = vector.broadcast %315 : vector<8x1xf32> to vector<8x128xf32>
    %317 = arith.subf %313, %316 : vector<8x128xf32>
    %318 = math.exp %317 : vector<8x128xf32>
    %cst_138 = arith.constant dense<0.000000e+00> : vector<8xf32>
    %319 = vector.multi_reduction <add>, %318, %cst_138 [1] : vector<8x128xf32> to vector<8xf32>
    %320 = vector.shape_cast %319 : vector<8xf32> to vector<8x1xf32>
    %321 = math.log %320 : vector<8x1xf32>
    %322 = vector.broadcast %321 : vector<8x1xf32> to vector<8x128xf32>
    %323 = arith.subf %317, %322 : vector<8x128xf32>
    %c0_139 = arith.constant 0 : index
    %324 = arith.index_cast %c9_i32 : i32 to index
    %c0_140 = arith.constant 0 : index
    %c0_141 = arith.constant 0 : index
    %325 = vector.load %arg5[%c0_139, %324, %c0_140, %c0_141] : memref<1x16x8x128xf32, #tpu.memory_space<vmem>>, vector<1x1x8x128xf32>
    %326 = vector.shape_cast %325 : vector<1x1x8x128xf32> to vector<8x128xf32>
    %327 = vector.shape_cast %323 : vector<8x128xf32> to vector<1x1x8x128xf32>
    tpu.vector_store %arg5[%c0_139, %324, %c0_140, %c0_141], %327 {strides = array<i32>} : memref<1x16x8x128xf32, #tpu.memory_space<vmem>>, vector<1x1x8x128xf32>,
    %328 = vector.broadcast %c9_i32 : i32 to vector<8x1xi32>
    %329 = arith.cmpi slt, %328, %1 : vector<8x1xi32>
    %330 = vector.extract_strided_slice %312 {offsets = [0, 0], sizes = [8, 128], strides = [1, 1]} : vector<8x256xf32> to vector<8x128xf32>
    %331 = vector.shape_cast %329 : vector<8x1xi1> to vector<8x1xi1>
    %332 = vector.broadcast %331 : vector<8x1xi1> to vector<8x128xi1>
    %333 = arith.select %332, %330, %300 : vector<8x128xi1>, vector<8x128xf32>
    %c10_i32 = arith.constant 10 : i32
    %c0_142 = arith.constant 0 : index
    %334 = arith.index_cast %c10_i32 : i32 to index
    %c0_143 = arith.constant 0 : index
    %c0_144 = arith.constant 0 : index
    %335 = vector.load %arg1[%c0_142, %334, %c0_143, %c0_144] : memref<1x16x8x1xi32, #tpu.memory_space<vmem>>, vector<1x1x8x1xi32>
    %336 = vector.shape_cast %335 : vector<1x1x8x1xi32> to vector<8x1xi32>
    %337 = vector.broadcast %336 : vector<8x1xi32> to vector<8x56xi32>
    %338 = arith.cmpi eq, %2, %337 : vector<8x56xi32>
    %339 = arith.extui %338 : vector<8x56xi1> to vector<8x56xi32>
    %340 = arith.sitofp %339 : vector<8x56xi32> to vector<8x56xf32>
    %c0_145 = arith.constant 0 : index
    %c0_146 = arith.constant 0 : index
    %341 = vector.load %arg3[%c0_145, %c0_146] : memref<56x256xf32, #tpu.memory_space<vmem>>, vector<56x256xf32>
    %cst_147 = arith.constant dense<0.000000e+00> : vector<8x256xf32>
    %342 = tpu.matmul %340, %341, %cst_147 {dimension_numbers = #tpu.dot_dimension_numbers<[1], [0], [0], [1], [0, 0, 1, 1], [], []>} : vector<8x56xf32>, vector<56x256xf32>, vector<8x256xf32> -> vector<8x256xf32>
    %c0_148 = arith.constant 0 : index
    %c0_149 = arith.constant 0 : index
    %343 = vector.load %arg4[%c0_148, %c0_149] : memref<128x256xf32, #tpu.memory_space<vmem>>, vector<128x256xf32>
    %cst_150 = arith.constant dense<0.000000e+00> : vector<8x256xf32>
    %344 = tpu.matmul %333, %343, %cst_150 {dimension_numbers = #tpu.dot_dimension_numbers<[1], [0], [0], [1], [0, 0, 1, 1], [], []>} : vector<8x128xf32>, vector<128x256xf32>, vector<8x256xf32> -> vector<8x256xf32>
    %345 = arith.addf %342, %344 : vector<8x256xf32>
    %346 = vector.extract_strided_slice %345 {offsets = [0, 128], sizes = [8, 128], strides = [1, 1]} : vector<8x256xf32> to vector<8x128xf32>
    %cst_151 = arith.constant dense<0xFF800000> : vector<8xf32>
    %347 = vector.multi_reduction <maximumf>, %346, %cst_151 [1] : vector<8x128xf32> to vector<8xf32>
    %348 = vector.shape_cast %347 : vector<8xf32> to vector<8x1xf32>
    %349 = vector.broadcast %348 : vector<8x1xf32> to vector<8x128xf32>
    %350 = arith.subf %346, %349 : vector<8x128xf32>
    %351 = math.exp %350 : vector<8x128xf32>
    %cst_152 = arith.constant dense<0.000000e+00> : vector<8xf32>
    %352 = vector.multi_reduction <add>, %351, %cst_152 [1] : vector<8x128xf32> to vector<8xf32>
    %353 = vector.shape_cast %352 : vector<8xf32> to vector<8x1xf32>
    %354 = math.log %353 : vector<8x1xf32>
    %355 = vector.broadcast %354 : vector<8x1xf32> to vector<8x128xf32>
    %356 = arith.subf %350, %355 : vector<8x128xf32>
    %c0_153 = arith.constant 0 : index
    %357 = arith.index_cast %c10_i32 : i32 to index
    %c0_154 = arith.constant 0 : index
    %c0_155 = arith.constant 0 : index
    %358 = vector.load %arg5[%c0_153, %357, %c0_154, %c0_155] : memref<1x16x8x128xf32, #tpu.memory_space<vmem>>, vector<1x1x8x128xf32>
    %359 = vector.shape_cast %358 : vector<1x1x8x128xf32> to vector<8x128xf32>
    %360 = vector.shape_cast %356 : vector<8x128xf32> to vector<1x1x8x128xf32>
    tpu.vector_store %arg5[%c0_153, %357, %c0_154, %c0_155], %360 {strides = array<i32>} : memref<1x16x8x128xf32, #tpu.memory_space<vmem>>, vector<1x1x8x128xf32>,
    %361 = vector.broadcast %c10_i32 : i32 to vector<8x1xi32>
    %362 = arith.cmpi slt, %361, %1 : vector<8x1xi32>
    %363 = vector.extract_strided_slice %345 {offsets = [0, 0], sizes = [8, 128], strides = [1, 1]} : vector<8x256xf32> to vector<8x128xf32>
    %364 = vector.shape_cast %362 : vector<8x1xi1> to vector<8x1xi1>
    %365 = vector.broadcast %364 : vector<8x1xi1> to vector<8x128xi1>
    %366 = arith.select %365, %363, %333 : vector<8x128xi1>, vector<8x128xf32>
    %c11_i32 = arith.constant 11 : i32
    %c0_156 = arith.constant 0 : index
    %367 = arith.index_cast %c11_i32 : i32 to index
    %c0_157 = arith.constant 0 : index
    %c0_158 = arith.constant 0 : index
    %368 = vector.load %arg1[%c0_156, %367, %c0_157, %c0_158] : memref<1x16x8x1xi32, #tpu.memory_space<vmem>>, vector<1x1x8x1xi32>
    %369 = vector.shape_cast %368 : vector<1x1x8x1xi32> to vector<8x1xi32>
    %370 = vector.broadcast %369 : vector<8x1xi32> to vector<8x56xi32>
    %371 = arith.cmpi eq, %2, %370 : vector<8x56xi32>
    %372 = arith.extui %371 : vector<8x56xi1> to vector<8x56xi32>
    %373 = arith.sitofp %372 : vector<8x56xi32> to vector<8x56xf32>
    %c0_159 = arith.constant 0 : index
    %c0_160 = arith.constant 0 : index
    %374 = vector.load %arg3[%c0_159, %c0_160] : memref<56x256xf32, #tpu.memory_space<vmem>>, vector<56x256xf32>
    %cst_161 = arith.constant dense<0.000000e+00> : vector<8x256xf32>
    %375 = tpu.matmul %373, %374, %cst_161 {dimension_numbers = #tpu.dot_dimension_numbers<[1], [0], [0], [1], [0, 0, 1, 1], [], []>} : vector<8x56xf32>, vector<56x256xf32>, vector<8x256xf32> -> vector<8x256xf32>
    %c0_162 = arith.constant 0 : index
    %c0_163 = arith.constant 0 : index
    %376 = vector.load %arg4[%c0_162, %c0_163] : memref<128x256xf32, #tpu.memory_space<vmem>>, vector<128x256xf32>
    %cst_164 = arith.constant dense<0.000000e+00> : vector<8x256xf32>
    %377 = tpu.matmul %366, %376, %cst_164 {dimension_numbers = #tpu.dot_dimension_numbers<[1], [0], [0], [1], [0, 0, 1, 1], [], []>} : vector<8x128xf32>, vector<128x256xf32>, vector<8x256xf32> -> vector<8x256xf32>
    %378 = arith.addf %375, %377 : vector<8x256xf32>
    %379 = vector.extract_strided_slice %378 {offsets = [0, 128], sizes = [8, 128], strides = [1, 1]} : vector<8x256xf32> to vector<8x128xf32>
    %cst_165 = arith.constant dense<0xFF800000> : vector<8xf32>
    %380 = vector.multi_reduction <maximumf>, %379, %cst_165 [1] : vector<8x128xf32> to vector<8xf32>
    %381 = vector.shape_cast %380 : vector<8xf32> to vector<8x1xf32>
    %382 = vector.broadcast %381 : vector<8x1xf32> to vector<8x128xf32>
    %383 = arith.subf %379, %382 : vector<8x128xf32>
    %384 = math.exp %383 : vector<8x128xf32>
    %cst_166 = arith.constant dense<0.000000e+00> : vector<8xf32>
    %385 = vector.multi_reduction <add>, %384, %cst_166 [1] : vector<8x128xf32> to vector<8xf32>
    %386 = vector.shape_cast %385 : vector<8xf32> to vector<8x1xf32>
    %387 = math.log %386 : vector<8x1xf32>
    %388 = vector.broadcast %387 : vector<8x1xf32> to vector<8x128xf32>
    %389 = arith.subf %383, %388 : vector<8x128xf32>
    %c0_167 = arith.constant 0 : index
    %390 = arith.index_cast %c11_i32 : i32 to index
    %c0_168 = arith.constant 0 : index
    %c0_169 = arith.constant 0 : index
    %391 = vector.load %arg5[%c0_167, %390, %c0_168, %c0_169] : memref<1x16x8x128xf32, #tpu.memory_space<vmem>>, vector<1x1x8x128xf32>
    %392 = vector.shape_cast %391 : vector<1x1x8x128xf32> to vector<8x128xf32>
    %393 = vector.shape_cast %389 : vector<8x128xf32> to vector<1x1x8x128xf32>
    tpu.vector_store %arg5[%c0_167, %390, %c0_168, %c0_169], %393 {strides = array<i32>} : memref<1x16x8x128xf32, #tpu.memory_space<vmem>>, vector<1x1x8x128xf32>,
    %394 = vector.broadcast %c11_i32 : i32 to vector<8x1xi32>
    %395 = arith.cmpi slt, %394, %1 : vector<8x1xi32>
    %396 = vector.extract_strided_slice %378 {offsets = [0, 0], sizes = [8, 128], strides = [1, 1]} : vector<8x256xf32> to vector<8x128xf32>
    %397 = vector.shape_cast %395 : vector<8x1xi1> to vector<8x1xi1>
    %398 = vector.broadcast %397 : vector<8x1xi1> to vector<8x128xi1>
    %399 = arith.select %398, %396, %366 : vector<8x128xi1>, vector<8x128xf32>
    %c12_i32 = arith.constant 12 : i32
    %c0_170 = arith.constant 0 : index
    %400 = arith.index_cast %c12_i32 : i32 to index
    %c0_171 = arith.constant 0 : index
    %c0_172 = arith.constant 0 : index
    %401 = vector.load %arg1[%c0_170, %400, %c0_171, %c0_172] : memref<1x16x8x1xi32, #tpu.memory_space<vmem>>, vector<1x1x8x1xi32>
    %402 = vector.shape_cast %401 : vector<1x1x8x1xi32> to vector<8x1xi32>
    %403 = vector.broadcast %402 : vector<8x1xi32> to vector<8x56xi32>
    %404 = arith.cmpi eq, %2, %403 : vector<8x56xi32>
    %405 = arith.extui %404 : vector<8x56xi1> to vector<8x56xi32>
    %406 = arith.sitofp %405 : vector<8x56xi32> to vector<8x56xf32>
    %c0_173 = arith.constant 0 : index
    %c0_174 = arith.constant 0 : index
    %407 = vector.load %arg3[%c0_173, %c0_174] : memref<56x256xf32, #tpu.memory_space<vmem>>, vector<56x256xf32>
    %cst_175 = arith.constant dense<0.000000e+00> : vector<8x256xf32>
    %408 = tpu.matmul %406, %407, %cst_175 {dimension_numbers = #tpu.dot_dimension_numbers<[1], [0], [0], [1], [0, 0, 1, 1], [], []>} : vector<8x56xf32>, vector<56x256xf32>, vector<8x256xf32> -> vector<8x256xf32>
    %c0_176 = arith.constant 0 : index
    %c0_177 = arith.constant 0 : index
    %409 = vector.load %arg4[%c0_176, %c0_177] : memref<128x256xf32, #tpu.memory_space<vmem>>, vector<128x256xf32>
    %cst_178 = arith.constant dense<0.000000e+00> : vector<8x256xf32>
    %410 = tpu.matmul %399, %409, %cst_178 {dimension_numbers = #tpu.dot_dimension_numbers<[1], [0], [0], [1], [0, 0, 1, 1], [], []>} : vector<8x128xf32>, vector<128x256xf32>, vector<8x256xf32> -> vector<8x256xf32>
    %411 = arith.addf %408, %410 : vector<8x256xf32>
    %412 = vector.extract_strided_slice %411 {offsets = [0, 128], sizes = [8, 128], strides = [1, 1]} : vector<8x256xf32> to vector<8x128xf32>
    %cst_179 = arith.constant dense<0xFF800000> : vector<8xf32>
    %413 = vector.multi_reduction <maximumf>, %412, %cst_179 [1] : vector<8x128xf32> to vector<8xf32>
    %414 = vector.shape_cast %413 : vector<8xf32> to vector<8x1xf32>
    %415 = vector.broadcast %414 : vector<8x1xf32> to vector<8x128xf32>
    %416 = arith.subf %412, %415 : vector<8x128xf32>
    %417 = math.exp %416 : vector<8x128xf32>
    %cst_180 = arith.constant dense<0.000000e+00> : vector<8xf32>
    %418 = vector.multi_reduction <add>, %417, %cst_180 [1] : vector<8x128xf32> to vector<8xf32>
    %419 = vector.shape_cast %418 : vector<8xf32> to vector<8x1xf32>
    %420 = math.log %419 : vector<8x1xf32>
    %421 = vector.broadcast %420 : vector<8x1xf32> to vector<8x128xf32>
    %422 = arith.subf %416, %421 : vector<8x128xf32>
    %c0_181 = arith.constant 0 : index
    %423 = arith.index_cast %c12_i32 : i32 to index
    %c0_182 = arith.constant 0 : index
    %c0_183 = arith.constant 0 : index
    %424 = vector.load %arg5[%c0_181, %423, %c0_182, %c0_183] : memref<1x16x8x128xf32, #tpu.memory_space<vmem>>, vector<1x1x8x128xf32>
    %425 = vector.shape_cast %424 : vector<1x1x8x128xf32> to vector<8x128xf32>
    %426 = vector.shape_cast %422 : vector<8x128xf32> to vector<1x1x8x128xf32>
    tpu.vector_store %arg5[%c0_181, %423, %c0_182, %c0_183], %426 {strides = array<i32>} : memref<1x16x8x128xf32, #tpu.memory_space<vmem>>, vector<1x1x8x128xf32>,
    %427 = vector.broadcast %c12_i32 : i32 to vector<8x1xi32>
    %428 = arith.cmpi slt, %427, %1 : vector<8x1xi32>
    %429 = vector.extract_strided_slice %411 {offsets = [0, 0], sizes = [8, 128], strides = [1, 1]} : vector<8x256xf32> to vector<8x128xf32>
    %430 = vector.shape_cast %428 : vector<8x1xi1> to vector<8x1xi1>
    %431 = vector.broadcast %430 : vector<8x1xi1> to vector<8x128xi1>
    %432 = arith.select %431, %429, %399 : vector<8x128xi1>, vector<8x128xf32>
    %c13_i32 = arith.constant 13 : i32
    %c0_184 = arith.constant 0 : index
    %433 = arith.index_cast %c13_i32 : i32 to index
    %c0_185 = arith.constant 0 : index
    %c0_186 = arith.constant 0 : index
    %434 = vector.load %arg1[%c0_184, %433, %c0_185, %c0_186] : memref<1x16x8x1xi32, #tpu.memory_space<vmem>>, vector<1x1x8x1xi32>
    %435 = vector.shape_cast %434 : vector<1x1x8x1xi32> to vector<8x1xi32>
    %436 = vector.broadcast %435 : vector<8x1xi32> to vector<8x56xi32>
    %437 = arith.cmpi eq, %2, %436 : vector<8x56xi32>
    %438 = arith.extui %437 : vector<8x56xi1> to vector<8x56xi32>
    %439 = arith.sitofp %438 : vector<8x56xi32> to vector<8x56xf32>
    %c0_187 = arith.constant 0 : index
    %c0_188 = arith.constant 0 : index
    %440 = vector.load %arg3[%c0_187, %c0_188] : memref<56x256xf32, #tpu.memory_space<vmem>>, vector<56x256xf32>
    %cst_189 = arith.constant dense<0.000000e+00> : vector<8x256xf32>
    %441 = tpu.matmul %439, %440, %cst_189 {dimension_numbers = #tpu.dot_dimension_numbers<[1], [0], [0], [1], [0, 0, 1, 1], [], []>} : vector<8x56xf32>, vector<56x256xf32>, vector<8x256xf32> -> vector<8x256xf32>
    %c0_190 = arith.constant 0 : index
    %c0_191 = arith.constant 0 : index
    %442 = vector.load %arg4[%c0_190, %c0_191] : memref<128x256xf32, #tpu.memory_space<vmem>>, vector<128x256xf32>
    %cst_192 = arith.constant dense<0.000000e+00> : vector<8x256xf32>
    %443 = tpu.matmul %432, %442, %cst_192 {dimension_numbers = #tpu.dot_dimension_numbers<[1], [0], [0], [1], [0, 0, 1, 1], [], []>} : vector<8x128xf32>, vector<128x256xf32>, vector<8x256xf32> -> vector<8x256xf32>
    %444 = arith.addf %441, %443 : vector<8x256xf32>
    %445 = vector.extract_strided_slice %444 {offsets = [0, 128], sizes = [8, 128], strides = [1, 1]} : vector<8x256xf32> to vector<8x128xf32>
    %cst_193 = arith.constant dense<0xFF800000> : vector<8xf32>
    %446 = vector.multi_reduction <maximumf>, %445, %cst_193 [1] : vector<8x128xf32> to vector<8xf32>
    %447 = vector.shape_cast %446 : vector<8xf32> to vector<8x1xf32>
    %448 = vector.broadcast %447 : vector<8x1xf32> to vector<8x128xf32>
    %449 = arith.subf %445, %448 : vector<8x128xf32>
    %450 = math.exp %449 : vector<8x128xf32>
    %cst_194 = arith.constant dense<0.000000e+00> : vector<8xf32>
    %451 = vector.multi_reduction <add>, %450, %cst_194 [1] : vector<8x128xf32> to vector<8xf32>
    %452 = vector.shape_cast %451 : vector<8xf32> to vector<8x1xf32>
    %453 = math.log %452 : vector<8x1xf32>
    %454 = vector.broadcast %453 : vector<8x1xf32> to vector<8x128xf32>
    %455 = arith.subf %449, %454 : vector<8x128xf32>
    %c0_195 = arith.constant 0 : index
    %456 = arith.index_cast %c13_i32 : i32 to index
    %c0_196 = arith.constant 0 : index
    %c0_197 = arith.constant 0 : index
    %457 = vector.load %arg5[%c0_195, %456, %c0_196, %c0_197] : memref<1x16x8x128xf32, #tpu.memory_space<vmem>>, vector<1x1x8x128xf32>
    %458 = vector.shape_cast %457 : vector<1x1x8x128xf32> to vector<8x128xf32>
    %459 = vector.shape_cast %455 : vector<8x128xf32> to vector<1x1x8x128xf32>
    tpu.vector_store %arg5[%c0_195, %456, %c0_196, %c0_197], %459 {strides = array<i32>} : memref<1x16x8x128xf32, #tpu.memory_space<vmem>>, vector<1x1x8x128xf32>,
    %460 = vector.broadcast %c13_i32 : i32 to vector<8x1xi32>
    %461 = arith.cmpi slt, %460, %1 : vector<8x1xi32>
    %462 = vector.extract_strided_slice %444 {offsets = [0, 0], sizes = [8, 128], strides = [1, 1]} : vector<8x256xf32> to vector<8x128xf32>
    %463 = vector.shape_cast %461 : vector<8x1xi1> to vector<8x1xi1>
    %464 = vector.broadcast %463 : vector<8x1xi1> to vector<8x128xi1>
    %465 = arith.select %464, %462, %432 : vector<8x128xi1>, vector<8x128xf32>
    %c14_i32 = arith.constant 14 : i32
    %c0_198 = arith.constant 0 : index
    %466 = arith.index_cast %c14_i32 : i32 to index
    %c0_199 = arith.constant 0 : index
    %c0_200 = arith.constant 0 : index
    %467 = vector.load %arg1[%c0_198, %466, %c0_199, %c0_200] : memref<1x16x8x1xi32, #tpu.memory_space<vmem>>, vector<1x1x8x1xi32>
    %468 = vector.shape_cast %467 : vector<1x1x8x1xi32> to vector<8x1xi32>
    %469 = vector.broadcast %468 : vector<8x1xi32> to vector<8x56xi32>
    %470 = arith.cmpi eq, %2, %469 : vector<8x56xi32>
    %471 = arith.extui %470 : vector<8x56xi1> to vector<8x56xi32>
    %472 = arith.sitofp %471 : vector<8x56xi32> to vector<8x56xf32>
    %c0_201 = arith.constant 0 : index
    %c0_202 = arith.constant 0 : index
    %473 = vector.load %arg3[%c0_201, %c0_202] : memref<56x256xf32, #tpu.memory_space<vmem>>, vector<56x256xf32>
    %cst_203 = arith.constant dense<0.000000e+00> : vector<8x256xf32>
    %474 = tpu.matmul %472, %473, %cst_203 {dimension_numbers = #tpu.dot_dimension_numbers<[1], [0], [0], [1], [0, 0, 1, 1], [], []>} : vector<8x56xf32>, vector<56x256xf32>, vector<8x256xf32> -> vector<8x256xf32>
    %c0_204 = arith.constant 0 : index
    %c0_205 = arith.constant 0 : index
    %475 = vector.load %arg4[%c0_204, %c0_205] : memref<128x256xf32, #tpu.memory_space<vmem>>, vector<128x256xf32>
    %cst_206 = arith.constant dense<0.000000e+00> : vector<8x256xf32>
    %476 = tpu.matmul %465, %475, %cst_206 {dimension_numbers = #tpu.dot_dimension_numbers<[1], [0], [0], [1], [0, 0, 1, 1], [], []>} : vector<8x128xf32>, vector<128x256xf32>, vector<8x256xf32> -> vector<8x256xf32>
    %477 = arith.addf %474, %476 : vector<8x256xf32>
    %478 = vector.extract_strided_slice %477 {offsets = [0, 128], sizes = [8, 128], strides = [1, 1]} : vector<8x256xf32> to vector<8x128xf32>
    %cst_207 = arith.constant dense<0xFF800000> : vector<8xf32>
    %479 = vector.multi_reduction <maximumf>, %478, %cst_207 [1] : vector<8x128xf32> to vector<8xf32>
    %480 = vector.shape_cast %479 : vector<8xf32> to vector<8x1xf32>
    %481 = vector.broadcast %480 : vector<8x1xf32> to vector<8x128xf32>
    %482 = arith.subf %478, %481 : vector<8x128xf32>
    %483 = math.exp %482 : vector<8x128xf32>
    %cst_208 = arith.constant dense<0.000000e+00> : vector<8xf32>
    %484 = vector.multi_reduction <add>, %483, %cst_208 [1] : vector<8x128xf32> to vector<8xf32>
    %485 = vector.shape_cast %484 : vector<8xf32> to vector<8x1xf32>
    %486 = math.log %485 : vector<8x1xf32>
    %487 = vector.broadcast %486 : vector<8x1xf32> to vector<8x128xf32>
    %488 = arith.subf %482, %487 : vector<8x128xf32>
    %c0_209 = arith.constant 0 : index
    %489 = arith.index_cast %c14_i32 : i32 to index
    %c0_210 = arith.constant 0 : index
    %c0_211 = arith.constant 0 : index
    %490 = vector.load %arg5[%c0_209, %489, %c0_210, %c0_211] : memref<1x16x8x128xf32, #tpu.memory_space<vmem>>, vector<1x1x8x128xf32>
    %491 = vector.shape_cast %490 : vector<1x1x8x128xf32> to vector<8x128xf32>
    %492 = vector.shape_cast %488 : vector<8x128xf32> to vector<1x1x8x128xf32>
    tpu.vector_store %arg5[%c0_209, %489, %c0_210, %c0_211], %492 {strides = array<i32>} : memref<1x16x8x128xf32, #tpu.memory_space<vmem>>, vector<1x1x8x128xf32>,
    %493 = vector.broadcast %c14_i32 : i32 to vector<8x1xi32>
    %494 = arith.cmpi slt, %493, %1 : vector<8x1xi32>
    %495 = vector.extract_strided_slice %477 {offsets = [0, 0], sizes = [8, 128], strides = [1, 1]} : vector<8x256xf32> to vector<8x128xf32>
    %496 = vector.shape_cast %494 : vector<8x1xi1> to vector<8x1xi1>
    %497 = vector.broadcast %496 : vector<8x1xi1> to vector<8x128xi1>
    %498 = arith.select %497, %495, %465 : vector<8x128xi1>, vector<8x128xf32>
    %c15_i32 = arith.constant 15 : i32
    %c0_212 = arith.constant 0 : index
    %499 = arith.index_cast %c15_i32 : i32 to index
    %c0_213 = arith.constant 0 : index
    %c0_214 = arith.constant 0 : index
    %500 = vector.load %arg1[%c0_212, %499, %c0_213, %c0_214] : memref<1x16x8x1xi32, #tpu.memory_space<vmem>>, vector<1x1x8x1xi32>
    %501 = vector.shape_cast %500 : vector<1x1x8x1xi32> to vector<8x1xi32>
    %502 = vector.broadcast %501 : vector<8x1xi32> to vector<8x56xi32>
    %503 = arith.cmpi eq, %2, %502 : vector<8x56xi32>
    %504 = arith.extui %503 : vector<8x56xi1> to vector<8x56xi32>
    %505 = arith.sitofp %504 : vector<8x56xi32> to vector<8x56xf32>
    %c0_215 = arith.constant 0 : index
    %c0_216 = arith.constant 0 : index
    %506 = vector.load %arg3[%c0_215, %c0_216] : memref<56x256xf32, #tpu.memory_space<vmem>>, vector<56x256xf32>
    %cst_217 = arith.constant dense<0.000000e+00> : vector<8x256xf32>
    %507 = tpu.matmul %505, %506, %cst_217 {dimension_numbers = #tpu.dot_dimension_numbers<[1], [0], [0], [1], [0, 0, 1, 1], [], []>} : vector<8x56xf32>, vector<56x256xf32>, vector<8x256xf32> -> vector<8x256xf32>
    %c0_218 = arith.constant 0 : index
    %c0_219 = arith.constant 0 : index
    %508 = vector.load %arg4[%c0_218, %c0_219] : memref<128x256xf32, #tpu.memory_space<vmem>>, vector<128x256xf32>
    %cst_220 = arith.constant dense<0.000000e+00> : vector<8x256xf32>
    %509 = tpu.matmul %498, %508, %cst_220 {dimension_numbers = #tpu.dot_dimension_numbers<[1], [0], [0], [1], [0, 0, 1, 1], [], []>} : vector<8x128xf32>, vector<128x256xf32>, vector<8x256xf32> -> vector<8x256xf32>
    %510 = arith.addf %507, %509 : vector<8x256xf32>
    %511 = vector.extract_strided_slice %510 {offsets = [0, 128], sizes = [8, 128], strides = [1, 1]} : vector<8x256xf32> to vector<8x128xf32>
    %cst_221 = arith.constant dense<0xFF800000> : vector<8xf32>
    %512 = vector.multi_reduction <maximumf>, %511, %cst_221 [1] : vector<8x128xf32> to vector<8xf32>
    %513 = vector.shape_cast %512 : vector<8xf32> to vector<8x1xf32>
    %514 = vector.broadcast %513 : vector<8x1xf32> to vector<8x128xf32>
    %515 = arith.subf %511, %514 : vector<8x128xf32>
    %516 = math.exp %515 : vector<8x128xf32>
    %cst_222 = arith.constant dense<0.000000e+00> : vector<8xf32>
    %517 = vector.multi_reduction <add>, %516, %cst_222 [1] : vector<8x128xf32> to vector<8xf32>
    %518 = vector.shape_cast %517 : vector<8xf32> to vector<8x1xf32>
    %519 = math.log %518 : vector<8x1xf32>
    %520 = vector.broadcast %519 : vector<8x1xf32> to vector<8x128xf32>
    %521 = arith.subf %515, %520 : vector<8x128xf32>
    %c0_223 = arith.constant 0 : index
    %522 = arith.index_cast %c15_i32 : i32 to index
    %c0_224 = arith.constant 0 : index
    %c0_225 = arith.constant 0 : index
    %523 = vector.load %arg5[%c0_223, %522, %c0_224, %c0_225] : memref<1x16x8x128xf32, #tpu.memory_space<vmem>>, vector<1x1x8x128xf32>
    %524 = vector.shape_cast %523 : vector<1x1x8x128xf32> to vector<8x128xf32>
    %525 = vector.shape_cast %521 : vector<8x128xf32> to vector<1x1x8x128xf32>
    tpu.vector_store %arg5[%c0_223, %522, %c0_224, %c0_225], %525 {strides = array<i32>} : memref<1x16x8x128xf32, #tpu.memory_space<vmem>>, vector<1x1x8x128xf32>,
    %526 = vector.broadcast %c15_i32 : i32 to vector<8x1xi32>
    %527 = arith.cmpi slt, %526, %1 : vector<8x1xi32>
    %528 = vector.extract_strided_slice %510 {offsets = [0, 0], sizes = [8, 128], strides = [1, 1]} : vector<8x256xf32> to vector<8x128xf32>
    %529 = vector.shape_cast %527 : vector<8x1xi1> to vector<8x1xi1>
    %530 = vector.broadcast %529 : vector<8x1xi1> to vector<8x128xi1>
    %531 = arith.select %530, %528, %498 : vector<8x128xi1>, vector<8x128xf32>
    %c16_i32 = arith.constant 16 : i32
    %c0_226 = arith.constant 0 : index
    %c0_227 = arith.constant 0 : index
    %c0_228 = arith.constant 0 : index
    %532 = vector.load %arg6[%c0_226, %c0_227, %c0_228] : memref<1x8x128xf32, #tpu.memory_space<vmem>>, vector<1x8x128xf32>
    %533 = vector.shape_cast %532 : vector<1x8x128xf32> to vector<8x128xf32>
    %534 = vector.shape_cast %531 : vector<8x128xf32> to vector<1x8x128xf32>
    tpu.vector_store %arg6[%c0_226, %c0_227, %c0_228], %534 {strides = array<i32>} : memref<1x8x128xf32, #tpu.memory_space<vmem>>, vector<1x8x128xf32>,
    return
  }
  func.func @transform_0(%arg0: i32) -> (i32, i32, i32, i32) {
    %c0_i32 = arith.constant 0 : i32
    %c0_i32_0 = arith.constant 0 : i32
    %c0_i32_1 = arith.constant 0 : i32
    %c0_i32_2 = arith.constant 0 : i32
    return %arg0, %c0_i32, %c0_i32_0, %c0_i32_1 : i32, i32, i32, i32
  }
  func.func @transform_1(%arg0: i32) -> (i32, i32, i32) {
    %c0_i32 = arith.constant 0 : i32
    %c0_i32_0 = arith.constant 0 : i32
    %c0_i32_1 = arith.constant 0 : i32
    return %arg0, %c0_i32, %c0_i32_0 : i32, i32, i32
  }
  func.func @transform_2(%arg0: i32) -> (i32, i32) {
    %c0_i32 = arith.constant 0 : i32
    %c0_i32_0 = arith.constant 0 : i32
    %c0_i32_1 = arith.constant 0 : i32
    return %c0_i32, %c0_i32_0 : i32, i32
  }
  func.func @transform_3(%arg0: i32) -> (i32, i32) {
    %c0_i32 = arith.constant 0 : i32
    %c0_i32_0 = arith.constant 0 : i32
    %c0_i32_1 = arith.constant 0 : i32
    return %c0_i32, %c0_i32_0 : i32, i32
  }
  func.func @transform_4(%arg0: i32) -> (i32, i32, i32, i32) {
    %c0_i32 = arith.constant 0 : i32
    %c0_i32_0 = arith.constant 0 : i32
    %c0_i32_1 = arith.constant 0 : i32
    %c0_i32_2 = arith.constant 0 : i32
    return %arg0, %c0_i32, %c0_i32_0, %c0_i32_1 : i32, i32, i32, i32
  }
  func.func @transform_5(%arg0: i32) -> (i32, i32, i32) {
    %c0_i32 = arith.constant 0 : i32
    %c0_i32_0 = arith.constant 0 : i32
    %c0_i32_1 = arith.constant 0 : i32
    return %arg0, %c0_i32, %c0_i32_0 : i32, i32, i32
  }
}

</mosaic_0001>

<bundles_post_ra>
// kernel: rnn_forward_names.1
= control target key start
LH: loop header
LB: loop body
LE: loop exit
PB: predicated region body
PF: predicated region fallthrough
CT: control target
= control target key end

     0   :  { %s5089_s0 = inlined_call_operand.vmem [shape: s32[2,16,8,1], index: 0, kind: input, shape index: {}]   ;;  %s5090_s1 = inlined_call_operand.vmem [shape: s32[2,8,1], index: 1, kind: input, shape index: {}]   ;;  %s5091_s2 = inlined_call_operand.hbm [shape: f32[56,256], index: 2, kind: input, shape index: {}]   ;;  %s5092_s3 = inlined_call_operand.vmem [shape: f32[128,256], index: 3, kind: input, shape index: {}]   ;;  %s5093_s4 = inlined_call_operand.hbm [shape: f32[2,16,8,128], index: 4, kind: output, shape index: {0}]   ;;  %s5094_s5 = inlined_call_operand.hbm [shape: f32[2,8,128], index: 5, kind: output, shape index: {1}]  }
   0x1   :  { %5103 = sst [smem:[#allocation31_spill]] %s5089_s0 }
   0x2   :  { %11 = vsyncpa [#allocation3], 0 }
   0x3   :  { %12 = vsyncpa [#allocation4], 0 }
   0x4   :  { %14 = vsyncpa [#allocation4 + $0x1], 0 }
   0x5   :  { %15 = vsyncpa [#allocation7], 0 }
   0x6   :  { %17 = vsyncpa [#allocation7 + $0x1], 0  ;;  %s3317_s18 = smov 0   ;;  %s3319_s19 = smov 0  }
   0x7   :  { %s3321_s20 = smov 0   ;;  %s3323_s21 = smov 0  }
   0x8 LB: > { %s3338_s22 = sadd.s32 4294967295, %s3278_s21   ;;  %s2921_s23 = sadd.s32 4294967294, %s3278_s21   ;;  %s3278_s21 = sphi %s3323_s21, %s5158_s21   ;;  %s3274_s20 = sphi %s3321_s20, %s5157_s20   ;;  %s3270_s19 = sphi %s3319_s19, %s5156_s19   ;;  %s3266_s18 = sphi %s3317_s18, %s5155_s18  }
   0x9   : > { %s3342_s24 = sadd.s32 1, %s3278_s21   ;;  %s124_s25 = sadd.s32 1, %s3274_s20 }
   0xa   : > { %s121_s26 = ssub.s32 %s3278_s21, %s3342_s24  ;;  %p134_p0 = scmp.ne.s32.totalorder %s3274_s20, %s3270_s19 }
   0xb   : > { %p122_p1 = scmp.eq.s32.totalorder %s121_s26, 0  ;;  %p135_p2 = scmp.eq.s32.totalorder %s3338_s22, 1 }
   0xc   : > { %p140_p3 = scmp.ne.s32.totalorder %s3270_s19, %s3266_s18  ;;  %p141_p4 = scmp.eq.s32.totalorder %s2921_s23, 1 }
   0xd   : > { %s3353_s27 = scalar_select %p122_p1, %s3274_s20, %s124_s25  }
   0xe   : > { %p3355_p5 = por %p135_p2, %p134_p0  ;;  %p3359_p6 = por %p141_p4, %p140_p3 }
   0xf   : > { %p2922_p7 = scmp.ge.s32.totalorder %s3278_s21, 1  ;;  %p174_p8 = scmp.lt.s32.totalorder %s3278_s21, 3 }
  0x10   : > { %p3040_p9 = scmp.eq.s32.totalorder %s3338_s22, 0  ;;  %s185_s7 = sshll.u32 %s5091_s2, 4  ;;  %s186_s7 = int_to_ptr.hbm [resolvable:$true] %s185_s7 }
  0x11   : > { %p175_p10 = pnand %p2922_p7, %p174_p8  ;;  %s3280_s8 = smov [#allocation2]  }
  0x12   : > { %s187_s9 = sshll.u32 %s3280_s8, 4  ;;  %s3281_s10 = smov 256   ;;  %s188_s9 = int_to_ptr.vmem [resolvable:$true] %s187_s9 }
  0x13   : > { %p3029_p11 = pneg %p175_p10  ;;  %s3282_s11 = smov 16  }
  0x14   : > { %221 = sbr.rel (%p175_p10) target bundleno = 2679 (0xa77), region = 36 }
  0x15   : > { %p3030_p12 = pnand %p3040_p9, %p3029_p11 }
  0x17   : > { %3032 = dma.hbm_to_vmem [thread:$0]  (!%p3030_p12), %s186_s7, 1792, %s188_s9, [#allocation3], %s3281_s10, %s3281_s10, %s3282_s11  }
  0x19   : > { %3253 = dma.done.wait (%p3040_p9), [#allocation3], 1792  }
  0x1a   : > { %3255 = vsyncadd (%p3040_p9), [#allocation3], 4294965504  ;;  %p259_p13 = scmp.lt.s32.totalorder %s3338_s22, 1  ;;  %v5095_v0 = vmov 0   ;;  %s5106_s0 = sld [smem:[#allocation31_spill]]  ;;  %v3405_v8 = vld [vmem:[%s5092_s3 + $0xf0] sm:$0xff] }
  0x1b   : > { %3082 = vset.pattern.permute.xlu0 %v5095_v0  ;;  %3083 = vset.pattern.permute.xlu1 %v5095_v0  ;;  %v3410_v9 = vld [vmem:[%s5092_s3 + $0xf8] sm:$0xff]  ;;  %v3415_v10 = vld [vmem:[%s5092_s3 + $0xe0] sm:$0xff]  ;;  %v3422_v11 = vld [vmem:[%s5092_s3 + $0xe8] sm:$0xff]  ;;  %v5097_v63 = vmov 0.0   ;;  %vm364_vm8 = vcmask 457728   ;;  %s3937_s11 = sand.u32 1, %s3270_s19  }
  0x1c   : > { %s260_s12 = scalar_select %p259_p13, %s3338_s22, 1  ;;  %3084 = vset.pattern.permute.xlu2 %v5095_v0  ;;  %324 = vmatpush.msra.mxu0 %v3405_v8  ;;  %v3427_v12 = vld [vmem:[%s5092_s3 + $0xd0] sm:$0xff]  ;;  %v3432_v13 = vld [vmem:[%s5092_s3 + $0xd8] sm:$0xff]  ;;  %v3441_v16 = vld [vmem:[%s5092_s3 + $0xc0] sm:$0xff] }
  0x1d   : > { %344 = vmatpush.msra.mxu1 %v3410_v9  ;;  %v3448_v17 = vld [vmem:[%s5092_s3 + $0xc8] sm:$0xff]  ;;  %v3450_v18 = vld [vmem:[#allocation2 + $0x60] sm:$0xff]  ;;  %v3457_v20 = vld [vmem:[%s5092_s3 + $0xb0] sm:$0xff]  ;;  %s2927_s6 = sshll.u32 %s3937_s11, 7  ;;  %s2928_s23 = sshll.u32 %s3937_s11, 3 }
  0x1e   : > { %s3019_s13 = sshll.u32 %s260_s12, 7  ;;  %s2931_s14 = sshll.u32 %s260_s12, 3  ;;  %325 = vmatpush.msra.mxu0 %v3415_v10  ;;  %v3452_v19 = vld [vmem:[#allocation2 + $0x68] sm:$0xff]  ;;  %377 = vmatpush.msra.mxu2 %v3450_v18  ;;  %v3461_v21 = vld [vmem:[#allocation2 + $0x50] sm:$0xff]  ;;  %v3467_v22 = vld [vmem:[%s5092_s3 + $0xb8] sm:$0xff] }
  0x1f   : > { %s3388_s26 = scalar_lea.vmem %s5090_s1, %s2931_s14  ;;  %345 = vmatpush.msra.mxu1 %v3422_v11  ;;  %397 = vmatpush.msra.mxu3 %v3452_v19  ;;  %v3469_v23 = vld [vmem:[#allocation2 + $0x58] sm:$0xff]  ;;  %v3475_v24 = vld [vmem:[%s5092_s3 + $0xa0] sm:$0xff]  ;;  %v3483_v26 = vld [vmem:[%s5092_s3 + $0xa8] sm:$0xff]  ;;  %s3992_s16 = scalar_lea.vmem [#allocation5], %s2927_s6 }
  0x20   : > { %s3383_s17 = scalar_lea.vmem %s5106_s0, %s3019_s13  ;;  %v3392_v2 = vld [vmem:[%s3388_s26] sm:$0xff]  ;;  %326 = vmatpush.msra.mxu0 %v3427_v12  ;;  %378 = vmatpush.msra.mxu2 %v3461_v21  ;;  %v3486_v27 = vld [vmem:[#allocation2 + $0x48] sm:$0xff]  ;;  %v3492_v28 = vld [vmem:[%s5092_s3 + $0x90] sm:$0xff]  ;;  %s2785_s14 = sshll.u32 %s3992_s16, 4  ;;  %s2786_s14 = int_to_ptr.vmem [resolvable:$true] %s2785_s14 }
  0x21   : > { %v271_v1 = vld [vmem:[%s3383_s17] sm:$0xff]  ;;  %vm419_vm0 = vcmp.gt.s32.totalorder %v3392_v2, 0  ;;  %v2947_v4 = vld [vmem:[%s3383_s17 + $0x18] sm:$0xff]  ;;  %vm1043_vm1 = vcmp.gt.s32.totalorder %v3392_v2, 4  ;;  %vm1199_vm2 = vcmp.gt.s32.totalorder %v3392_v2, 5  ;;  %v2935_v7 = vld [vmem:[%s3383_s17 + $0x8] sm:$0xff]  ;;  %346 = vmatpush.msra.mxu1 %v3432_v13  ;;  %398 = vmatpush.msra.mxu3 %v3469_v23 }
  0x22   : > { %273 = vperm.xlu0 %3082, %v271_v1   ;;  %v420_v3 = vsel %vm419_vm0, 1, %v5095_v0  ;;  %v1044_v5 = vsel %vm1043_vm1, 1, %v5095_v0  ;;  %v1200_v6 = vsel %vm1199_vm2, 1, %v5095_v0  ;;  %429 = vperm.xlu1 %3083, %v2935_v7   ;;  %v2972_v14 = vld [vmem:[%s3383_s17 + $0x40] sm:$0xff]  ;;  %v2942_v15 = vld [vmem:[%s3383_s17 + $0x10] sm:$0xff]  ;;  %v3501_v30 = vld [vmem:[%s5092_s3 + $0x98] sm:$0xff] }
  0x23   : > { %327 = vmatpush.msra.mxu0 %v3441_v16  ;;  %347 = vmatpush.msra.mxu1 %v3448_v17  ;;  %v3477_v25 = vld [vmem:[#allocation2 + $0x40] sm:$0xff]  ;;  %v3495_v29 = vld [vmem:[#allocation2 + $0x30] sm:$0xff]  ;;  %v3504_v31 = vld [vmem:[#allocation2 + $0x38] sm:$0xff]  ;;  %vm1979_vm3 = vcmp.gt.s32.totalorder %v3392_v2, 10  ;;  %vm2135_vm4 = vcmp.gt.s32.totalorder %v3392_v2, 11  ;;  %vm1355_vm5 = vcmp.gt.s32.totalorder %v3392_v2, 6 }
  0x24   : > { %379 = vmatpush.msra.mxu2 %v3477_v25  ;;  %v2977_v32 = vld [vmem:[%s3383_s17 + $0x48] sm:$0xff]  ;;  %v3511_v33 = vld [vmem:[%s5092_s3 + $0x80] sm:$0xff]  ;;  %399 = vmatpush.msra.mxu3 %v3486_v27  ;;  %v3526_v36 = vld [vmem:[%s5092_s3 + $0x70] sm:$0xff]  ;;  %v1980_v46 = vsel %vm1979_vm3, 1, %v5095_v0  ;;  %v2136_v50 = vsel %vm2135_vm4, 1, %v5095_v0  ;;  %v1356_v51 = vsel %vm1355_vm5, 1, %v5095_v0 }
  0x25   : > { %328 = vmatpush.msra.mxu0 %v3457_v20  ;;  %348 = vmatpush.msra.mxu1 %v3467_v22  ;;  %v2952_v34 = vld [vmem:[%s3383_s17 + $0x20] sm:$0xff]  ;;  %v3519_v35 = vld [vmem:[%s5092_s3 + $0x88] sm:$0xff]  ;;  %v3535_v38 = vld [vmem:[%s5092_s3 + $0x78] sm:$0xff]  ;;  %vm1511_vm6 = vcmp.gt.s32.totalorder %v3392_v2, 7  ;;  %vm2291_vm7 = vcmp.gt.s32.totalorder %v3392_v2, 12  ;;  %vm575_vm10 = vcmp.gt.s32.totalorder %v3392_v2, 1 }
  0x26   : > { %380 = vmatpush.msra.mxu2 %v3495_v29  ;;  %400 = vmatpush.msra.mxu3 %v3504_v31  ;;  %v3529_v37 = vld [vmem:[#allocation2 + $0x20] sm:$0xff]  ;;  %v3537_v39 = vld [vmem:[#allocation2 + $0x28] sm:$0xff]  ;;  %v3545_v41 = vld [vmem:[#allocation2 + $0x10] sm:$0xff]  ;;  %v1512_v55 = vsel %vm1511_vm6, 1, %v5095_v0  ;;  %vm731_vm12 = vcmp.gt.s32.totalorder %v3392_v2, 2  ;;  %vm887_vm13 = vcmp.gt.s32.totalorder %v3392_v2, 3 }
  0x27   : > { %329 = vmatpush.msra.mxu0 %v3475_v24  ;;  %349 = vmatpush.msra.mxu1 %v3483_v26  ;;  %v3543_v40 = vld [vmem:[%s5092_s3 + $0x60] sm:$0xff]  ;;  %v3552_v42 = vld [vmem:[%s5092_s3 + $0x68] sm:$0xff]  ;;  %v3555_v43 = vld [vmem:[#allocation2 + $0x18] sm:$0xff]  ;;  %vm1667_vm14 = vcmp.gt.s32.totalorder %v3392_v2, 8  ;;  %vm1823_vm15 = vcmp.gt.s32.totalorder %v3392_v2, 9  ;;  %vm2447_vm2 = vcmp.gt.s32.totalorder %v3392_v2, 13 }
  0x28   : > { %381 = vmatpush.msra.mxu2 %v3529_v37  ;;  %v3561_v44 = vld [vmem:[%s5092_s3 + $0x50] sm:$0xff]  ;;  %401 = vmatpush.msra.mxu3 %v3537_v39  ;;  %v3568_v45 = vld [vmem:[%s5092_s3 + $0x58] sm:$0xff]  ;;  %v3576_v47 = vld [vmem:[%s5092_s3 + $0x40] sm:$0xff]  ;;  %s3016_s25 = sshll.u32 %s3338_s22, 3  ;;  %s2768_s30 = scalar_lea.sflag [#allocation4], %s3937_s11 }
  0x29   : > { %330 = vmatpush.msra.mxu0 %v3492_v28  ;;  %350 = vmatpush.msra.mxu1 %v3501_v30  ;;  %v2957_v48 = vld [vmem:[%s3383_s17 + $0x28] sm:$0xff]  ;;  %v3597_v52 = vld [vmem:[%s5092_s3 + $0x30] sm:$0xff]  ;;  %v3602_v53 = vld [vmem:[%s5092_s3 + $0x38] sm:$0xff]  ;;  %s3200_s10 = scalar_lea.hbm %s5093_s4, 256 }
  0x2a   : > { %422 = vperm.xlu0 %3082, %v420_v3   ;;  %585 = vperm.xlu1 %3083, %v2942_v15   ;;  %v3584_v49 = vld [vmem:[%s5092_s3 + $0x48] sm:$0xff]  ;;  %v3604_v54 = vld [vmem:[#allocation2] sm:$0xff]  ;;  %v3626_v59 = vld [vmem:[%s5092_s3 + $0x10] sm:$0xff] }
  0x2b   : > { %331 = vmatpush.msra.mxu0 %v3511_v33  ;;  %351 = vmatpush.msra.mxu1 %v3519_v35  ;;  %v3609_v56 = vld [vmem:[#allocation2 + $0x8] sm:$0xff]  ;;  %v3616_v57 = vld [vmem:[%s5092_s3 + $0x20] sm:$0xff]  ;;  %v3632_v60 = vld [vmem:[%s5092_s3 + $0x18] sm:$0xff] }
  0x2c   : > { %382 = vmatpush.msra.mxu2 %v3545_v41  ;;  %402 = vmatpush.msra.mxu3 %v3555_v43  ;;  %v3621_v58 = vld [vmem:[%s5092_s3 + $0x28] sm:$0xff]  ;;  %v3638_v61 = vld [vmem:[%s5092_s3] sm:$0xff]  ;;  %v2982_v1 = vld [vmem:[%s3383_s17 + $0x50] sm:$0xff] }
  0x2d   : > { %332 = vmatpush.msra.mxu0 %v3526_v36  ;;  %352 = vmatpush.msra.mxu1 %v3535_v38  ;;  %v3645_v62 = vld [vmem:[%s5092_s3 + $0x8] sm:$0xff]  ;;  %v2987_v3 = vld [vmem:[%s3383_s17 + $0x58] sm:$0xff] }
  0x2e   : > { %383 = vmatpush.msra.mxu2 %v3604_v54  ;;  %403 = vmatpush.msra.mxu3 %v3609_v56 }
  0x2f   : > { %333 = vmatpush.msra.mxu0 %v3543_v40  ;;  %353 = vmatpush.msra.mxu1 %v3552_v42 }
  0x30   : > { %480 = vmatpush.msrb.mxu2 %v3405_v8  ;;  %500 = vmatpush.msrb.mxu3 %v3410_v9 }
  0x31   : > { %334 = vmatpush.msra.mxu0 %v3561_v44  ;;  %354 = vmatpush.msra.mxu1 %v3568_v45 }
  0x32   : > { %741 = vperm.xlu0 %3082, %v2947_v4   ;;  %897 = vperm.xlu1 %3083, %v2952_v34   ;;  %v269_v4 = vlaneseq }
  0x33   : > { %335 = vmatpush.msra.mxu0 %v3576_v47  ;;  %355 = vmatpush.msra.mxu1 %v3584_v49 }
  0x34   : > { %481 = vmatpush.msrb.mxu2 %v3415_v10  ;;  %501 = vmatpush.msrb.mxu3 %v3422_v11 }
  0x35   : > { %336 = vmatpush.msra.mxu0 %v3597_v52  ;;  %356 = vmatpush.msra.mxu1 %v3602_v53 }
  0x36   : > { %482 = vmatpush.msrb.mxu2 %v3427_v12  ;;  %502 = vmatpush.msrb.mxu3 %v3432_v13 }
  0x37   : > { %337 = vmatpush.msra.mxu0 %v3616_v57  ;;  %357 = vmatpush.msra.mxu1 %v3621_v58 }
  0x38   : > { %483 = vmatpush.msrb.mxu2 %v3441_v16  ;;  %503 = vmatpush.msrb.mxu3 %v3448_v17 }
  0x39   : > { %338 = vmatpush.msra.mxu0 %v3626_v59  ;;  %358 = vmatpush.msra.mxu1 %v3632_v60 }
  0x3a   : > { %1046 = vperm.xlu0 %3082, %v1044_v5   ;;  %1053 = vperm.xlu1 %3083, %v2957_v48   ;;  %v2292_v5 = vsel %vm2291_vm7, 1, %v5095_v0  ;;  %v888_v48 = vsel %vm887_vm13, 1, %v5095_v0 }
  0x3b   : > { %339 = vmatpush.msra.mxu0 %v3638_v61  ;;  %359 = vmatpush.msra.mxu1 %v3645_v62 }
  0x3c   : > { %340 = vmatmul.f32.vlgmr.msra.gmra.mxu0 %v5097_v63  ;;  %360 = vmatmul.f32.vlgmr.msra.gmra.mxu1 %v5097_v63 }
  0x3d   : > { %532 = vmatpush.msrb.mxu0 %v3450_v18  ;;  %552 = vmatpush.msrb.mxu1 %v3452_v19 }
  0x3e   : > { %484 = vmatpush.msrb.mxu2 %v3457_v20  ;;  %504 = vmatpush.msrb.mxu3 %v3467_v22 }
  0x3f   : > { %533 = vmatpush.msrb.mxu0 %v3461_v21  ;;  %553 = vmatpush.msrb.mxu1 %v3469_v23 }
  0x40   : > { %485 = vmatpush.msrb.mxu2 %v3475_v24  ;;  %505 = vmatpush.msrb.mxu3 %v3483_v26 }
  0x41   : > { %534 = vmatpush.msrb.mxu0 %v3477_v25  ;;  %554 = vmatpush.msrb.mxu1 %v3486_v27 }
  0x42   : > { %1202 = vperm.xlu0 %3082, %v1200_v6   ;;  %1358 = vperm.xlu1 %3083, %v1356_v51   ;;  %v3693_v6 = vand.u32 127, %v269_v4  ;;  %v2967_v51 = vld [vmem:[%s3383_s17 + $0x38] sm:$0xff]  ;;  %v2997_v4 = vld [vmem:[%s3383_s17 + $0x68] sm:$0xff] }
  0x43   : > { %486 = vmatpush.msrb.mxu2 %v3492_v28  ;;  %535 = vmatpush.msrb.mxu0 %v3495_v29 }
  0x44   : > { %506 = vmatpush.msrb.mxu3 %v3501_v30  ;;  %555 = vmatpush.msrb.mxu1 %v3504_v31 }
  0x45   : > { %487 = vmatpush.msrb.mxu2 %v3511_v33  ;;  %536 = vmatpush.msrb.mxu0 %v3529_v37 }
  0x46   : > { %507 = vmatpush.msrb.mxu3 %v3519_v35  ;;  %556 = vmatpush.msrb.mxu1 %v3537_v39 }
  0x47   : > { %488 = vmatpush.msrb.mxu2 %v3526_v36  ;;  %537 = vmatpush.msrb.mxu0 %v3545_v41 }
  0x48   : > { %508 = vmatpush.msrb.mxu3 %v3535_v38  ;;  %557 = vmatpush.msrb.mxu1 %v3555_v43 }
  0x49   : > { %489 = vmatpush.msrb.mxu2 %v3543_v40  ;;  %538 = vmatpush.msrb.mxu0 %v3604_v54 }
  0x4a   : > { %1521 = vperm.xlu0 %3082, %v2972_v14   ;;  %1514 = vperm.xlu1 %3083, %v1512_v55   ;;  %v1668_v55 = vsel %vm1667_vm14, 1, %v5095_v0 }
  0x4b   : > { %509 = vmatpush.msrb.mxu3 %v3552_v42  ;;  %490 = vmatpush.msrb.mxu2 %v3561_v44 }
  0x4c   : > { %558 = vmatpush.msrb.mxu1 %v3609_v56  ;;  %636 = vmatpush.msra.mxu0 %v3405_v8 }
  0x4d   : > { %510 = vmatpush.msrb.mxu3 %v3568_v45  ;;  %491 = vmatpush.msrb.mxu2 %v3576_v47 }
  0x4e   : > { %656 = vmatpush.msra.mxu1 %v3410_v9  ;;  %637 = vmatpush.msra.mxu0 %v3415_v10 }
  0x4f   : > { %511 = vmatpush.msrb.mxu3 %v3584_v49  ;;  %492 = vmatpush.msrb.mxu2 %v3597_v52 }
  0x50   : > { %657 = vmatpush.msra.mxu1 %v3422_v11  ;;  %638 = vmatpush.msra.mxu0 %v3427_v12 }
  0x51   : > { %512 = vmatpush.msrb.mxu3 %v3602_v53  ;;  %493 = vmatpush.msrb.mxu2 %v3616_v57 }
  0x52   : > { %1677 = vperm.xlu0 %3082, %v2977_v32   ;;  %1833 = vperm.xlu1 %3083, %v2982_v1   ;;  %v576_v32 = vsel %vm575_vm10, 1, %v5095_v0  ;;  %v1824_v1 = vsel %vm1823_vm15, 1, %v5095_v0 }
  0x53   : > { %513 = vmatpush.msrb.mxu3 %v3621_v58  ;;  %658 = vmatpush.msra.mxu1 %v3432_v13 }
  0x54   : > { %494 = vmatpush.msrb.mxu2 %v3626_v59  ;;  %639 = vmatpush.msra.mxu0 %v3441_v16 }
  0x55   : > { %514 = vmatpush.msrb.mxu3 %v3632_v60  ;;  %659 = vmatpush.msra.mxu1 %v3448_v17 }
  0x56   : > { %495 = vmatpush.msrb.mxu2 %v3638_v61  ;;  %640 = vmatpush.msra.mxu0 %v3457_v20 }
  0x57   : > { %515 = vmatpush.msrb.mxu3 %v3645_v62  ;;  %660 = vmatpush.msra.mxu1 %v3467_v22 }
  0x58   : > { %641 = vmatpush.msra.mxu0 %v3475_v24  ;;  %578 = vperm.xlu2 %3084, %v576_v32  }
  0x59   : > { %661 = vmatpush.msra.mxu1 %v3483_v26 }
  0x5a   : > { %1982 = vperm.xlu0 %3082, %v1980_v46   ;;  %1989 = vperm.xlu1 %3083, %v2987_v3   ;;  %v732_v46 = vsel %vm731_vm12, 1, %v5095_v0  ;;  %v2992_v3 = vld [vmem:[%s3383_s17 + $0x60] sm:$0xff] }
  0x5b   : > { %642 = vmatpush.msra.mxu0 %v3492_v28  ;;  %662 = vmatpush.msra.mxu1 %v3501_v30 }
  0x5d   : > { %643 = vmatpush.msra.mxu0 %v3511_v33  ;;  %663 = vmatpush.msra.mxu1 %v3519_v35 }
  0x5f   : > { %644 = vmatpush.msra.mxu0 %v3526_v36  ;;  %664 = vmatpush.msra.mxu1 %v3535_v38 }
  0x60   : > { %734 = vperm.xlu2 %3084, %v732_v46  }
  0x61   : > { %645 = vmatpush.msra.mxu0 %v3543_v40  ;;  %665 = vmatpush.msra.mxu1 %v3552_v42 }
  0x62   : > { %2138 = vperm.xlu0 %3082, %v2136_v50   ;;  %2294 = vperm.xlu1 %3083, %v2292_v5   ;;  %v2962_v50 = vld [vmem:[%s3383_s17 + $0x30] sm:$0xff] }
  0x63   : > { %646 = vmatpush.msra.mxu0 %v3561_v44  ;;  %666 = vmatpush.msra.mxu1 %v3568_v45 }
  0x65   : > { %647 = vmatpush.msra.mxu0 %v3576_v47  ;;  %667 = vmatpush.msra.mxu1 %v3584_v49 }
  0x67   : > { %648 = vmatpush.msra.mxu0 %v3597_v52  ;;  %668 = vmatpush.msra.mxu1 %v3602_v53 }
  0x68   : > { %890 = vperm.xlu2 %3084, %v888_v48  }
  0x69   : > { %649 = vmatpush.msra.mxu0 %v3616_v57  ;;  %669 = vmatpush.msra.mxu1 %v3621_v58 }
  0x6b   : > { %650 = vmatpush.msra.mxu0 %v3626_v59  ;;  %670 = vmatpush.msra.mxu1 %v3632_v60 }
  0x6d   : > { %651 = vmatpush.msra.mxu0 %v3638_v61  ;;  %671 = vmatpush.msra.mxu1 %v3645_v62 }
  0x70   : > { %1209 = vperm.xlu2 %3084, %v2962_v50   ;;  %v3002_v50 = vld [vmem:[%s3383_s17 + $0x70] sm:$0xff] }
  0x78   : > { %1365 = vperm.xlu2 %3084, %v2967_v51  }
  0x80   : > { %1670 = vperm.xlu2 %3084, %v1668_v55  }
  0x88   : > { %1826 = vperm.xlu2 %3084, %v1824_v1   ;;  %v3954_v1 = vld [vmem:[%s5092_s3 + $0xb0] sm:$0xff] }
  0x90   : > { %2145 = vperm.xlu2 %3084, %v2992_v3   ;;  %v3959_v3 = vld [vmem:[%s5092_s3 + $0xb8] sm:$0xff] }
  0x94   : > { %v274_v7 = vpop.permute.xlu0 %273  ;;  %v430_v15 = vpop.permute.xlu1 %429 }
  0x95   : > { %vm275_vm9 = vcmp.eq.s32.totalorder %v3693_v6, %v274_v7  ;;  %vm431_vm11 = vcmp.eq.s32.totalorder %v3693_v6, %v430_v15 }
  0x96   : > { %v2932_v14 = vsel %vm275_vm9, 1.0, %v5097_v63  ;;  %v2936_v34 = vsel %vm431_vm11, 1.0, %v5097_v63 }
  0x97   : > { %2933 = vmatmul.msk.f32.vlgmr.msra.gmra.mxu2 %vm364_vm8, %v2932_v14  ;;  %2934 = vmatmul.msk.f32.vlgmr.msra.gmra.mxu3 %vm364_vm8, %v2932_v14 }
  0x98   : > { %688 = vmatpush.msra.mxu2 %v3450_v18  ;;  %708 = vmatpush.msra.mxu3 %v3452_v19 }
  0x99   : > { %2939 = vmatmul.msk.f32.vlgmr.msrb.gmra.mxu0 %vm364_vm8, %v2936_v34  ;;  %2940 = vmatmul.msk.f32.vlgmr.msrb.gmra.mxu1 %vm364_vm8, %v2936_v34 }
  0x9a   : > { %689 = vmatpush.msra.mxu2 %v3461_v21  ;;  %709 = vmatpush.msra.mxu3 %v3469_v23 }
  0x9b   : > { %844 = vmatpush.msrb.mxu0 %v3450_v18  ;;  %864 = vmatpush.msrb.mxu1 %v3452_v19 }
  0x9c   : > { %690 = vmatpush.msra.mxu2 %v3477_v25  ;;  %710 = vmatpush.msra.mxu3 %v3486_v27  ;;  %v423_v14 = vpop.permute.xlu0 %422  ;;  %v586_v51 = vpop.permute.xlu1 %585 }
  0x9d   : > { %845 = vmatpush.msrb.mxu0 %v3461_v21  ;;  %865 = vmatpush.msrb.mxu1 %v3469_v23  ;;  %vm424_vm0 = vcmp.eq.s32.totalorder %v423_v14, 1  ;;  %vm587_vm1 = vcmp.eq.s32.totalorder %v3693_v6, %v586_v51 }
  0x9e   : > { %691 = vmatpush.msra.mxu2 %v3495_v29  ;;  %711 = vmatpush.msra.mxu3 %v3504_v31  ;;  %v2943_v55 = vsel %vm587_vm1, 1.0, %v5097_v63 }
  0x9f   : > { %846 = vmatpush.msrb.mxu0 %v3477_v25  ;;  %866 = vmatpush.msrb.mxu1 %v3486_v27 }
  0xa0   : > { %692 = vmatpush.msra.mxu2 %v3529_v37  ;;  %712 = vmatpush.msra.mxu3 %v3537_v39 }
  0xa1   : > { %847 = vmatpush.msrb.mxu0 %v3495_v29  ;;  %867 = vmatpush.msrb.mxu1 %v3504_v31 }
  0xa2   : > { %693 = vmatpush.msra.mxu2 %v3545_v41  ;;  %713 = vmatpush.msra.mxu3 %v3555_v43 }
  0xa3   : > { %848 = vmatpush.msrb.mxu0 %v3529_v37  ;;  %868 = vmatpush.msrb.mxu1 %v3537_v39 }
  0xa4   : > { %694 = vmatpush.msra.mxu2 %v3604_v54  ;;  %714 = vmatpush.msra.mxu3 %v3609_v56  ;;  %v742_v2 = vpop.permute.xlu0 %741 }
  0xa5   : > { %849 = vmatpush.msrb.mxu0 %v3545_v41  ;;  %869 = vmatpush.msrb.mxu1 %v3555_v43  ;;  %vm743_vm4 = vcmp.eq.s32.totalorder %v3693_v6, %v742_v2 }
  0xa6   : > { %2301 = vperm.xlu2 %3084, %v2997_v4  }
  0xa7   : > { %850 = vmatpush.msrb.mxu0 %v3604_v54  ;;  %870 = vmatpush.msrb.mxu1 %v3609_v56 }
  0xae   : > { %2457 = vperm.xlu2 %3084, %v3002_v50  }
  0xb9   : > { %v341_v5 = vpop.f32.mrf.mxu0  ;;  %v361_v7 = vpop.f32.mrf.mxu1 }
 0x11a   : > { %v385_v15 = vpop.f32.mrf.mxu2  ;;  %v405_v32 = vpop.f32.mrf.mxu3 }
 0x11b   : > { %v386_v34 = vadd.f32 %v385_v15, %v341_v5  ;;  %v3785_v46 = vadd.f32 %v405_v32, %v361_v7  ;;  %v3967_v5 = vld [vmem:[%s5092_s3 + $0xa0] sm:$0xff]  ;;  %v3972_v7 = vld [vmem:[%s5092_s3 + $0xa8] sm:$0xff] }
 0x11d   : > { %v3787_v48 = vsel %vm424_vm0, %v386_v34, 0.0  ;;  %408 = vmax.xlane.f32.xlu0 %v3785_v46  ;;  %2937 = vmatmul.msk.f32.vlgmr.msrb.gmra.mxu2 %vm424_vm0, %v386_v34 }
 0x11e   : > { %2938 = vmatmul.msk.f32.vlgmr.msrb.gmra.mxu3 %vm424_vm0, %v386_v34  ;;  %792 = vmatpush.msrb.mxu2 %v3405_v8  ;;  %v2448_v8 = vsel %vm2447_vm2, 1, %v5095_v0  ;;  %v3981_v34 = vld [vmem:[%s5092_s3 + $0x90] sm:$0xff]  ;;  %v4165_v0 = vld [vmem:[#allocation2 + $0x48] sm:$0xff] }
 0x11f   : > { %812 = vmatpush.msrb.mxu3 %v3410_v9  ;;  %2450 = vperm.xlu2 %3084, %v2448_v8   ;;  %v3843_v9 = vpop.permute.xlu0 %1046 }
 0x120   : > { %793 = vmatpush.msrb.mxu2 %v3415_v10  ;;  %5107 = vst [vmem:[#allocation11_spill] sm:$0xff] %v3843_v9 }
 0x121   : > { %813 = vmatpush.msrb.mxu3 %v3422_v11 }
 0x122   : > { %794 = vmatpush.msrb.mxu2 %v3427_v12 }
 0x123   : > { %814 = vmatpush.msrb.mxu3 %v3432_v13 }
 0x124   : > { %795 = vmatpush.msrb.mxu2 %v3441_v16 }
 0x125   : > { %2944 = vmatmul.msk.f32.vlgmr.msra.gmra.mxu2 %vm364_vm8, %v2943_v55  ;;  %815 = vmatpush.msrb.mxu3 %v3448_v17 }
 0x126   : > { %2945 = vmatmul.msk.f32.vlgmr.msra.gmra.mxu3 %vm364_vm8, %v2943_v55  ;;  %796 = vmatpush.msrb.mxu2 %v3457_v20 }
 0x127   : > { %816 = vmatpush.msrb.mxu3 %v3467_v22  ;;  %v3845_v10 = vpop.permute.xlu0 %1202  ;;  %v579_v22 = vpop.permute.xlu2 %578 }
 0x128   : > { %797 = vmatpush.msrb.mxu2 %v3475_v24  ;;  %5108 = vst [vmem:[#allocation12_spill] sm:$0xff] %v3845_v10  ;;  %vm580_vm3 = vcmp.eq.s32.totalorder %v579_v22, 1  ;;  %v4028_v22 = vld [vmem:[%s5092_s3 + $0x80] sm:$0xff] }
 0x129   : > { %817 = vmatpush.msrb.mxu3 %v3483_v26 }
 0x12a   : > { %798 = vmatpush.msrb.mxu2 %v3492_v28 }
 0x12b   : > { %818 = vmatpush.msrb.mxu3 %v3501_v30 }
 0x12c   : > { %799 = vmatpush.msrb.mxu2 %v3511_v33 }
 0x12d   : > { %819 = vmatpush.msrb.mxu3 %v3519_v35  ;;  %v3874_v35 = vpop.permute.xlu1 %897 }
 0x12e   : > { %800 = vmatpush.msrb.mxu2 %v3526_v36  ;;  %vm899_vm6 = vcmp.eq.s32.totalorder %v3693_v6, %v3874_v35  ;;  %v4087_v35 = vld [vmem:[%s5092_s3 + $0x48] sm:$0xff] }
 0x12f   : > { %820 = vmatpush.msrb.mxu3 %v3535_v38  ;;  %v3847_v11 = vpop.permute.xlu0 %1521  ;;  %v3868_v30 = vpop.permute.xlu2 %734 }
 0x130   : > { %801 = vmatpush.msrb.mxu2 %v3543_v40  ;;  %5109 = vst [vmem:[#allocation13_spill] sm:$0xff] %v3847_v11  ;;  %vm736_vm5 = vcmp.eq.s32.totalorder %v3868_v30, 1  ;;  %v4082_v30 = vld [vmem:[%s5092_s3 + $0x40] sm:$0xff] }
 0x131   : > { %821 = vmatpush.msrb.mxu3 %v3552_v42 }
 0x132   : > { %802 = vmatpush.msrb.mxu2 %v3561_v44 }
 0x133   : > { %822 = vmatpush.msrb.mxu3 %v3568_v45 }
 0x134   : > { %803 = vmatpush.msrb.mxu2 %v3576_v47 }
 0x135   : > { %823 = vmatpush.msrb.mxu3 %v3584_v49 }
 0x136   : > { %804 = vmatpush.msrb.mxu2 %v3597_v52  ;;  %v3903_v52 = vld [vmem:[%s5092_s3 + $0xf0] sm:$0xff] }
 0x137   : > { %824 = vmatpush.msrb.mxu3 %v3602_v53  ;;  %v3849_v12 = vpop.permute.xlu0 %1677  ;;  %v3908_v53 = vld [vmem:[%s5092_s3 + $0xf8] sm:$0xff] }
 0x138   : > { %805 = vmatpush.msrb.mxu2 %v3616_v57  ;;  %5110 = vst [vmem:[#allocation14_spill] sm:$0xff] %v3849_v12 }
 0x139   : > { %825 = vmatpush.msrb.mxu3 %v3621_v58  ;;  %v3922_v58 = vld [vmem:[%s5092_s3 + $0xe8] sm:$0xff] }
 0x13a   : > { %806 = vmatpush.msrb.mxu2 %v3626_v59  ;;  %v3927_v59 = vld [vmem:[%s5092_s3 + $0xd0] sm:$0xff] }
 0x13b   : > { %826 = vmatpush.msrb.mxu3 %v3632_v60  ;;  %v3932_v60 = vld [vmem:[%s5092_s3 + $0xd8] sm:$0xff] }
 0x13c   : > { %807 = vmatpush.msrb.mxu2 %v3638_v61  ;;  %v3942_v61 = vld [vmem:[%s5092_s3 + $0xc0] sm:$0xff] }
 0x13d   : > { %827 = vmatpush.msrb.mxu3 %v3645_v62  ;;  %v3947_v62 = vld [vmem:[%s5092_s3 + $0xc8] sm:$0xff] }
 0x13e   : > { %1000 = vmatpush.msra.mxu2 %v3450_v18 }
 0x13f   : > { %1020 = vmatpush.msra.mxu3 %v3452_v19  ;;  %v3851_v13 = vpop.permute.xlu0 %1982 }
 0x140   : > { %1001 = vmatpush.msra.mxu2 %v3461_v21  ;;  %5111 = vst [vmem:[#allocation15_spill] sm:$0xff] %v3851_v13  ;;  %v540_v21 = vpop.f32.mrf.mxu0  ;;  %v4197_v13 = vld [vmem:[#allocation2 + $0x8] sm:$0xff] }
 0x141   : > { %1021 = vmatpush.msra.mxu3 %v3469_v23  ;;  %v560_v23 = vpop.f32.mrf.mxu1  ;;  %5126 = vst [vmem:[#allocation30_spill] sm:$0xff] %v4197_v13 }
 0x142   : > { %1002 = vmatpush.msra.mxu2 %v3477_v25 }
 0x143   : > { %1022 = vmatpush.msra.mxu3 %v3486_v27 }
 0x144   : > { %1003 = vmatpush.msra.mxu2 %v3495_v29  ;;  %v2948_v29 = vsel %vm743_vm4, 1.0, %v5097_v63 }
 0x145   : > { %1023 = vmatpush.msra.mxu3 %v3504_v31  ;;  %v3870_v31 = vpop.permute.xlu2 %890 }
 0x146   : > { %1004 = vmatpush.msra.mxu2 %v3529_v37  ;;  %v3878_v37 = vpop.permute.xlu1 %1053  ;;  %vm892_vm7 = vcmp.eq.s32.totalorder %v3870_v31, 1 }
 0x147   : > { %1024 = vmatpush.msra.mxu3 %v3537_v39  ;;  %v3853_v16 = vpop.permute.xlu0 %2138  ;;  %vm1055_vm9 = vcmp.eq.s32.totalorder %v3693_v6, %v3878_v37 }
 0x148   : > { %1005 = vmatpush.msra.mxu2 %v3545_v41  ;;  %5112 = vst [vmem:[#allocation16_spill] sm:$0xff] %v3853_v16  ;;  %v4189_v16 = vld [vmem:[#allocation2 + $0x18] sm:$0xff] }
 0x149   : > { %1025 = vmatpush.msra.mxu3 %v3555_v43 }
 0x14a   : > { %1006 = vmatpush.msra.mxu2 %v3604_v54  ;;  %v3913_v54 = vld [vmem:[%s5092_s3 + $0xe0] sm:$0xff] }
 0x14b   : > { %1026 = vmatpush.msra.mxu3 %v3609_v56 }
 0x14d   : > { %v3872_v33 = vpop.permute.xlu2 %1209 }
 0x14e   : > { %5113 = vst [vmem:[#allocation17_spill] sm:$0xff] %v3872_v33  ;;  %v3882_v39 = vpop.permute.xlu1 %1358 }
 0x14f   : > { %5116 = vst [vmem:[#allocation20_spill] sm:$0xff] %v3882_v39 }
 0x155   : > { %v3876_v36 = vpop.permute.xlu2 %1365 }
 0x156   : > { %5114 = vst [vmem:[#allocation18_spill] sm:$0xff] %v3876_v36  ;;  %v3886_v41 = vpop.permute.xlu1 %1514 }
 0x157   : > { %5118 = vst [vmem:[#allocation22_spill] sm:$0xff] %v3886_v41 }
 0x15d   : > { %v3880_v38 = vpop.permute.xlu2 %1670 }
 0x15e   : > { %5115 = vst [vmem:[#allocation19_spill] sm:$0xff] %v3880_v38  ;;  %v3890_v43 = vpop.permute.xlu1 %1833 }
 0x15f   : > { %5120 = vst [vmem:[#allocation24_spill] sm:$0xff] %v3890_v43 }
 0x165   : > { %v3884_v40 = vpop.permute.xlu2 %1826 }
 0x166   : > { %5117 = vst [vmem:[#allocation21_spill] sm:$0xff] %v3884_v40  ;;  %v3894_v45 = vpop.permute.xlu1 %1989 }
 0x167   : > { %5122 = vst [vmem:[#allocation26_spill] sm:$0xff] %v3894_v45 }
 0x16d   : > { %v3888_v42 = vpop.permute.xlu2 %2145 }
 0x16e   : > { %5119 = vst [vmem:[#allocation23_spill] sm:$0xff] %v3888_v42  ;;  %v3898_v49 = vpop.permute.xlu1 %2294  ;;  %v4191_v42 = vld [vmem:[#allocation2] sm:$0xff] }
 0x16f   : > { %5124 = vst [vmem:[#allocation28_spill] sm:$0xff] %v3898_v49  ;;  %v4181_v49 = vld [vmem:[#allocation2 + $0x28] sm:$0xff] }
 0x175   : > { %v3892_v44 = vpop.permute.xlu2 %2301 }
 0x176   : > { %5121 = vst [vmem:[#allocation25_spill] sm:$0xff] %v3892_v44  ;;  %v4187_v44 = vld [vmem:[#allocation2 + $0x10] sm:$0xff] }
 0x17d   : > { %v3896_v47 = vpop.permute.xlu2 %2457 }
 0x17e   : > { %5123 = vst [vmem:[#allocation27_spill] sm:$0xff] %v3896_v47  ;;  %v4175_v47 = vld [vmem:[#allocation2 + $0x20] sm:$0xff] }
 0x185   : > { %v3915_v56 = vpop.permute.xlu2 %2450 }
 0x186   : > { %5125 = vst [vmem:[#allocation29_spill] sm:$0xff] %v3915_v56  ;;  %v4173_v56 = vld [vmem:[#allocation2 + $0x38] sm:$0xff] }
 0x190   : > { %v409_v17 = vpop.xlane.xlu0 %408 }
 0x191   : > { %v3856_v18 = vsub.f32 %v3785_v46, %v409_v17  ;;  %v3986_v46 = vld [vmem:[%s5092_s3 + $0x98] sm:$0xff] }
 0x193   : > { %v411_v19 = vmul.f32 1.442695, %v3856_v18 }
 0x195   : > { %3085 = vpow2.f32 %v411_v19 }
 0x19b   : > { %v3086_v20 = vpop.eup %3085 }
 0x19c   : > { %413 = vadd.xlane.f32.xlu1 %v3086_v20 }
 0x1a0   : > { %v497_v24 = vpop.f32.mrf.mxu2 }
 0x1a1   : > { %v517_v25 = vpop.f32.mrf.mxu3  ;;  %v541_v26 = vadd.f32 %v540_v21, %v497_v24  ;;  %v2953_v21 = vsel %vm899_vm6, 1.0, %v5097_v63  ;;  %v4040_v24 = vld [vmem:[%s5092_s3 + $0x70] sm:$0xff] }
 0x1a2   : > { %v561_v27 = vadd.f32 %v560_v23, %v517_v25  ;;  %v4033_v23 = vld [vmem:[%s5092_s3 + $0x88] sm:$0xff]  ;;  %v4045_v25 = vld [vmem:[%s5092_s3 + $0x78] sm:$0xff]  ;;  %v4171_v63 = vld [vmem:[#allocation2 + $0x30] sm:$0xff] }
 0x1a3   : > { %v3860_v28 = vsel %vm580_vm3, %v541_v26, %v3787_v48  ;;  %v4054_v26 = vld [vmem:[%s5092_s3 + $0x60] sm:$0xff] }
 0x1a4   : > { %563 = vmax.xlane.f32.xlu2 %v561_v27  ;;  %652 = vmatmul.f32.vlgmr.msra.gmra.mxu0 %v3860_v28 }
 0x1a5   : > { %672 = vmatmul.f32.vlgmr.msra.gmra.mxu1 %v3860_v28  ;;  %948 = vmatpush.msra.mxu0 %v3903_v52 }
 0x1a6   : > { %968 = vmatpush.msra.mxu1 %v3908_v53 }
 0x1a7   : > { %949 = vmatpush.msra.mxu0 %v3913_v54 }
 0x1a8   : > { %969 = vmatpush.msra.mxu1 %v3922_v58  ;;  %v696_v51 = vpop.f32.mrf.mxu2 }
 0x1a9   : > { %950 = vmatpush.msra.mxu0 %v3927_v59  ;;  %v716_v2 = vpop.f32.mrf.mxu3 }
 0x1aa   : > { %970 = vmatpush.msra.mxu1 %v3932_v60 }
 0x1ab   : > { %951 = vmatpush.msra.mxu0 %v3942_v61 }
 0x1ac   : > { %2949 = vmatmul.msk.f32.vlgmr.msrb.gmra.mxu0 %vm364_vm8, %v2948_v29  ;;  %971 = vmatpush.msra.mxu1 %v3947_v62 }
 0x1ad   : > { %2950 = vmatmul.msk.f32.vlgmr.msrb.gmra.mxu1 %vm364_vm8, %v2948_v29  ;;  %952 = vmatpush.msra.mxu0 %v3954_v1  ;;  %v4073_v29 = vld [vmem:[%s5092_s3 + $0x58] sm:$0xff] }
 0x1ae   : > { %972 = vmatpush.msra.mxu1 %v3959_v3 }
 0x1af   : > { %953 = vmatpush.msra.mxu0 %v3967_v5 }
 0x1b0   : > { %973 = vmatpush.msra.mxu1 %v3972_v7 }
 0x1b1   : > { %954 = vmatpush.msra.mxu0 %v3981_v34 }
 0x1b2   : > { %974 = vmatpush.msra.mxu1 %v3986_v46 }
 0x1b3   : > { %955 = vmatpush.msra.mxu0 %v4028_v22 }
 0x1b4   : > { %975 = vmatpush.msra.mxu1 %v4033_v23 }
 0x1b5   : > { %956 = vmatpush.msra.mxu0 %v4040_v24 }
 0x1b6   : > { %976 = vmatpush.msra.mxu1 %v4045_v25 }
 0x1b7   : > { %957 = vmatpush.msra.mxu0 %v4054_v26 }
 0x20f   : > { %v414_v57 = vpop.xlane.xlu1 %413 }
 0x210   : > { %3087 = vlog2.f32 %v414_v57  ;;  %v4096_v57 = vld [vmem:[%s5092_s3 + $0x30] sm:$0xff] }
 0x216   : > { %v3088_v4 = vpop.eup %3087 }
 0x217   : > { %v416_v14 = vmul.f32 0.6931472, %v3088_v4  ;;  %v564_v15 = vpop.xlane.xlu2 %563  ;;  %v4101_v4 = vld [vmem:[%s5092_s3 + $0x38] sm:$0xff] }
 0x218   : > { %v3976_v32 = vsub.f32 %v561_v27, %v564_v15  ;;  %v4059_v27 = vld [vmem:[%s5092_s3 + $0x68] sm:$0xff] }
 0x219   : > { %v417_v48 = vsub.f32 %v3856_v18, %v416_v14  ;;  %977 = vmatpush.msra.mxu1 %v4059_v27  ;;  %v4110_v14 = vld [vmem:[%s5092_s3 + $0x20] sm:$0xff]  ;;  %v4115_v15 = vld [vmem:[%s5092_s3 + $0x28] sm:$0xff] }
 0x21a   : > { %v566_v50 = vmul.f32 1.442695, %v3976_v32 }
 0x21b   : > { %418 = vst [vmem:[%s3992_s16] sm:$0xff] %v417_v48  ;;  %978 = vmatpush.msra.mxu1 %v4073_v29  ;;  %v4124_v48 = vld [vmem:[%s5092_s3 + $0x10] sm:$0xff] }
 0x21c   : > { %3089 = vpow2.f32 %v566_v50  ;;  %v4129_v50 = vld [vmem:[%s5092_s3 + $0x18] sm:$0xff] }
 0x21d   : > { %979 = vmatpush.msra.mxu1 %v4087_v35 }
 0x21f   : > { %980 = vmatpush.msra.mxu1 %v4101_v4 }
 0x221   : > { %v653_v55 = vpop.f32.mrf.mxu0  ;;  %981 = vmatpush.msra.mxu1 %v4115_v15 }
 0x222   : > { %v3090_v8 = vpop.eup %3089  ;;  %v697_v17 = vadd.f32 %v696_v51, %v653_v55  ;;  %v673_v18 = vpop.f32.mrf.mxu1  ;;  %v4134_v51 = vld [vmem:[%s5092_s3] sm:$0xff]  ;;  %v4143_v55 = vld [vmem:[%s5092_s3 + $0x8] sm:$0xff] }
 0x223   : > { %v3998_v19 = vadd.f32 %v716_v2, %v673_v18  ;;  %568 = vadd.xlane.f32.xlu0 %v3090_v8  ;;  %982 = vmatpush.msra.mxu1 %v4129_v50  ;;  %v4145_v8 = vld [vmem:[#allocation2 + $0x60] sm:$0xff]  ;;  %v4147_v2 = vld [vmem:[#allocation2 + $0x68] sm:$0xff]  ;;  %v4157_v18 = vld [vmem:[#allocation2 + $0x58] sm:$0xff] }
 0x224   : > { %v4001_v20 = vsel %vm736_vm5, %v697_v17, %v3860_v28  ;;  %v4068_v28 = vld [vmem:[%s5092_s3 + $0x50] sm:$0xff] }
 0x225   : > { %719 = vmax.xlane.f32.xlu1 %v3998_v19  ;;  %808 = vmatmul.f32.vlgmr.msrb.gmra.mxu2 %v4001_v20  ;;  %v4155_v17 = vld [vmem:[#allocation2 + $0x50] sm:$0xff] }
 0x226   : > { %828 = vmatmul.f32.vlgmr.msrb.gmra.mxu3 %v4001_v20  ;;  %1104 = vmatpush.msrb.mxu2 %v3903_v52 }
 0x227   : > { %1124 = vmatpush.msrb.mxu3 %v3908_v53  ;;  %958 = vmatpush.msra.mxu0 %v4068_v28 }
 0x228   : > { %1105 = vmatpush.msrb.mxu2 %v3913_v54  ;;  %983 = vmatpush.msra.mxu1 %v4143_v55 }
 0x229   : > { %1125 = vmatpush.msrb.mxu3 %v3922_v58  ;;  %959 = vmatpush.msra.mxu0 %v4082_v30  ;;  %v852_v36 = vpop.f32.mrf.mxu0 }
 0x22a   : > { %1106 = vmatpush.msrb.mxu2 %v3927_v59  ;;  %1176 = vmatpush.msrb.mxu1 %v4147_v2  ;;  %v872_v10 = vpop.f32.mrf.mxu1 }
 0x22b   : > { %1126 = vmatpush.msrb.mxu3 %v3932_v60  ;;  %960 = vmatpush.msra.mxu0 %v4096_v57 }
 0x22c   : > { %1107 = vmatpush.msrb.mxu2 %v3942_v61  ;;  %1177 = vmatpush.msrb.mxu1 %v4157_v18 }
 0x22d   : > { %2954 = vmatmul.msk.f32.vlgmr.msra.gmra.mxu2 %vm364_vm8, %v2953_v21  ;;  %1127 = vmatpush.msrb.mxu3 %v3947_v62 }
 0x22e   : > { %2955 = vmatmul.msk.f32.vlgmr.msra.gmra.mxu3 %vm364_vm8, %v2953_v21  ;;  %1108 = vmatpush.msrb.mxu2 %v3954_v1  ;;  %v4163_v21 = vld [vmem:[#allocation2 + $0x40] sm:$0xff] }
 0x22f   : > { %1128 = vmatpush.msrb.mxu3 %v3959_v3  ;;  %961 = vmatpush.msra.mxu0 %v4110_v14 }
 0x230   : > { %1109 = vmatpush.msrb.mxu2 %v3967_v5  ;;  %1178 = vmatpush.msrb.mxu1 %v4165_v0 }
 0x231   : > { %1129 = vmatpush.msrb.mxu3 %v3972_v7  ;;  %962 = vmatpush.msra.mxu0 %v4124_v48 }
 0x232   : > { %1110 = vmatpush.msrb.mxu2 %v3981_v34  ;;  %1179 = vmatpush.msrb.mxu1 %v4173_v56 }
 0x233   : > { %1130 = vmatpush.msrb.mxu3 %v3986_v46  ;;  %963 = vmatpush.msra.mxu0 %v4134_v51 }
 0x234   : > { %1111 = vmatpush.msrb.mxu2 %v4028_v22  ;;  %1180 = vmatpush.msrb.mxu1 %v4181_v49 }
 0x235   : > { %1131 = vmatpush.msrb.mxu3 %v4033_v23  ;;  %1156 = vmatpush.msrb.mxu0 %v4145_v8 }
 0x236   : > { %1112 = vmatpush.msrb.mxu2 %v4040_v24  ;;  %1181 = vmatpush.msrb.mxu1 %v4189_v16 }
 0x237   : > { %1132 = vmatpush.msrb.mxu3 %v4045_v25  ;;  %1157 = vmatpush.msrb.mxu0 %v4155_v17 }
 0x238   : > { %1113 = vmatpush.msrb.mxu2 %v4054_v26  ;;  %1182 = vmatpush.msrb.mxu1 %v4197_v13 }
 0x239   : > { %1133 = vmatpush.msrb.mxu3 %v4059_v27  ;;  %1158 = vmatpush.msrb.mxu0 %v4163_v21 }
 0x23a   : > { %1114 = vmatpush.msrb.mxu2 %v4068_v28 }
 0x23b   : > { %1134 = vmatpush.msrb.mxu3 %v4073_v29  ;;  %1159 = vmatpush.msrb.mxu0 %v4171_v63 }
 0x23c   : > { %1115 = vmatpush.msrb.mxu2 %v4082_v30 }
 0x23d   : > { %1135 = vmatpush.msrb.mxu3 %v4087_v35  ;;  %1160 = vmatpush.msrb.mxu0 %v4175_v47 }
 0x23e   : > { %1116 = vmatpush.msrb.mxu2 %v4096_v57 }
 0x23f   : > { %1136 = vmatpush.msrb.mxu3 %v4101_v4  ;;  %1161 = vmatpush.msrb.mxu0 %v4187_v44 }
 0x240   : > { %1117 = vmatpush.msrb.mxu2 %v4110_v14 }
 0x241   : > { %1137 = vmatpush.msrb.mxu3 %v4115_v15  ;;  %1162 = vmatpush.msrb.mxu0 %v4191_v42 }
 0x242   : > { %1118 = vmatpush.msrb.mxu2 %v4124_v48 }
 0x243   : > { %1138 = vmatpush.msrb.mxu3 %v4129_v50 }
 0x244   : > { %1119 = vmatpush.msrb.mxu2 %v4134_v51 }
 0x245   : > { %1139 = vmatpush.msrb.mxu3 %v4143_v55 }
 0x246   : > { %1312 = vmatpush.msra.mxu2 %v4145_v8 }
 0x247   : > { %1332 = vmatpush.msra.mxu3 %v4147_v2 }
 0x248   : > { %1313 = vmatpush.msra.mxu2 %v4155_v17 }
 0x249   : > { %1333 = vmatpush.msra.mxu3 %v4157_v18 }
 0x24a   : > { %1314 = vmatpush.msra.mxu2 %v4163_v21 }
 0x24b   : > { %1334 = vmatpush.msra.mxu3 %v4165_v0 }
 0x24c   : > { %1315 = vmatpush.msra.mxu2 %v4171_v63 }
 0x24d   : > { %1335 = vmatpush.msra.mxu3 %v4173_v56 }
 0x24e   : > { %1316 = vmatpush.msra.mxu2 %v4175_v47 }
 0x24f   : > { %1336 = vmatpush.msra.mxu3 %v4181_v49 }
 0x250   : > { %1317 = vmatpush.msra.mxu2 %v4187_v44 }
 0x251   : > { %1337 = vmatpush.msra.mxu3 %v4189_v16 }
 0x252   : > { %1318 = vmatpush.msra.mxu2 %v4191_v42 }
 0x253   : > { %1338 = vmatpush.msra.mxu3 %v4197_v13 }
 0x296   : > { %v569_v45 = vpop.xlane.xlu0 %568 }
 0x297   : > { %3091 = vlog2.f32 %v569_v45 }
 0x298   : > { %v720_v40 = vpop.xlane.xlu1 %719 }
 0x299   : > { %v4208_v43 = vsub.f32 %v3998_v19, %v720_v40 }
 0x29b   : > { %v722_v38 = vmul.f32 1.442695, %v4208_v43 }
 0x29d   : > { %v3092_v12 = vpop.eup %3091  ;;  %3093 = vpow2.f32 %v722_v38 }
 0x29e   : > { %v571_v41 = vmul.f32 0.6931472, %v3092_v12 }
 0x2a0   : > { %v572_v11 = vsub.f32 %v3976_v32, %v571_v41 }
 0x2a2   : > { %2941 = vst [vmem:[%s3992_s16 + $0x8] sm:$0xff] %v572_v11  ;;  %v5128_v11 = vld [vmem:[#allocation30_spill] sm:$0xff] }
 0x2a3   : > { %v3094_v39 = vpop.eup %3093 }
 0x2a4   : > { %724 = vadd.xlane.f32.xlu0 %v3094_v39 }
 0x2a8   : > { %v809_v45 = vpop.f32.mrf.mxu2 }
 0x2a9   : > { %v853_v33 = vadd.f32 %v852_v36, %v809_v45  ;;  %v829_v9 = vpop.f32.mrf.mxu3 }
 0x2aa   : > { %v873_v13 = vadd.f32 %v872_v10, %v829_v9  ;;  %v5127_v9 = vmov 0.0  }
 0x2ab   : > { %v4215_v40 = vsel %vm892_vm7, %v853_v33, %v4001_v20  ;;  %v2958_v10 = vsel %vm1055_vm9, 1.0, %v5127_v9 }
 0x2ac   : > { %875 = vmax.xlane.f32.xlu1 %v873_v13  ;;  %964 = vmatmul.f32.vlgmr.msra.gmra.mxu0 %v4215_v40 }
 0x2ad   : > { %984 = vmatmul.f32.vlgmr.msra.gmra.mxu1 %v4215_v40  ;;  %1260 = vmatpush.msra.mxu0 %v3903_v52 }
 0x2ae   : > { %1280 = vmatpush.msra.mxu1 %v3908_v53 }
 0x2af   : > { %1261 = vmatpush.msra.mxu0 %v3913_v54 }
 0x2b0   : > { %1281 = vmatpush.msra.mxu1 %v3922_v58  ;;  %v1008_v41 = vpop.f32.mrf.mxu2 }
 0x2b1   : > { %1262 = vmatpush.msra.mxu0 %v3927_v59  ;;  %v1028_v20 = vpop.f32.mrf.mxu3 }
 0x2b2   : > { %1282 = vmatpush.msra.mxu1 %v3932_v60 }
 0x2b3   : > { %1263 = vmatpush.msra.mxu0 %v3942_v61 }
 0x2b4   : > { %2959 = vmatmul.msk.f32.vlgmr.msrb.gmra.mxu0 %vm364_vm8, %v2958_v10  ;;  %1283 = vmatpush.msra.mxu1 %v3947_v62 }
 0x2b5   : > { %2960 = vmatmul.msk.f32.vlgmr.msrb.gmra.mxu1 %vm364_vm8, %v2958_v10  ;;  %1264 = vmatpush.msra.mxu0 %v3954_v1 }
 0x2b6   : > { %1284 = vmatpush.msra.mxu1 %v3959_v3 }
 0x2b7   : > { %1265 = vmatpush.msra.mxu0 %v3967_v5 }
 0x2b8   : > { %1285 = vmatpush.msra.mxu1 %v3972_v7 }
 0x2b9   : > { %1266 = vmatpush.msra.mxu0 %v3981_v34 }
 0x2ba   : > { %1286 = vmatpush.msra.mxu1 %v3986_v46 }
 0x2bb   : > { %1267 = vmatpush.msra.mxu0 %v4028_v22 }
 0x2bc   : > { %1287 = vmatpush.msra.mxu1 %v4033_v23 }
 0x2bd   : > { %1268 = vmatpush.msra.mxu0 %v4040_v24 }
 0x2be   : > { %1288 = vmatpush.msra.mxu1 %v4045_v25 }
 0x2bf   : > { %1269 = vmatpush.msra.mxu0 %v4054_v26 }
 0x2c0   : > { %1289 = vmatpush.msra.mxu1 %v4059_v27 }
 0x2c1   : > { %1270 = vmatpush.msra.mxu0 %v4068_v28 }
 0x2c2   : > { %1290 = vmatpush.msra.mxu1 %v4073_v29 }
 0x2c3   : > { %1271 = vmatpush.msra.mxu0 %v4082_v30 }
 0x2c4   : > { %1291 = vmatpush.msra.mxu1 %v4087_v35 }
 0x2c5   : > { %1272 = vmatpush.msra.mxu0 %v4096_v57 }
 0x2c6   : > { %1292 = vmatpush.msra.mxu1 %v4101_v4 }
 0x2c7   : > { %1273 = vmatpush.msra.mxu0 %v4110_v14 }
 0x2c8   : > { %1293 = vmatpush.msra.mxu1 %v4115_v15 }
 0x2c9   : > { %1274 = vmatpush.msra.mxu0 %v4124_v48 }
 0x2ca   : > { %1294 = vmatpush.msra.mxu1 %v4129_v50 }
 0x2cb   : > { %1275 = vmatpush.msra.mxu0 %v4134_v51 }
 0x2cc   : > { %1295 = vmatpush.msra.mxu1 %v4143_v55 }
 0x2cd   : > { %1468 = vmatpush.msrb.mxu0 %v4145_v8 }
 0x2ce   : > { %1488 = vmatpush.msrb.mxu1 %v4147_v2 }
 0x2cf   : > { %1469 = vmatpush.msrb.mxu0 %v4155_v17 }
 0x2d0   : > { %1489 = vmatpush.msrb.mxu1 %v4157_v18 }
 0x2d1   : > { %1470 = vmatpush.msrb.mxu0 %v4163_v21 }
 0x2d2   : > { %1490 = vmatpush.msrb.mxu1 %v4165_v0 }
 0x2d3   : > { %1471 = vmatpush.msrb.mxu0 %v4171_v63 }
 0x2d4   : > { %1491 = vmatpush.msrb.mxu1 %v4173_v56 }
 0x2d5   : > { %1472 = vmatpush.msrb.mxu0 %v4175_v47 }
 0x2d6   : > { %1492 = vmatpush.msrb.mxu1 %v4181_v49 }
 0x2d7   : > { %1473 = vmatpush.msrb.mxu0 %v4187_v44 }
 0x2d8   : > { %1493 = vmatpush.msrb.mxu1 %v4189_v16 }
 0x2d9   : > { %1474 = vmatpush.msrb.mxu0 %v4191_v42 }
 0x2da   : > { %1494 = vmatpush.msrb.mxu1 %v5128_v11  ;;  %v5129_v11 = vld [vmem:[#allocation11_spill] sm:$0xff] }
 0x2db   : > { %vm1048_vm10 = vcmp.eq.s32.totalorder %v5129_v11, 1 }
 0x317   : > { %v725_v12 = vpop.xlane.xlu0 %724 }
 0x318   : > { %3095 = vlog2.f32 %v725_v12 }
 0x31e   : > { %v3096_v31 = vpop.eup %3095 }
 0x31f   : > { %v727_v33 = vmul.f32 0.6931472, %v3096_v31  ;;  %v876_v36 = vpop.xlane.xlu1 %875 }
 0x320   : > { %v4270_v37 = vsub.f32 %v873_v13, %v876_v36  ;;  %v5130_v13 = vld [vmem:[#allocation17_spill] sm:$0xff] }
 0x321   : > { %v728_v38 = vsub.f32 %v4208_v43, %v727_v33  ;;  %vm1211_vm11 = vcmp.eq.s32.totalorder %v3693_v6, %v5130_v13 }
 0x322   : > { %v878_v39 = vmul.f32 1.442695, %v4270_v37  ;;  %v2963_v43 = vsel %vm1211_vm11, 1.0, %v5127_v9 }
 0x323   : > { %2946 = vst [vmem:[%s3992_s16 + $0x10] sm:$0xff] %v728_v38 }
 0x324   : > { %3097 = vpow2.f32 %v878_v39 }
 0x329   : > { %v965_v32 = vpop.f32.mrf.mxu0 }
 0x32a   : > { %v3098_v19 = vpop.eup %3097  ;;  %v1009_v45 = vadd.f32 %v1008_v41, %v965_v32  ;;  %v985_v10 = vpop.f32.mrf.mxu1 }
 0x32b   : > { %v1029_v12 = vadd.f32 %v1028_v20, %v985_v10  ;;  %880 = vadd.xlane.f32.xlu2 %v3098_v19 }
 0x32c   : > { %v4277_v31 = vsel %vm1048_vm10, %v1009_v45, %v4215_v40  ;;  %v5131_v40 = vld [vmem:[#allocation30_spill] sm:$0xff] }
 0x32d   : > { %1031 = vmax.xlane.f32.xlu0 %v1029_v12  ;;  %1120 = vmatmul.f32.vlgmr.msrb.gmra.mxu2 %v4277_v31 }
 0x32e   : > { %1140 = vmatmul.f32.vlgmr.msrb.gmra.mxu3 %v4277_v31  ;;  %1416 = vmatpush.msrb.mxu2 %v3903_v52 }
 0x32f   : > { %1436 = vmatpush.msrb.mxu3 %v3908_v53 }
 0x330   : > { %1417 = vmatpush.msrb.mxu2 %v3913_v54 }
 0x331   : > { %1437 = vmatpush.msrb.mxu3 %v3922_v58  ;;  %v1164_v20 = vpop.f32.mrf.mxu0 }
 0x332   : > { %1418 = vmatpush.msrb.mxu2 %v3927_v59  ;;  %v1184_v10 = vpop.f32.mrf.mxu1 }
 0x333   : > { %1438 = vmatpush.msrb.mxu3 %v3932_v60 }
 0x334   : > { %1419 = vmatpush.msrb.mxu2 %v3942_v61 }
 0x335   : > { %2964 = vmatmul.msk.f32.vlgmr.msra.gmra.mxu2 %vm364_vm8, %v2963_v43  ;;  %1439 = vmatpush.msrb.mxu3 %v3947_v62 }
 0x336   : > { %2965 = vmatmul.msk.f32.vlgmr.msra.gmra.mxu3 %vm364_vm8, %v2963_v43  ;;  %1420 = vmatpush.msrb.mxu2 %v3954_v1 }
 0x337   : > { %1440 = vmatpush.msrb.mxu3 %v3959_v3 }
 0x338   : > { %1421 = vmatpush.msrb.mxu2 %v3967_v5 }
 0x339   : > { %1441 = vmatpush.msrb.mxu3 %v3972_v7 }
 0x33a   : > { %1422 = vmatpush.msrb.mxu2 %v3981_v34 }
 0x33b   : > { %1442 = vmatpush.msrb.mxu3 %v3986_v46 }
 0x33c   : > { %1423 = vmatpush.msrb.mxu2 %v4028_v22 }
 0x33d   : > { %1443 = vmatpush.msrb.mxu3 %v4033_v23 }
 0x33e   : > { %1424 = vmatpush.msrb.mxu2 %v4040_v24 }
 0x33f   : > { %1444 = vmatpush.msrb.mxu3 %v4045_v25 }
 0x340   : > { %1425 = vmatpush.msrb.mxu2 %v4054_v26 }
 0x341   : > { %1445 = vmatpush.msrb.mxu3 %v4059_v27 }
 0x342   : > { %1426 = vmatpush.msrb.mxu2 %v4068_v28 }
 0x343   : > { %1446 = vmatpush.msrb.mxu3 %v4073_v29 }
 0x344   : > { %1427 = vmatpush.msrb.mxu2 %v4082_v30 }
 0x345   : > { %1447 = vmatpush.msrb.mxu3 %v4087_v35 }
 0x346   : > { %1428 = vmatpush.msrb.mxu2 %v4096_v57 }
 0x347   : > { %1448 = vmatpush.msrb.mxu3 %v4101_v4 }
 0x348   : > { %1429 = vmatpush.msrb.mxu2 %v4110_v14 }
 0x349   : > { %1449 = vmatpush.msrb.mxu3 %v4115_v15 }
 0x34a   : > { %1430 = vmatpush.msrb.mxu2 %v4124_v48 }
 0x34b   : > { %1450 = vmatpush.msrb.mxu3 %v4129_v50 }
 0x34c   : > { %1431 = vmatpush.msrb.mxu2 %v4134_v51 }
 0x34d   : > { %1451 = vmatpush.msrb.mxu3 %v4143_v55 }
 0x34e   : > { %1624 = vmatpush.msra.mxu2 %v4145_v8 }
 0x34f   : > { %1644 = vmatpush.msra.mxu3 %v4147_v2 }
 0x350   : > { %1625 = vmatpush.msra.mxu2 %v4155_v17 }
 0x351   : > { %1645 = vmatpush.msra.mxu3 %v4157_v18 }
 0x352   : > { %1626 = vmatpush.msra.mxu2 %v4163_v21 }
 0x353   : > { %1646 = vmatpush.msra.mxu3 %v4165_v0 }
 0x354   : > { %1627 = vmatpush.msra.mxu2 %v4171_v63 }
 0x355   : > { %1647 = vmatpush.msra.mxu3 %v4173_v56 }
 0x356   : > { %1628 = vmatpush.msra.mxu2 %v4175_v47 }
 0x357   : > { %1648 = vmatpush.msra.mxu3 %v4181_v49 }
 0x358   : > { %1629 = vmatpush.msra.mxu2 %v4187_v44 }
 0x359   : > { %1649 = vmatpush.msra.mxu3 %v4189_v16 }
 0x35a   : > { %1630 = vmatpush.msra.mxu2 %v4191_v42 }
 0x35b   : > { %1650 = vmatpush.msra.mxu3 %v5131_v40  ;;  %v5132_v40 = vld [vmem:[#allocation12_spill] sm:$0xff] }
 0x35c   : > { %vm1204_vm12 = vcmp.eq.s32.totalorder %v5132_v40, 1 }
 0x39e   : > { %v881_v11 = vpop.xlane.xlu2 %880 }
 0x39f   : > { %3099 = vlog2.f32 %v881_v11 }
 0x3a0   : > { %v1032_v33 = vpop.xlane.xlu0 %1031 }
 0x3a1   : > { %v4332_v36 = vsub.f32 %v1029_v12, %v1032_v33  ;;  %v5137_v33 = vld [vmem:[#allocation22_spill] sm:$0xff] }
 0x3a2   : > { %vm1516_vm0 = vcmp.eq.s32.totalorder %v5137_v33, 1 }
 0x3a3   : > { %v1034_v38 = vmul.f32 1.442695, %v4332_v36 }
 0x3a5   : > { %v3100_v39 = vpop.eup %3099  ;;  %3101 = vpow2.f32 %v1034_v38 }
 0x3a6   : > { %v883_v41 = vmul.f32 0.6931472, %v3100_v39  ;;  %v5138_v39 = vld [vmem:[#allocation14_spill] sm:$0xff] }
 0x3a7   : > { %vm1679_vm1 = vcmp.eq.s32.totalorder %v3693_v6, %v5138_v39 }
 0x3a8   : > { %v884_v32 = vsub.f32 %v4270_v37, %v883_v41  ;;  %v5133_v37 = vld [vmem:[#allocation18_spill] sm:$0xff]  ;;  %v2978_v41 = vsel %vm1679_vm1, 1.0, %v5127_v9 }
 0x3a9   : > { %vm1367_vm13 = vcmp.eq.s32.totalorder %v3693_v6, %v5133_v37  ;;  %v4580_v37 = vld [vmem:[%s5092_s3 + $0x48] sm:$0xff] }
 0x3aa   : > { %2951 = vst [vmem:[%s3992_s16 + $0x18] sm:$0xff] %v884_v32  ;;  %v4521_v32 = vld [vmem:[%s5092_s3 + $0x80] sm:$0xff] }
 0x3ab   : > { %v3102_v19 = vpop.eup %3101 }
 0x3ac   : > { %1036 = vadd.xlane.f32.xlu1 %v3102_v19  ;;  %v4526_v19 = vld [vmem:[%s5092_s3 + $0x88] sm:$0xff] }
 0x3b0   : > { %v1121_v45 = vpop.f32.mrf.mxu2 }
 0x3b1   : > { %v1165_v13 = vadd.f32 %v1164_v20, %v1121_v45  ;;  %v1141_v43 = vpop.f32.mrf.mxu3  ;;  %v4533_v20 = vld [vmem:[%s5092_s3 + $0x70] sm:$0xff]  ;;  %v4538_v45 = vld [vmem:[%s5092_s3 + $0x78] sm:$0xff] }
 0x3b2   : > { %v1185_v11 = vadd.f32 %v1184_v10, %v1141_v43  ;;  %v4547_v10 = vld [vmem:[%s5092_s3 + $0x60] sm:$0xff]  ;;  %v4561_v43 = vld [vmem:[%s5092_s3 + $0x50] sm:$0xff] }
 0x3b3   : > { %v4339_v12 = vsel %vm1204_vm12, %v1165_v13, %v4277_v31  ;;  %v2968_v31 = vsel %vm1367_vm13, 1.0, %v5127_v9  ;;  %v4552_v13 = vld [vmem:[%s5092_s3 + $0x68] sm:$0xff] }
 0x3b4   : > { %1187 = vmax.xlane.f32.xlu2 %v1185_v11  ;;  %1276 = vmatmul.f32.vlgmr.msra.gmra.mxu0 %v4339_v12 }
 0x3b5   : > { %1296 = vmatmul.f32.vlgmr.msra.gmra.mxu1 %v4339_v12  ;;  %1572 = vmatpush.msra.mxu0 %v3903_v52  ;;  %v5134_v52 = vld [vmem:[#allocation30_spill] sm:$0xff] }
 0x3b6   : > { %1592 = vmatpush.msra.mxu1 %v3908_v53 }
 0x3b7   : > { %1573 = vmatpush.msra.mxu0 %v3913_v54 }
 0x3b8   : > { %1593 = vmatpush.msra.mxu1 %v3922_v58 }
 0x3b9   : > { %1574 = vmatpush.msra.mxu0 %v3927_v59 }
 0x3ba   : > { %1594 = vmatpush.msra.mxu1 %v3932_v60  ;;  %v1340_v60 = vpop.f32.mrf.mxu3 }
 0x3bb   : > { %1575 = vmatpush.msra.mxu0 %v3942_v61 }
 0x3bc   : > { %2969 = vmatmul.msk.f32.vlgmr.msrb.gmra.mxu0 %vm364_vm8, %v2968_v31  ;;  %1595 = vmatpush.msra.mxu1 %v3947_v62 }
 0x3bd   : > { %2970 = vmatmul.msk.f32.vlgmr.msrb.gmra.mxu1 %vm364_vm8, %v2968_v31  ;;  %1576 = vmatpush.msra.mxu0 %v3954_v1  ;;  %v4589_v31 = vld [vmem:[%s5092_s3 + $0x30] sm:$0xff] }
 0x3be   : > { %1596 = vmatpush.msra.mxu1 %v3959_v3  ;;  %v5136_v3 = vld [vmem:[#allocation13_spill] sm:$0xff] }
 0x3bf   : > { %1577 = vmatpush.msra.mxu0 %v3967_v5  ;;  %vm1523_vm15 = vcmp.eq.s32.totalorder %v3693_v6, %v5136_v3  ;;  %v4680_v3 = vld [vmem:[#allocation2 + $0x10] sm:$0xff] }
 0x3c0   : > { %1597 = vmatpush.msra.mxu1 %v3972_v7  ;;  %v2973_v5 = vsel %vm1523_vm15, 1.0, %v5127_v9  ;;  %v4406_v7 = vld [vmem:[%s5092_s3 + $0xf0] sm:$0xff] }
 0x3c1   : > { %1578 = vmatpush.msra.mxu0 %v3981_v34  ;;  %v4411_v34 = vld [vmem:[%s5092_s3 + $0xf8] sm:$0xff] }
 0x3c2   : > { %1598 = vmatpush.msra.mxu1 %v3986_v46  ;;  %v4416_v46 = vld [vmem:[%s5092_s3 + $0xe0] sm:$0xff] }
 0x3c3   : > { %1579 = vmatpush.msra.mxu0 %v4028_v22 }
 0x3c4   : > { %1599 = vmatpush.msra.mxu1 %v4033_v23  ;;  %v4423_v23 = vld [vmem:[%s5092_s3 + $0xe8] sm:$0xff] }
 0x3c5   : > { %1580 = vmatpush.msra.mxu0 %v4040_v24  ;;  %v4428_v24 = vld [vmem:[%s5092_s3 + $0xd0] sm:$0xff] }
 0x3c6   : > { %1600 = vmatpush.msra.mxu1 %v4045_v25  ;;  %v4433_v25 = vld [vmem:[%s5092_s3 + $0xd8] sm:$0xff] }
 0x3c7   : > { %1581 = vmatpush.msra.mxu0 %v4054_v26 }
 0x3c8   : > { %1601 = vmatpush.msra.mxu1 %v4059_v27 }
 0x3c9   : > { %1582 = vmatpush.msra.mxu0 %v4068_v28  ;;  %v4442_v28 = vld [vmem:[%s5092_s3 + $0xc0] sm:$0xff] }
 0x3ca   : > { %1602 = vmatpush.msra.mxu1 %v4073_v29  ;;  %v4447_v29 = vld [vmem:[%s5092_s3 + $0xc8] sm:$0xff] }
 0x3cb   : > { %1583 = vmatpush.msra.mxu0 %v4082_v30 }
 0x3cc   : > { %1603 = vmatpush.msra.mxu1 %v4087_v35  ;;  %v4455_v35 = vld [vmem:[%s5092_s3 + $0xb0] sm:$0xff] }
 0x3cd   : > { %1584 = vmatpush.msra.mxu0 %v4096_v57  ;;  %v4460_v57 = vld [vmem:[%s5092_s3 + $0xb8] sm:$0xff] }
 0x3ce   : > { %1604 = vmatpush.msra.mxu1 %v4101_v4 }
 0x3cf   : > { %1585 = vmatpush.msra.mxu0 %v4110_v14  ;;  %v4467_v14 = vld [vmem:[%s5092_s3 + $0xa0] sm:$0xff] }
 0x3d0   : > { %1605 = vmatpush.msra.mxu1 %v4115_v15  ;;  %v4472_v15 = vld [vmem:[%s5092_s3 + $0xa8] sm:$0xff] }
 0x3d1   : > { %1586 = vmatpush.msra.mxu0 %v4124_v48 }
 0x3d2   : > { %1606 = vmatpush.msra.mxu1 %v4129_v50  ;;  %v4479_v50 = vld [vmem:[%s5092_s3 + $0x90] sm:$0xff] }
 0x3d3   : > { %1587 = vmatpush.msra.mxu0 %v4134_v51  ;;  %v4484_v51 = vld [vmem:[%s5092_s3 + $0x98] sm:$0xff] }
 0x3d4   : > { %1607 = vmatpush.msra.mxu1 %v4143_v55 }
 0x3d5   : > { %1780 = vmatpush.msrb.mxu0 %v4145_v8 }
 0x3d6   : > { %1800 = vmatpush.msrb.mxu1 %v4147_v2 }
 0x3d7   : > { %1781 = vmatpush.msrb.mxu0 %v4155_v17 }
 0x3d8   : > { %1801 = vmatpush.msrb.mxu1 %v4157_v18 }
 0x3d9   : > { %1782 = vmatpush.msrb.mxu0 %v4163_v21 }
 0x3da   : > { %1802 = vmatpush.msrb.mxu1 %v4165_v0 }
 0x3db   : > { %1783 = vmatpush.msrb.mxu0 %v4171_v63 }
 0x3dc   : > { %1803 = vmatpush.msrb.mxu1 %v4173_v56 }
 0x3dd   : > { %1784 = vmatpush.msrb.mxu0 %v4175_v47  ;;  %v1320_v47 = vpop.f32.mrf.mxu2 }
 0x3de   : > { %1804 = vmatpush.msrb.mxu1 %v4181_v49 }
 0x3df   : > { %1785 = vmatpush.msrb.mxu0 %v4187_v44 }
 0x3e0   : > { %1805 = vmatpush.msrb.mxu1 %v4189_v16 }
 0x3e1   : > { %1786 = vmatpush.msrb.mxu0 %v4191_v42  ;;  %v5135_v42 = vld [vmem:[#allocation20_spill] sm:$0xff] }
 0x3e2   : > { %1806 = vmatpush.msrb.mxu1 %v5134_v52  ;;  %vm1360_vm14 = vcmp.eq.s32.totalorder %v5135_v42, 1  ;;  %v4594_v52 = vld [vmem:[%s5092_s3 + $0x38] sm:$0xff] }
 0x3e3   : > { %v4666_v42 = vld [vmem:[#allocation2 + $0x38] sm:$0xff] }
 0x41f   : > { %v1037_v53 = vpop.xlane.xlu1 %1036 }
 0x420   : > { %3103 = vlog2.f32 %v1037_v53  ;;  %v4603_v53 = vld [vmem:[%s5092_s3 + $0x20] sm:$0xff] }
 0x426   : > { %v3104_v0 = vpop.eup %3103 }
 0x427   : > { %v1039_v54 = vmul.f32 0.6931472, %v3104_v0  ;;  %v1188_v63 = vpop.xlane.xlu2 %1187  ;;  %v4608_v0 = vld [vmem:[%s5092_s3 + $0x28] sm:$0xff] }
 0x428   : > { %v1189_v58 = vsub.f32 %v1185_v11, %v1188_v63  ;;  %v4566_v11 = vld [vmem:[%s5092_s3 + $0x58] sm:$0xff] }
 0x429   : > { %v1040_v56 = vsub.f32 %v4332_v36, %v1039_v54  ;;  %v4617_v54 = vld [vmem:[%s5092_s3 + $0x10] sm:$0xff]  ;;  %v4622_v63 = vld [vmem:[%s5092_s3 + $0x18] sm:$0xff] }
 0x42a   : > { %v1190_v59 = vmul.f32 1.442695, %v1189_v58 }
 0x42b   : > { %2956 = vst [vmem:[%s3992_s16 + $0x20] sm:$0xff] %v1040_v56  ;;  %v4632_v56 = vld [vmem:[%s5092_s3 + $0x8] sm:$0xff] }
 0x42c   : > { %3105 = vpow2.f32 %v1190_v59  ;;  %v4638_v59 = vld [vmem:[#allocation2 + $0x60] sm:$0xff] }
 0x431   : > { %v1277_v49 = vpop.f32.mrf.mxu0 }
 0x432   : > { %v3106_v44 = vpop.eup %3105  ;;  %v1321_v16 = vadd.f32 %v1320_v47, %v1277_v49  ;;  %v1297_v61 = vpop.f32.mrf.mxu1  ;;  %v4640_v47 = vld [vmem:[#allocation2 + $0x68] sm:$0xff]  ;;  %v4648_v49 = vld [vmem:[#allocation2 + $0x50] sm:$0xff] }
 0x433   : > { %v1341_v62 = vadd.f32 %v1340_v60, %v1297_v61  ;;  %1192 = vadd.xlane.f32.xlu0 %v3106_v44  ;;  %v4650_v44 = vld [vmem:[#allocation2 + $0x58] sm:$0xff]  ;;  %v4656_v60 = vld [vmem:[#allocation2 + $0x40] sm:$0xff]  ;;  %v4664_v61 = vld [vmem:[#allocation2 + $0x30] sm:$0xff] }
 0x434   : > { %v1361_v1 = vsel %vm1360_vm14, %v1321_v16, %v4339_v12  ;;  %v4575_v12 = vld [vmem:[%s5092_s3 + $0x40] sm:$0xff]  ;;  %v4658_v16 = vld [vmem:[#allocation2 + $0x48] sm:$0xff] }
 0x435   : > { %1343 = vmax.xlane.f32.xlu1 %v1341_v62  ;;  %1432 = vmatmul.f32.vlgmr.msrb.gmra.mxu2 %v1361_v1 }
 0x436   : > { %1452 = vmatmul.f32.vlgmr.msrb.gmra.mxu3 %v1361_v1  ;;  %1728 = vmatpush.msrb.mxu2 %v4406_v7 }
 0x437   : > { %1748 = vmatpush.msrb.mxu3 %v4411_v34 }
 0x438   : > { %1729 = vmatpush.msrb.mxu2 %v4416_v46 }
 0x439   : > { %1749 = vmatpush.msrb.mxu3 %v4423_v23  ;;  %v1476_v2 = vpop.f32.mrf.mxu0 }
 0x43a   : > { %1730 = vmatpush.msrb.mxu2 %v4428_v24  ;;  %v1496_v18 = vpop.f32.mrf.mxu1 }
 0x43b   : > { %1750 = vmatpush.msrb.mxu3 %v4433_v25 }
 0x43c   : > { %1731 = vmatpush.msrb.mxu2 %v4442_v28 }
 0x43d   : > { %2974 = vmatmul.msk.f32.vlgmr.msra.gmra.mxu2 %vm364_vm8, %v2973_v5  ;;  %1751 = vmatpush.msrb.mxu3 %v4447_v29 }
 0x43e   : > { %2975 = vmatmul.msk.f32.vlgmr.msra.gmra.mxu3 %vm364_vm8, %v2973_v5  ;;  %1732 = vmatpush.msrb.mxu2 %v4455_v35  ;;  %v4682_v5 = vld [vmem:[#allocation2 + $0x18] sm:$0xff] }
 0x43f   : > { %1752 = vmatpush.msrb.mxu3 %v4460_v57 }
 0x440   : > { %1733 = vmatpush.msrb.mxu2 %v4467_v14 }
 0x441   : > { %1753 = vmatpush.msrb.mxu3 %v4472_v15 }
 0x442   : > { %1734 = vmatpush.msrb.mxu2 %v4479_v50 }
 0x443   : > { %1754 = vmatpush.msrb.mxu3 %v4484_v51 }
 0x444   : > { %1735 = vmatpush.msrb.mxu2 %v4521_v32 }
 0x445   : > { %1755 = vmatpush.msrb.mxu3 %v4526_v19 }
 0x446   : > { %1736 = vmatpush.msrb.mxu2 %v4533_v20 }
 0x447   : > { %1756 = vmatpush.msrb.mxu3 %v4538_v45 }
 0x448   : > { %1737 = vmatpush.msrb.mxu2 %v4547_v10 }
 0x449   : > { %1757 = vmatpush.msrb.mxu3 %v4552_v13 }
 0x44a   : > { %1738 = vmatpush.msrb.mxu2 %v4561_v43 }
 0x44b   : > { %1758 = vmatpush.msrb.mxu3 %v4566_v11 }
 0x44c   : > { %1739 = vmatpush.msrb.mxu2 %v4575_v12 }
 0x44d   : > { %1759 = vmatpush.msrb.mxu3 %v4580_v37 }
 0x44e   : > { %1740 = vmatpush.msrb.mxu2 %v4589_v31 }
 0x44f   : > { %1760 = vmatpush.msrb.mxu3 %v4594_v52 }
 0x450   : > { %1741 = vmatpush.msrb.mxu2 %v4603_v53 }
 0x451   : > { %1761 = vmatpush.msrb.mxu3 %v4608_v0 }
 0x452   : > { %1742 = vmatpush.msrb.mxu2 %v4617_v54 }
 0x453   : > { %1762 = vmatpush.msrb.mxu3 %v4622_v63 }
 0x455   : > { %1763 = vmatpush.msrb.mxu3 %v4632_v56 }
 0x457   : > { %1956 = vmatpush.msra.mxu3 %v4640_v47 }
 0x459   : > { %1957 = vmatpush.msra.mxu3 %v4650_v44 }
 0x45b   : > { %1958 = vmatpush.msra.mxu3 %v4658_v16 }
 0x45d   : > { %1959 = vmatpush.msra.mxu3 %v4666_v42 }
 0x4a6   : > { %v1193_v22 = vpop.xlane.xlu0 %1192 }
 0x4a7   : > { %3107 = vlog2.f32 %v1193_v22  ;;  %v4684_v22 = vld [vmem:[#allocation2] sm:$0xff] }
 0x4a8   : > { %v1344_v26 = vpop.xlane.xlu1 %1343 }
 0x4a9   : > { %v4437_v27 = vsub.f32 %v1341_v62, %v1344_v26  ;;  %v4668_v62 = vld [vmem:[#allocation2 + $0x20] sm:$0xff]  ;;  %v4690_v26 = vld [vmem:[#allocation2 + $0x8] sm:$0xff] }
 0x4aa   : > { %5139 = vst [vmem:[#allocation11_spill] sm:$0xff] %v4690_v26 }
 0x4ab   : > { %v1346_v30 = vmul.f32 1.442695, %v4437_v27 }
 0x4ad   : > { %v3108_v4 = vpop.eup %3107  ;;  %3109 = vpow2.f32 %v1346_v30 }
 0x4ae   : > { %v1195_v48 = vmul.f32 0.6931472, %v3108_v4 }
 0x4b0   : > { %v1196_v55 = vsub.f32 %v1189_v58, %v1195_v48  ;;  %v4627_v58 = vld [vmem:[%s5092_s3] sm:$0xff] }
 0x4b1   : > { %1743 = vmatpush.msrb.mxu2 %v4627_v58 }
 0x4b2   : > { %2961 = vst [vmem:[%s3992_s16 + $0x28] sm:$0xff] %v1196_v55 }
 0x4b3   : > { %v3110_v8 = vpop.eup %3109  ;;  %1936 = vmatpush.msra.mxu2 %v4638_v59 }
 0x4b4   : > { %1348 = vadd.xlane.f32.xlu2 %v3110_v8 }
 0x4b5   : > { %1937 = vmatpush.msra.mxu2 %v4648_v49 }
 0x4b7   : > { %1938 = vmatpush.msra.mxu2 %v4656_v60 }
 0x4b8   : > { %v1433_v17 = vpop.f32.mrf.mxu2 }
 0x4b9   : > { %v1477_v21 = vadd.f32 %v1476_v2, %v1433_v17  ;;  %v1453_v40 = vpop.f32.mrf.mxu3  ;;  %1939 = vmatpush.msra.mxu2 %v4664_v61 }
 0x4ba   : > { %v4492_v36 = vadd.f32 %v1496_v18, %v1453_v40 }
 0x4bb   : > { %v4494_v38 = vsel %vm1516_vm0, %v1477_v21, %v1361_v1  ;;  %v4674_v1 = vld [vmem:[#allocation2 + $0x28] sm:$0xff]  ;;  %1940 = vmatpush.msra.mxu2 %v4668_v62 }
 0x4bc   : > { %1499 = vmax.xlane.f32.xlu0 %v4492_v36  ;;  %1588 = vmatmul.f32.vlgmr.msra.gmra.mxu0 %v4494_v38 }
 0x4bd   : > { %1608 = vmatmul.f32.vlgmr.msra.gmra.mxu1 %v4494_v38  ;;  %1884 = vmatpush.msra.mxu0 %v4406_v7 }
 0x4be   : > { %1904 = vmatpush.msra.mxu1 %v4411_v34  ;;  %1960 = vmatpush.msra.mxu3 %v4674_v1 }
 0x4bf   : > { %1885 = vmatpush.msra.mxu0 %v4416_v46  ;;  %1941 = vmatpush.msra.mxu2 %v4680_v3 }
 0x4c0   : > { %1905 = vmatpush.msra.mxu1 %v4423_v23  ;;  %1961 = vmatpush.msra.mxu3 %v4682_v5  ;;  %v1632_v18 = vpop.f32.mrf.mxu2 }
 0x4c1   : > { %1886 = vmatpush.msra.mxu0 %v4428_v24  ;;  %1942 = vmatpush.msra.mxu2 %v4684_v22  ;;  %v1652_v33 = vpop.f32.mrf.mxu3 }
 0x4c2   : > { %1906 = vmatpush.msra.mxu1 %v4433_v25  ;;  %1962 = vmatpush.msra.mxu3 %v4690_v26 }
 0x4c3   : > { %1887 = vmatpush.msra.mxu0 %v4442_v28 }
 0x4c4   : > { %2979 = vmatmul.msk.f32.vlgmr.msrb.gmra.mxu0 %vm364_vm8, %v2978_v41  ;;  %1907 = vmatpush.msra.mxu1 %v4447_v29 }
 0x4c5   : > { %2980 = vmatmul.msk.f32.vlgmr.msrb.gmra.mxu1 %vm364_vm8, %v2978_v41  ;;  %1888 = vmatpush.msra.mxu0 %v4455_v35 }
 0x4c6   : > { %1908 = vmatpush.msra.mxu1 %v4460_v57 }
 0x4c7   : > { %1889 = vmatpush.msra.mxu0 %v4467_v14 }
 0x4c8   : > { %1909 = vmatpush.msra.mxu1 %v4472_v15 }
 0x4c9   : > { %1890 = vmatpush.msra.mxu0 %v4479_v50 }
 0x4ca   : > { %1910 = vmatpush.msra.mxu1 %v4484_v51 }
 0x4cb   : > { %1891 = vmatpush.msra.mxu0 %v4521_v32 }
 0x4cc   : > { %1911 = vmatpush.msra.mxu1 %v4526_v19 }
 0x4cd   : > { %1892 = vmatpush.msra.mxu0 %v4533_v20 }
 0x4ce   : > { %1912 = vmatpush.msra.mxu1 %v4538_v45 }
 0x4cf   : > { %1893 = vmatpush.msra.mxu0 %v4547_v10 }
 0x4d0   : > { %1913 = vmatpush.msra.mxu1 %v4552_v13 }
 0x4d1   : > { %1894 = vmatpush.msra.mxu0 %v4561_v43 }
 0x4d2   : > { %1914 = vmatpush.msra.mxu1 %v4566_v11 }
 0x4d3   : > { %1895 = vmatpush.msra.mxu0 %v4575_v12 }
 0x4d4   : > { %1915 = vmatpush.msra.mxu1 %v4580_v37 }
 0x4d5   : > { %1896 = vmatpush.msra.mxu0 %v4589_v31 }
 0x4d6   : > { %1916 = vmatpush.msra.mxu1 %v4594_v52 }
 0x4d7   : > { %1897 = vmatpush.msra.mxu0 %v4603_v53 }
 0x4d8   : > { %1917 = vmatpush.msra.mxu1 %v4608_v0 }
 0x4d9   : > { %1898 = vmatpush.msra.mxu0 %v4617_v54 }
 0x4da   : > { %1918 = vmatpush.msra.mxu1 %v4622_v63 }
 0x4db   : > { %1899 = vmatpush.msra.mxu0 %v4627_v58 }
 0x4dc   : > { %1919 = vmatpush.msra.mxu1 %v4632_v56 }
 0x4dd   : > { %2092 = vmatpush.msrb.mxu0 %v4638_v59 }
 0x4de   : > { %2112 = vmatpush.msrb.mxu1 %v4640_v47 }
 0x4df   : > { %2093 = vmatpush.msrb.mxu0 %v4648_v49 }
 0x4e0   : > { %2113 = vmatpush.msrb.mxu1 %v4650_v44 }
 0x4e1   : > { %2094 = vmatpush.msrb.mxu0 %v4656_v60 }
 0x4e2   : > { %2114 = vmatpush.msrb.mxu1 %v4658_v16 }
 0x4e3   : > { %2095 = vmatpush.msrb.mxu0 %v4664_v61 }
 0x4e4   : > { %2115 = vmatpush.msrb.mxu1 %v4666_v42 }
 0x4e5   : > { %2096 = vmatpush.msrb.mxu0 %v4668_v62 }
 0x4e6   : > { %2116 = vmatpush.msrb.mxu1 %v4674_v1 }
 0x4e7   : > { %2097 = vmatpush.msrb.mxu0 %v4680_v3 }
 0x4e8   : > { %2117 = vmatpush.msrb.mxu1 %v4682_v5 }
 0x4e9   : > { %2098 = vmatpush.msrb.mxu0 %v4684_v22 }
 0x4ea   : > { %2118 = vmatpush.msrb.mxu1 %v4690_v26 }
 0x527   : > { %v1349_v30 = vpop.xlane.xlu2 %1348 }
 0x528   : > { %3111 = vlog2.f32 %v1349_v30  ;;  %v5140_v30 = vld [vmem:[#allocation19_spill] sm:$0xff] }
 0x529   : > { %vm1672_vm2 = vcmp.eq.s32.totalorder %v5140_v30, 1 }
 0x52e   : > { %v3112_v4 = vpop.eup %3111 }
 0x52f   : > { %v1351_v48 = vmul.f32 0.6931472, %v3112_v4  ;;  %v1500_v55 = vpop.xlane.xlu0 %1499 }
 0x530   : > { %v4701_v8 = vsub.f32 %v4492_v36, %v1500_v55 }
 0x531   : > { %v1352_v2 = vsub.f32 %v4437_v27, %v1351_v48  ;;  %v5141_v27 = vld [vmem:[#allocation24_spill] sm:$0xff] }
 0x532   : > { %v1502_v17 = vmul.f32 1.442695, %v4701_v8  ;;  %vm1835_vm3 = vcmp.eq.s32.totalorder %v3693_v6, %v5141_v27 }
 0x533   : > { %2966 = vst [vmem:[%s3992_s16 + $0x30] sm:$0xff] %v1352_v2  ;;  %v2983_v36 = vsel %vm1835_vm3, 1.0, %v5127_v9 }
 0x534   : > { %3113 = vpow2.f32 %v1502_v17 }
 0x539   : > { %v1589_v21 = vpop.f32.mrf.mxu0 }
 0x53a   : > { %v3114_v40 = vpop.eup %3113  ;;  %v1633_v39 = vadd.f32 %v1632_v18, %v1589_v21  ;;  %v1609_v41 = vpop.f32.mrf.mxu1 }
 0x53b   : > { %v1653_v26 = vadd.f32 %v1652_v33, %v1609_v41  ;;  %1504 = vadd.xlane.f32.xlu1 %v3114_v40 }
 0x53c   : > { %v4708_v4 = vsel %vm1672_vm2, %v1633_v39, %v4494_v38  ;;  %v5142_v38 = vld [vmem:[#allocation11_spill] sm:$0xff] }
 0x53d   : > { %1655 = vmax.xlane.f32.xlu2 %v1653_v26  ;;  %1744 = vmatmul.f32.vlgmr.msrb.gmra.mxu2 %v4708_v4 }
 0x53e   : > { %1764 = vmatmul.f32.vlgmr.msrb.gmra.mxu3 %v4708_v4  ;;  %2040 = vmatpush.msrb.mxu2 %v4406_v7 }
 0x53f   : > { %2060 = vmatpush.msrb.mxu3 %v4411_v34 }
 0x540   : > { %2041 = vmatpush.msrb.mxu2 %v4416_v46 }
 0x541   : > { %2061 = vmatpush.msrb.mxu3 %v4423_v23  ;;  %v1788_v39 = vpop.f32.mrf.mxu0 }
 0x542   : > { %2042 = vmatpush.msrb.mxu2 %v4428_v24  ;;  %v1808_v30 = vpop.f32.mrf.mxu1 }
 0x543   : > { %2062 = vmatpush.msrb.mxu3 %v4433_v25 }
 0x544   : > { %2043 = vmatpush.msrb.mxu2 %v4442_v28 }
 0x545   : > { %2984 = vmatmul.msk.f32.vlgmr.msra.gmra.mxu2 %vm364_vm8, %v2983_v36  ;;  %2063 = vmatpush.msrb.mxu3 %v4447_v29 }
 0x546   : > { %2985 = vmatmul.msk.f32.vlgmr.msra.gmra.mxu3 %vm364_vm8, %v2983_v36  ;;  %2044 = vmatpush.msrb.mxu2 %v4455_v35 }
 0x547   : > { %2064 = vmatpush.msrb.mxu3 %v4460_v57 }
 0x548   : > { %2045 = vmatpush.msrb.mxu2 %v4467_v14 }
 0x549   : > { %2065 = vmatpush.msrb.mxu3 %v4472_v15 }
 0x54a   : > { %2046 = vmatpush.msrb.mxu2 %v4479_v50 }
 0x54b   : > { %2066 = vmatpush.msrb.mxu3 %v4484_v51 }
 0x54c   : > { %2047 = vmatpush.msrb.mxu2 %v4521_v32 }
 0x54d   : > { %2067 = vmatpush.msrb.mxu3 %v4526_v19 }
 0x54e   : > { %2048 = vmatpush.msrb.mxu2 %v4533_v20 }
 0x54f   : > { %2068 = vmatpush.msrb.mxu3 %v4538_v45 }
 0x550   : > { %2049 = vmatpush.msrb.mxu2 %v4547_v10 }
 0x551   : > { %2069 = vmatpush.msrb.mxu3 %v4552_v13 }
 0x552   : > { %2050 = vmatpush.msrb.mxu2 %v4561_v43 }
 0x553   : > { %2070 = vmatpush.msrb.mxu3 %v4566_v11 }
 0x554   : > { %2051 = vmatpush.msrb.mxu2 %v4575_v12 }
 0x555   : > { %2071 = vmatpush.msrb.mxu3 %v4580_v37 }
 0x556   : > { %2052 = vmatpush.msrb.mxu2 %v4589_v31 }
 0x557   : > { %2072 = vmatpush.msrb.mxu3 %v4594_v52 }
 0x558   : > { %2053 = vmatpush.msrb.mxu2 %v4603_v53 }
 0x559   : > { %2073 = vmatpush.msrb.mxu3 %v4608_v0 }
 0x55a   : > { %2054 = vmatpush.msrb.mxu2 %v4617_v54 }
 0x55b   : > { %2074 = vmatpush.msrb.mxu3 %v4622_v63 }
 0x55c   : > { %2055 = vmatpush.msrb.mxu2 %v4627_v58 }
 0x55d   : > { %2075 = vmatpush.msrb.mxu3 %v4632_v56 }
 0x55e   : > { %2248 = vmatpush.msra.mxu2 %v4638_v59 }
 0x55f   : > { %2268 = vmatpush.msra.mxu3 %v4640_v47 }
 0x560   : > { %2249 = vmatpush.msra.mxu2 %v4648_v49 }
 0x561   : > { %2269 = vmatpush.msra.mxu3 %v4650_v44 }
 0x562   : > { %2250 = vmatpush.msra.mxu2 %v4656_v60 }
 0x563   : > { %2270 = vmatpush.msra.mxu3 %v4658_v16 }
 0x564   : > { %2251 = vmatpush.msra.mxu2 %v4664_v61 }
 0x565   : > { %2271 = vmatpush.msra.mxu3 %v4666_v42 }
 0x566   : > { %2252 = vmatpush.msra.mxu2 %v4668_v62 }
 0x567   : > { %2272 = vmatpush.msra.mxu3 %v4674_v1 }
 0x568   : > { %2253 = vmatpush.msra.mxu2 %v4680_v3 }
 0x569   : > { %2273 = vmatpush.msra.mxu3 %v4682_v5 }
 0x56a   : > { %2254 = vmatpush.msra.mxu2 %v4684_v22 }
 0x56b   : > { %2274 = vmatpush.msra.mxu3 %v5142_v38  ;;  %v5143_v38 = vld [vmem:[#allocation21_spill] sm:$0xff] }
 0x56c   : > { %vm1828_vm4 = vcmp.eq.s32.totalorder %v5143_v38, 1  ;;  %v5145_v38 = vld [vmem:[#allocation11_spill] sm:$0xff] }
 0x5ae   : > { %v1505_v48 = vpop.xlane.xlu1 %1504 }
 0x5af   : > { %3115 = vlog2.f32 %v1505_v48 }
 0x5b0   : > { %v1656_v55 = vpop.xlane.xlu2 %1655 }
 0x5b1   : > { %v4763_v2 = vsub.f32 %v1653_v26, %v1656_v55 }
 0x5b3   : > { %v1658_v17 = vmul.f32 1.442695, %v4763_v2 }
 0x5b5   : > { %v3116_v18 = vpop.eup %3115  ;;  %3117 = vpow2.f32 %v1658_v17 }
 0x5b6   : > { %v1507_v21 = vmul.f32 0.6931472, %v3116_v18 }
 0x5b8   : > { %v1508_v40 = vsub.f32 %v4701_v8, %v1507_v21  ;;  %v5144_v8 = vld [vmem:[#allocation26_spill] sm:$0xff] }
 0x5b9   : > { %vm1991_vm5 = vcmp.eq.s32.totalorder %v3693_v6, %v5144_v8 }
 0x5ba   : > { %2971 = vst [vmem:[%s3992_s16 + $0x38] sm:$0xff] %v1508_v40 }
 0x5bb   : > { %v3118_v33 = vpop.eup %3117 }
 0x5bc   : > { %1660 = vadd.xlane.f32.xlu0 %v3118_v33 }
 0x5c0   : > { %v1745_v41 = vpop.f32.mrf.mxu2 }
 0x5c1   : > { %v1789_v27 = vadd.f32 %v1788_v39, %v1745_v41  ;;  %v1765_v36 = vpop.f32.mrf.mxu3 }
 0x5c2   : > { %v1809_v48 = vadd.f32 %v1808_v30, %v1765_v36 }
 0x5c3   : > { %v4770_v26 = vsel %vm1828_vm4, %v1789_v27, %v4708_v4  ;;  %v2988_v4 = vsel %vm1991_vm5, 1.0, %v5127_v9 }
 0x5c4   : > { %1811 = vmax.xlane.f32.xlu1 %v1809_v48  ;;  %1900 = vmatmul.f32.vlgmr.msra.gmra.mxu0 %v4770_v26 }
 0x5c5   : > { %1920 = vmatmul.f32.vlgmr.msra.gmra.mxu1 %v4770_v26  ;;  %2196 = vmatpush.msra.mxu0 %v4406_v7 }
 0x5c6   : > { %2216 = vmatpush.msra.mxu1 %v4411_v34 }
 0x5c7   : > { %2197 = vmatpush.msra.mxu0 %v4416_v46 }
 0x5c8   : > { %2217 = vmatpush.msra.mxu1 %v4423_v23  ;;  %v1944_v41 = vpop.f32.mrf.mxu2 }
 0x5c9   : > { %2198 = vmatpush.msra.mxu0 %v4428_v24  ;;  %v1964_v36 = vpop.f32.mrf.mxu3 }
 0x5ca   : > { %2218 = vmatpush.msra.mxu1 %v4433_v25 }
 0x5cb   : > { %2199 = vmatpush.msra.mxu0 %v4442_v28 }
 0x5cc   : > { %2989 = vmatmul.msk.f32.vlgmr.msrb.gmra.mxu0 %vm364_vm8, %v2988_v4  ;;  %2219 = vmatpush.msra.mxu1 %v4447_v29 }
 0x5cd   : > { %2990 = vmatmul.msk.f32.vlgmr.msrb.gmra.mxu1 %vm364_vm8, %v2988_v4  ;;  %2200 = vmatpush.msra.mxu0 %v4455_v35 }
 0x5ce   : > { %2220 = vmatpush.msra.mxu1 %v4460_v57 }
 0x5cf   : > { %2201 = vmatpush.msra.mxu0 %v4467_v14 }
 0x5d0   : > { %2221 = vmatpush.msra.mxu1 %v4472_v15 }
 0x5d1   : > { %2202 = vmatpush.msra.mxu0 %v4479_v50 }
 0x5d2   : > { %2222 = vmatpush.msra.mxu1 %v4484_v51 }
 0x5d3   : > { %2203 = vmatpush.msra.mxu0 %v4521_v32 }
 0x5d4   : > { %2223 = vmatpush.msra.mxu1 %v4526_v19 }
 0x5d5   : > { %2204 = vmatpush.msra.mxu0 %v4533_v20 }
 0x5d6   : > { %2224 = vmatpush.msra.mxu1 %v4538_v45 }
 0x5d7   : > { %2205 = vmatpush.msra.mxu0 %v4547_v10 }
 0x5d8   : > { %2225 = vmatpush.msra.mxu1 %v4552_v13 }
 0x5d9   : > { %2206 = vmatpush.msra.mxu0 %v4561_v43 }
 0x5da   : > { %2226 = vmatpush.msra.mxu1 %v4566_v11 }
 0x5db   : > { %2207 = vmatpush.msra.mxu0 %v4575_v12 }
 0x5dc   : > { %2227 = vmatpush.msra.mxu1 %v4580_v37 }
 0x5dd   : > { %2208 = vmatpush.msra.mxu0 %v4589_v31 }
 0x5de   : > { %2228 = vmatpush.msra.mxu1 %v4594_v52 }
 0x5df   : > { %2209 = vmatpush.msra.mxu0 %v4603_v53 }
 0x5e0   : > { %2229 = vmatpush.msra.mxu1 %v4608_v0 }
 0x5e1   : > { %2210 = vmatpush.msra.mxu0 %v4617_v54 }
 0x5e2   : > { %2230 = vmatpush.msra.mxu1 %v4622_v63 }
 0x5e3   : > { %2211 = vmatpush.msra.mxu0 %v4627_v58 }
 0x5e4   : > { %2231 = vmatpush.msra.mxu1 %v4632_v56 }
 0x5e5   : > { %2404 = vmatpush.msrb.mxu0 %v4638_v59 }
 0x5e6   : > { %2424 = vmatpush.msrb.mxu1 %v4640_v47 }
 0x5e7   : > { %2405 = vmatpush.msrb.mxu0 %v4648_v49 }
 0x5e8   : > { %2425 = vmatpush.msrb.mxu1 %v4650_v44 }
 0x5e9   : > { %2406 = vmatpush.msrb.mxu0 %v4656_v60 }
 0x5ea   : > { %2426 = vmatpush.msrb.mxu1 %v4658_v16 }
 0x5eb   : > { %2407 = vmatpush.msrb.mxu0 %v4664_v61 }
 0x5ec   : > { %2427 = vmatpush.msrb.mxu1 %v4666_v42 }
 0x5ed   : > { %2408 = vmatpush.msrb.mxu0 %v4668_v62 }
 0x5ee   : > { %2428 = vmatpush.msrb.mxu1 %v4674_v1 }
 0x5ef   : > { %2409 = vmatpush.msrb.mxu0 %v4680_v3 }
 0x5f0   : > { %2429 = vmatpush.msrb.mxu1 %v4682_v5 }
 0x5f1   : > { %2410 = vmatpush.msrb.mxu0 %v4684_v22 }
 0x5f2   : > { %2430 = vmatpush.msrb.mxu1 %v5145_v38  ;;  %v5146_v38 = vld [vmem:[#allocation15_spill] sm:$0xff] }
 0x5f3   : > { %vm1984_vm6 = vcmp.eq.s32.totalorder %v5146_v38, 1 }
 0x62f   : > { %v1661_v55 = vpop.xlane.xlu0 %1660 }
 0x630   : > { %3119 = vlog2.f32 %v1661_v55 }
 0x636   : > { %v3120_v17 = vpop.eup %3119 }
 0x637   : > { %v1663_v18 = vmul.f32 0.6931472, %v3120_v17  ;;  %v1812_v21 = vpop.xlane.xlu1 %1811 }
 0x638   : > { %v4825_v40 = vsub.f32 %v1809_v48, %v1812_v21  ;;  %v2497_v21 = vld [vmem:[%s5092_s3 + $0xa8] sm:$0xff] }
 0x639   : > { %v1664_v33 = vsub.f32 %v4763_v2, %v1663_v18  ;;  %v5147_v2 = vld [vmem:[#allocation23_spill] sm:$0xff] }
 0x63a   : > { %v1814_v39 = vmul.f32 1.442695, %v4825_v40  ;;  %vm2147_vm7 = vcmp.eq.s32.totalorder %v3693_v6, %v5147_v2  ;;  %v2496_v18 = vld [vmem:[%s5092_s3 + $0xa0] sm:$0xff]  ;;  %v2485_v2 = vld [vmem:[%s5092_s3 + $0x48] sm:$0xff] }
 0x63b   : > { %2976 = vst [vmem:[%s3992_s16 + $0x40] sm:$0xff] %v1664_v33  ;;  %v2993_v48 = vsel %vm2147_vm7, 1.0, %v5127_v9  ;;  %v2495_v33 = vld [vmem:[%s5092_s3 + $0x98] sm:$0xff] }
 0x63c   : > { %3121 = vpow2.f32 %v1814_v39  ;;  %v2492_v39 = vld [vmem:[%s5092_s3 + $0x80] sm:$0xff] }
 0x641   : > { %v1901_v30 = vpop.f32.mrf.mxu0 }
 0x642   : > { %v3122_v27 = vpop.eup %3121  ;;  %v1945_v8 = vadd.f32 %v1944_v41, %v1901_v30  ;;  %v1921_v4 = vpop.f32.mrf.mxu1  ;;  %v2493_v41 = vld [vmem:[%s5092_s3 + $0x88] sm:$0xff]  ;;  %v2490_v30 = vld [vmem:[%s5092_s3 + $0x70] sm:$0xff] }
 0x643   : > { %v1965_v55 = vadd.f32 %v1964_v36, %v1921_v4  ;;  %1816 = vadd.xlane.f32.xlu2 %v3122_v27  ;;  %v2491_v27 = vld [vmem:[%s5092_s3 + $0x78] sm:$0xff]  ;;  %v2488_v36 = vld [vmem:[%s5092_s3 + $0x60] sm:$0xff]  ;;  %v2486_v4 = vld [vmem:[%s5092_s3 + $0x50] sm:$0xff] }
 0x644   : > { %v4832_v17 = vsel %vm1984_vm6, %v1945_v8, %v4770_v26  ;;  %v5152_v26 = vld [vmem:[#allocation27_spill] sm:$0xff]  ;;  %v2489_v8 = vld [vmem:[%s5092_s3 + $0x68] sm:$0xff] }
 0x645   : > { %1967 = vmax.xlane.f32.xlu0 %v1965_v55  ;;  %2056 = vmatmul.f32.vlgmr.msrb.gmra.mxu2 %v4832_v17  ;;  %vm2459_vm12 = vcmp.eq.s32.totalorder %v3693_v6, %v5152_v26  ;;  %v2625_v26 = vld [vmem:[#allocation2 + $0x38] sm:$0xff] }
 0x646   : > { %2076 = vmatmul.f32.vlgmr.msrb.gmra.mxu3 %v4832_v17  ;;  %2352 = vmatpush.msrb.mxu2 %v4406_v7  ;;  %v5148_v7 = vld [vmem:[#allocation11_spill] sm:$0xff]  ;;  %v3003_v38 = vsel %vm2459_vm12, 1.0, %v5127_v9 }
 0x647   : > { %2372 = vmatpush.msrb.mxu3 %v4411_v34 }
 0x648   : > { %2353 = vmatpush.msrb.mxu2 %v4416_v46 }
 0x649   : > { %2373 = vmatpush.msrb.mxu3 %v4423_v23 }
 0x64a   : > { %2354 = vmatpush.msrb.mxu2 %v4428_v24 }
 0x64b   : > { %2374 = vmatpush.msrb.mxu3 %v4433_v25 }
 0x64c   : > { %2355 = vmatpush.msrb.mxu2 %v4442_v28 }
 0x64d   : > { %2994 = vmatmul.msk.f32.vlgmr.msra.gmra.mxu2 %vm364_vm8, %v2993_v48  ;;  %2375 = vmatpush.msrb.mxu3 %v4447_v29 }
 0x64e   : > { %2995 = vmatmul.msk.f32.vlgmr.msra.gmra.mxu3 %vm364_vm8, %v2993_v48  ;;  %2356 = vmatpush.msrb.mxu2 %v4455_v35  ;;  %v2482_v48 = vld [vmem:[%s5092_s3 + $0x30] sm:$0xff] }
 0x64f   : > { %2376 = vmatpush.msrb.mxu3 %v4460_v57  ;;  %v2100_v57 = vpop.f32.mrf.mxu0 }
 0x650   : > { %2357 = vmatpush.msrb.mxu2 %v4467_v14 }
 0x651   : > { %2377 = vmatpush.msrb.mxu3 %v4472_v15  ;;  %v2120_v15 = vpop.f32.mrf.mxu1 }
 0x652   : > { %2358 = vmatpush.msrb.mxu2 %v4479_v50 }
 0x653   : > { %2378 = vmatpush.msrb.mxu3 %v4484_v51 }
 0x654   : > { %2359 = vmatpush.msrb.mxu2 %v4521_v32  ;;  %v5149_v32 = vld [vmem:[#allocation16_spill] sm:$0xff] }
 0x655   : > { %2379 = vmatpush.msrb.mxu3 %v4526_v19  ;;  %vm2140_vm9 = vcmp.eq.s32.totalorder %v5149_v32, 1 }
 0x656   : > { %2360 = vmatpush.msrb.mxu2 %v4533_v20 }
 0x657   : > { %2380 = vmatpush.msrb.mxu3 %v4538_v45  ;;  %v5150_v45 = vld [vmem:[#allocation25_spill] sm:$0xff] }
 0x658   : > { %2361 = vmatpush.msrb.mxu2 %v4547_v10  ;;  %vm2303_vm10 = vcmp.eq.s32.totalorder %v3693_v6, %v5150_v45 }
 0x659   : > { %2381 = vmatpush.msrb.mxu3 %v4552_v13  ;;  %v2998_v10 = vsel %vm2303_vm10, 1.0, %v5127_v9  ;;  %v2506_v13 = vld [vmem:[%s5092_s3 + $0xf0] sm:$0xff] }
 0x65a   : > { %2362 = vmatpush.msrb.mxu2 %v4561_v43  ;;  %v2507_v43 = vld [vmem:[%s5092_s3 + $0xf8] sm:$0xff] }
 0x65b   : > { %2382 = vmatpush.msrb.mxu3 %v4566_v11  ;;  %v2504_v11 = vld [vmem:[%s5092_s3 + $0xe0] sm:$0xff] }
 0x65c   : > { %2363 = vmatpush.msrb.mxu2 %v4575_v12 }
 0x65d   : > { %2383 = vmatpush.msrb.mxu3 %v4580_v37  ;;  %v2505_v37 = vld [vmem:[%s5092_s3 + $0xe8] sm:$0xff] }
 0x65e   : > { %2364 = vmatpush.msrb.mxu2 %v4589_v31  ;;  %v2502_v31 = vld [vmem:[%s5092_s3 + $0xd0] sm:$0xff] }
 0x65f   : > { %2384 = vmatpush.msrb.mxu3 %v4594_v52  ;;  %v2503_v52 = vld [vmem:[%s5092_s3 + $0xd8] sm:$0xff] }
 0x660   : > { %2365 = vmatpush.msrb.mxu2 %v4603_v53  ;;  %v2500_v53 = vld [vmem:[%s5092_s3 + $0xc0] sm:$0xff] }
 0x661   : > { %2385 = vmatpush.msrb.mxu3 %v4608_v0  ;;  %v2501_v0 = vld [vmem:[%s5092_s3 + $0xc8] sm:$0xff] }
 0x662   : > { %2366 = vmatpush.msrb.mxu2 %v4617_v54  ;;  %v2498_v54 = vld [vmem:[%s5092_s3 + $0xb0] sm:$0xff] }
 0x663   : > { %2386 = vmatpush.msrb.mxu3 %v4622_v63  ;;  %v2499_v63 = vld [vmem:[%s5092_s3 + $0xb8] sm:$0xff] }
 0x664   : > { %2367 = vmatpush.msrb.mxu2 %v4627_v58 }
 0x665   : > { %2387 = vmatpush.msrb.mxu3 %v4632_v56 }
 0x666   : > { %2560 = vmatpush.msra.mxu2 %v4638_v59 }
 0x667   : > { %2580 = vmatpush.msra.mxu3 %v4640_v47 }
 0x668   : > { %2561 = vmatpush.msra.mxu2 %v4648_v49 }
 0x669   : > { %2581 = vmatpush.msra.mxu3 %v4650_v44 }
 0x66a   : > { %2562 = vmatpush.msra.mxu2 %v4656_v60 }
 0x66b   : > { %2582 = vmatpush.msra.mxu3 %v4658_v16 }
 0x66c   : > { %2563 = vmatpush.msra.mxu2 %v4664_v61 }
 0x66d   : > { %2583 = vmatpush.msra.mxu3 %v4666_v42 }
 0x66e   : > { %2564 = vmatpush.msra.mxu2 %v4668_v62 }
 0x66f   : > { %2584 = vmatpush.msra.mxu3 %v4674_v1 }
 0x670   : > { %2565 = vmatpush.msra.mxu2 %v4680_v3  ;;  %v5151_v3 = vld [vmem:[#allocation28_spill] sm:$0xff] }
 0x671   : > { %2585 = vmatpush.msra.mxu3 %v4682_v5  ;;  %vm2296_vm11 = vcmp.eq.s32.totalorder %v5151_v3, 1  ;;  %v2626_v3 = vld [vmem:[#allocation2 + $0x40] sm:$0xff] }
 0x672   : > { %2566 = vmatpush.msra.mxu2 %v4684_v22 }
 0x673   : > { %2586 = vmatpush.msra.mxu3 %v5148_v7  ;;  %v2483_v7 = vld [vmem:[%s5092_s3 + $0x38] sm:$0xff] }
 0x6b6   : > { %v1817_v34 = vpop.xlane.xlu2 %1816 }
 0x6b7   : > { %3123 = vlog2.f32 %v1817_v34  ;;  %v2480_v34 = vld [vmem:[%s5092_s3 + $0x20] sm:$0xff] }
 0x6b8   : > { %v1968_v46 = vpop.xlane.xlu0 %1967 }
 0x6b9   : > { %v1969_v23 = vsub.f32 %v1965_v55, %v1968_v46  ;;  %v2487_v55 = vld [vmem:[%s5092_s3 + $0x58] sm:$0xff]  ;;  %v2481_v46 = vld [vmem:[%s5092_s3 + $0x28] sm:$0xff] }
 0x6bb   : > { %v1970_v24 = vmul.f32 1.442695, %v1969_v23 }
 0x6bd   : > { %v3124_v25 = vpop.eup %3123  ;;  %3125 = vpow2.f32 %v1970_v24  ;;  %v2479_v24 = vld [vmem:[%s5092_s3 + $0x18] sm:$0xff] }
 0x6be   : > { %v1819_v28 = vmul.f32 0.6931472, %v3124_v25  ;;  %v2476_v25 = vld [vmem:[%s5092_s3] sm:$0xff] }
 0x6c0   : > { %v1820_v29 = vsub.f32 %v4825_v40, %v1819_v28  ;;  %v2494_v40 = vld [vmem:[%s5092_s3 + $0x90] sm:$0xff]  ;;  %v2477_v28 = vld [vmem:[%s5092_s3 + $0x8] sm:$0xff] }
 0x6c2   : > { %2981 = vst [vmem:[%s3992_s16 + $0x48] sm:$0xff] %v1820_v29 }
 0x6c3   : > { %v3126_v35 = vpop.eup %3125 }
 0x6c4   : > { %1972 = vadd.xlane.f32.xlu1 %v3126_v35 }
 0x6c8   : > { %v2057_v14 = vpop.f32.mrf.mxu2 }
 0x6c9   : > { %v2101_v50 = vadd.f32 %v2100_v57, %v2057_v14  ;;  %v2077_v51 = vpop.f32.mrf.mxu3 }
 0x6ca   : > { %v2121_v19 = vadd.f32 %v2120_v15, %v2077_v51 }
 0x6cb   : > { %v2141_v20 = vsel %vm2140_vm9, %v2101_v50, %v4832_v17  ;;  %v2484_v17 = vld [vmem:[%s5092_s3 + $0x40] sm:$0xff] }
 0x6cc   : > { %2123 = vmax.xlane.f32.xlu2 %v2121_v19  ;;  %2212 = vmatmul.f32.vlgmr.msra.gmra.mxu0 %v2141_v20 }
 0x6cd   : > { %2232 = vmatmul.f32.vlgmr.msra.gmra.mxu1 %v2141_v20  ;;  %2508 = vmatpush.msra.mxu0 %v2506_v13 }
 0x6ce   : > { %2528 = vmatpush.msra.mxu1 %v2507_v43 }
 0x6cf   : > { %2509 = vmatpush.msra.mxu0 %v2504_v11 }
 0x6d0   : > { %2529 = vmatpush.msra.mxu1 %v2505_v37  ;;  %v2256_v60 = vpop.f32.mrf.mxu2 }
 0x6d1   : > { %2510 = vmatpush.msra.mxu0 %v2502_v31  ;;  %v2276_v42 = vpop.f32.mrf.mxu3 }
 0x6d2   : > { %2530 = vmatpush.msra.mxu1 %v2503_v52 }
 0x6d3   : > { %2511 = vmatpush.msra.mxu0 %v2500_v53 }
 0x6d4   : > { %2999 = vmatmul.msk.f32.vlgmr.msrb.gmra.mxu0 %vm364_vm8, %v2998_v10  ;;  %2531 = vmatpush.msra.mxu1 %v2501_v0 }
 0x6d5   : > { %3000 = vmatmul.msk.f32.vlgmr.msrb.gmra.mxu1 %vm364_vm8, %v2998_v10  ;;  %2512 = vmatpush.msra.mxu0 %v2498_v54 }
 0x6d6   : > { %2532 = vmatpush.msra.mxu1 %v2499_v63 }
 0x6d7   : > { %2513 = vmatpush.msra.mxu0 %v2496_v18 }
 0x6d8   : > { %2533 = vmatpush.msra.mxu1 %v2497_v21 }
 0x6d9   : > { %2514 = vmatpush.msra.mxu0 %v2494_v40 }
 0x6da   : > { %2534 = vmatpush.msra.mxu1 %v2495_v33 }
 0x6db   : > { %2515 = vmatpush.msra.mxu0 %v2492_v39 }
 0x6dc   : > { %2535 = vmatpush.msra.mxu1 %v2493_v41 }
 0x6dd   : > { %2516 = vmatpush.msra.mxu0 %v2490_v30 }
 0x6de   : > { %2536 = vmatpush.msra.mxu1 %v2491_v27 }
 0x6df   : > { %2517 = vmatpush.msra.mxu0 %v2488_v36 }
 0x6e0   : > { %2537 = vmatpush.msra.mxu1 %v2489_v8 }
 0x6e1   : > { %2518 = vmatpush.msra.mxu0 %v2486_v4 }
 0x6e2   : > { %2538 = vmatpush.msra.mxu1 %v2487_v55 }
 0x6e3   : > { %2519 = vmatpush.msra.mxu0 %v2484_v17 }
 0x6e4   : > { %2539 = vmatpush.msra.mxu1 %v2485_v2 }
 0x6e5   : > { %2520 = vmatpush.msra.mxu0 %v2482_v48 }
 0x6e6   : > { %2540 = vmatpush.msra.mxu1 %v2483_v7 }
 0x6e7   : > { %2521 = vmatpush.msra.mxu0 %v2480_v34 }
 0x6e8   : > { %2541 = vmatpush.msra.mxu1 %v2481_v46 }
 0x6ea   : > { %2542 = vmatpush.msra.mxu1 %v2479_v24 }
 0x6ec   : > { %2543 = vmatpush.msra.mxu1 %v2477_v28 }
 0x737   : > { %v1973_v12 = vpop.xlane.xlu1 %1972 }
 0x738   : > { %3127 = vlog2.f32 %v1973_v12 }
 0x73e   : > { %v3128_v58 = vpop.eup %3127 }
 0x73f   : > { %v1975_v56 = vmul.f32 0.6931472, %v3128_v58  ;;  %v2124_v59 = vpop.xlane.xlu2 %2123  ;;  %v2630_v58 = vld [vmem:[#allocation2 + $0x60] sm:$0xff] }
 0x740   : > { %v4926_v47 = vsub.f32 %v2121_v19, %v2124_v59 }
 0x741   : > { %v1976_v49 = vsub.f32 %v1969_v23, %v1975_v56  ;;  %v2478_v23 = vld [vmem:[%s5092_s3 + $0x10] sm:$0xff]  ;;  %v2631_v56 = vld [vmem:[#allocation2 + $0x68] sm:$0xff] }
 0x742   : > { %v2126_v44 = vmul.f32 1.442695, %v4926_v47  ;;  %2522 = vmatpush.msra.mxu0 %v2478_v23  ;;  %2736 = vmatpush.msrb.mxu1 %v2631_v56 }
 0x743   : > { %2986 = vst [vmem:[%s3992_s16 + $0x50] sm:$0xff] %v1976_v49 }
 0x744   : > { %3129 = vpow2.f32 %v2126_v44  ;;  %2523 = vmatpush.msra.mxu0 %v2476_v25 }
 0x746   : > { %2716 = vmatpush.msrb.mxu0 %v2630_v58 }
 0x749   : > { %v2213_v16 = vpop.f32.mrf.mxu0 }
 0x74a   : > { %v3130_v61 = vpop.eup %3129  ;;  %v2257_v62 = vadd.f32 %v2256_v60, %v2213_v16  ;;  %v2233_v1 = vpop.f32.mrf.mxu1  ;;  %v5020_v60 = vld [vmem:[%s3388_s26] sm:$0xff]  ;;  %v5154_v16 = vmov 0  }
 0x74b   : > { %v4931_v5 = vadd.f32 %v2276_v42, %v2233_v1  ;;  %2128 = vadd.xlane.f32.xlu0 %v3130_v61  ;;  %vm2603_vm14 = vcmp.gt.s32.totalorder %v5020_v60, 14  ;;  %v3007_v42 = vld [vmem:[%s3383_s17 + $0x78] sm:$0xff]  ;;  %s3020_s17 = sshll.u32 %s3338_s22, 7 }
 0x74c   : > { %v4933_v22 = vsel %vm2296_vm11, %v2257_v62, %v2141_v20  ;;  %v2604_v61 = vsel %vm2603_vm14, 1, %v5154_v16  ;;  %v2628_v62 = vld [vmem:[#allocation2 + $0x50] sm:$0xff]  ;;  %v2629_v1 = vld [vmem:[#allocation2 + $0x58] sm:$0xff]  ;;  %s2784_s13 = scalar_lea.hbm %s5093_s4, %s3020_s17 }
 0x74d   : > { %2279 = vmax.xlane.f32.xlu1 %v4931_v5  ;;  %2368 = vmatmul.f32.vlgmr.msrb.gmra.mxu2 %v4933_v22  ;;  %s2787_s15 = sshll.u32 %s2784_s13, 4  ;;  %s2788_s15 = int_to_ptr.hbm [resolvable:$true] %s2787_s15 }
 0x74e   : > { %2388 = vmatmul.f32.vlgmr.msrb.gmra.mxu3 %v4933_v22  ;;  %2664 = vmatpush.msrb.mxu2 %v2506_v13  ;;  %s3194_s6 = sshra.s32 %s2788_s15, 4  ;;  %s3195_s6 = int_to_ptr.hbm [resolvable:$true] %s3194_s6 }
 0x74f   : > { %2684 = vmatpush.msrb.mxu3 %v2507_v43  ;;  %v5153_v43 = vld [vmem:[#allocation29_spill] sm:$0xff]  ;;  %2717 = vmatpush.msrb.mxu0 %v2628_v62  ;;  %s3196_s7 = scalar_lea.hbm %s3195_s6, 128  ;;  %p3201_p3 = scmp.lt.s32.totalorder %s3195_s6, %s5093_s4 }
 0x750   : > { %2665 = vmatpush.msrb.mxu2 %v2504_v11  ;;  %vm2452_vm13 = vcmp.eq.s32.totalorder %v5153_v43, 1  ;;  %2737 = vmatpush.msrb.mxu1 %v2629_v1  ;;  %p3197_p0 = scmp.ne.s32.totalorder %s3195_s6, %s3196_s7  ;;  %p3202_p4 = scmp.lt.s32.totalorder %s3200_s10, %s3196_s7 }
 0x751   : > { %2685 = vmatpush.msrb.mxu3 %v2505_v37  ;;  %v2412_v19 = vpop.f32.mrf.mxu0  ;;  %2718 = vmatpush.msrb.mxu0 %v2626_v3 }
 0x752   : > { %2666 = vmatpush.msrb.mxu2 %v2502_v31  ;;  %v2432_v45 = vpop.f32.mrf.mxu1  ;;  %p3198_p1 = pnand %p3197_p0, %p3355_p5  ;;  %p3203_p7 = por %p3202_p4, %p3201_p3 }
 0x753   : > { %2686 = vmatpush.msrb.mxu3 %v2503_v52 }
 0x754   : > { %2667 = vmatpush.msrb.mxu2 %v2500_v53  ;;  %p3199_p2 = pneg %p3198_p1 }
 0x755   : > { %3004 = vmatmul.msk.f32.vlgmr.msra.gmra.mxu2 %vm364_vm8, %v3003_v38  ;;  %2687 = vmatpush.msrb.mxu3 %v2501_v0 }
 0x756   : > { %3005 = vmatmul.msk.f32.vlgmr.msra.gmra.mxu3 %vm364_vm8, %v3003_v38  ;;  %2668 = vmatpush.msrb.mxu2 %v2498_v54  ;;  %v2622_v38 = vld [vmem:[#allocation2 + $0x20] sm:$0xff]  ;;  %p3204_p8 = pnand %p3203_p7, %p3199_p2 }
 0x757   : > { %2688 = vmatpush.msrb.mxu3 %v2499_v63 }
 0x758   : > { %2669 = vmatpush.msrb.mxu2 %v2496_v18  ;;  %v2623_v18 = vld [vmem:[#allocation2 + $0x28] sm:$0xff] }
 0x759   : > { %2689 = vmatpush.msrb.mxu3 %v2497_v21  ;;  %v2620_v21 = vld [vmem:[#allocation2 + $0x10] sm:$0xff] }
 0x75a   : > { %2670 = vmatpush.msrb.mxu2 %v2494_v40  ;;  %v2621_v40 = vld [vmem:[#allocation2 + $0x18] sm:$0xff] }
 0x75b   : > { %2690 = vmatpush.msrb.mxu3 %v2495_v33  ;;  %v2618_v33 = vld [vmem:[#allocation2] sm:$0xff] }
 0x75c   : > { %2671 = vmatpush.msrb.mxu2 %v2492_v39  ;;  %v2619_v39 = vld [vmem:[#allocation2 + $0x8] sm:$0xff] }
 0x75d   : > { %2691 = vmatpush.msrb.mxu3 %v2493_v41 }
 0x75e   : > { %2672 = vmatpush.msrb.mxu2 %v2490_v30 }
 0x75f   : > { %2692 = vmatpush.msrb.mxu3 %v2491_v27 }
 0x760   : > { %2673 = vmatpush.msrb.mxu2 %v2488_v36 }
 0x761   : > { %2693 = vmatpush.msrb.mxu3 %v2489_v8 }
 0x762   : > { %2674 = vmatpush.msrb.mxu2 %v2486_v4 }
 0x763   : > { %2694 = vmatpush.msrb.mxu3 %v2487_v55 }
 0x764   : > { %2675 = vmatpush.msrb.mxu2 %v2484_v17 }
 0x765   : > { %2695 = vmatpush.msrb.mxu3 %v2485_v2 }
 0x766   : > { %2676 = vmatpush.msrb.mxu2 %v2482_v48 }
 0x767   : > { %2696 = vmatpush.msrb.mxu3 %v2483_v7 }
 0x768   : > { %2677 = vmatpush.msrb.mxu2 %v2480_v34 }
 0x769   : > { %2697 = vmatpush.msrb.mxu3 %v2481_v46 }
 0x76a   : > { %2678 = vmatpush.msrb.mxu2 %v2478_v23 }
 0x76b   : > { %2698 = vmatpush.msrb.mxu3 %v2479_v24 }
 0x76c   : > { %2679 = vmatpush.msrb.mxu2 %v2476_v25 }
 0x76d   : > { %2699 = vmatpush.msrb.mxu3 %v2477_v28 }
 0x7be   : > { %v2129_v29 = vpop.xlane.xlu0 %2128 }
 0x7bf   : > { %3131 = vlog2.f32 %v2129_v29 }
 0x7c0   : > { %v2280_v35 = vpop.xlane.xlu1 %2279 }
 0x7c1   : > { %v2281_v57 = vsub.f32 %v4931_v5, %v2280_v35  ;;  %v2627_v5 = vld [vmem:[#allocation2 + $0x48] sm:$0xff] }
 0x7c2   : > { %2738 = vmatpush.msrb.mxu1 %v2627_v5 }
 0x7c3   : > { %v2282_v14 = vmul.f32 1.442695, %v2281_v57 }
 0x7c4   : > { %2739 = vmatpush.msrb.mxu1 %v2625_v26 }
 0x7c5   : > { %v3132_v15 = vpop.eup %3131  ;;  %3133 = vpow2.f32 %v2282_v14 }
 0x7c6   : > { %v2131_v50 = vmul.f32 0.6931472, %v3132_v15  ;;  %2740 = vmatpush.msrb.mxu1 %v2623_v18 }
 0x7c8   : > { %v2132_v51 = vsub.f32 %v4926_v47, %v2131_v50  ;;  %2741 = vmatpush.msrb.mxu1 %v2621_v40 }
 0x7ca   : > { %2991 = vst [vmem:[%s3992_s16 + $0x58] sm:$0xff] %v2132_v51  ;;  %2742 = vmatpush.msrb.mxu1 %v2619_v39 }
 0x7cb   : > { %v3134_v32 = vpop.eup %3133 }
 0x7cc   : > { %2284 = vadd.xlane.f32.xlu2 %v3134_v32 }
 0x7d0   : > { %v2369_v20 = vpop.f32.mrf.mxu2 }
 0x7d1   : > { %v2413_v10 = vadd.f32 %v2412_v19, %v2369_v20  ;;  %v2389_v13 = vpop.f32.mrf.mxu3 }
 0x7d2   : > { %v2433_v11 = vadd.f32 %v2432_v45, %v2389_v13 }
 0x7d3   : > { %v5014_v12 = vsel %vm2452_vm13, %v2413_v10, %v4933_v22  ;;  %v2624_v22 = vld [vmem:[#allocation2 + $0x30] sm:$0xff] }
 0x7d4   : > { %2435 = vmax.xlane.f32.xlu0 %v2433_v11  ;;  %2524 = vmatmul.f32.vlgmr.msra.gmra.mxu0 %v5014_v12 }
 0x7d5   : > { %2544 = vmatmul.f32.vlgmr.msra.gmra.mxu1 %v5014_v12  ;;  %2719 = vmatpush.msrb.mxu0 %v2624_v22 }
 0x7d7   : > { %2720 = vmatpush.msrb.mxu0 %v2622_v38 }
 0x7d8   : > { %v2568_v34 = vpop.f32.mrf.mxu2 }
 0x7d9   : > { %v2588_v47 = vpop.f32.mrf.mxu3  ;;  %2721 = vmatpush.msrb.mxu0 %v2620_v21 }
 0x7db   : > { %2722 = vmatpush.msrb.mxu0 %v2618_v33 }
 0x83f   : > { %v2285_v37 = vpop.xlane.xlu2 %2284 }
 0x840   : > { %3135 = vlog2.f32 %v2285_v37 }
 0x846   : > { %v3136_v31 = vpop.eup %3135 }
 0x847   : > { %v2287_v52 = vmul.f32 0.6931472, %v3136_v31  ;;  %v2436_v53 = vpop.xlane.xlu0 %2435 }
 0x848   : > { %v2437_v0 = vsub.f32 %v2433_v11, %v2436_v53 }
 0x849   : > { %v2288_v54 = vsub.f32 %v2281_v57, %v2287_v52 }
 0x84a   : > { %v2438_v63 = vmul.f32 1.442695, %v2437_v0 }
 0x84b   : > { %2996 = vst [vmem:[%s3992_s16 + $0x60] sm:$0xff] %v2288_v54 }
 0x84c   : > { %3137 = vpow2.f32 %v2438_v63 }
 0x851   : > { %v2525_v7 = vpop.f32.mrf.mxu0 }
 0x852   : > { %v3138_v59 = vpop.eup %3137  ;;  %v2545_v49 = vpop.f32.mrf.mxu1  ;;  %v2569_v46 = vadd.f32 %v2568_v34, %v2525_v7 }
 0x853   : > { %v2589_v44 = vadd.f32 %v2588_v47, %v2545_v49  ;;  %2440 = vadd.xlane.f32.xlu1 %v3138_v59 }
 0x855   : > { %2591 = vmax.xlane.f32.xlu2 %v2589_v44 }
 0x86c   : > { %2606 = vperm.xlu1 %3083, %v2604_v61  }
 0x86d   : > { %2613 = vperm.xlu2 %3084, %v3007_v42  }
 0x8c6   : > { %v2441_v41 = vpop.xlane.xlu1 %2440 }
 0x8c7   : > { %3139 = vlog2.f32 %v2441_v41 }
 0x8c8   : > { %v2592_v30 = vpop.xlane.xlu2 %2591 }
 0x8c9   : > { %v2593_v27 = vsub.f32 %v2589_v44, %v2592_v30 }
 0x8cb   : > { %v2594_v36 = vmul.f32 1.442695, %v2593_v27 }
 0x8cd   : > { %v3140_v8 = vpop.eup %3139  ;;  %3141 = vpow2.f32 %v2594_v36 }
 0x8ce   : > { %v2443_v4 = vmul.f32 0.6931472, %v3140_v8 }
 0x8d0   : > { %v2444_v55 = vsub.f32 %v2437_v0, %v2443_v4  ;;  %v2614_v17 = vpop.permute.xlu2 %2613 }
 0x8d1   : > { %vm2615_vm15 = vcmp.eq.s32.totalorder %v3693_v6, %v2614_v17 }
 0x8d2   : > { %3001 = vst [vmem:[%s3992_s16 + $0x68] sm:$0xff] %v2444_v55  ;;  %v3008_v2 = vsel %vm2615_vm15, 1.0, %v5127_v9 }
 0x8d3   : > { %v3142_v48 = vpop.eup %3141  ;;  %3009 = vmatmul.msk.f32.vlgmr.msrb.gmra.mxu0 %vm364_vm8, %v3008_v2  ;;  %3010 = vmatmul.msk.f32.vlgmr.msrb.gmra.mxu1 %vm364_vm8, %v3008_v2  ;;  %vm2759_vm8 = vcmp.gt.s32.totalorder %v5020_v60, 15 }
 0x8d4   : > { %2596 = vadd.xlane.f32.xlu0 %v3142_v48  ;;  %v2760_v32 = vsel %vm2759_vm8, 1, %v5154_v16 }
 0x8de   : > { %v2607_v23 = vpop.permute.xlu1 %2606 }
 0x8df   : > { %vm2608_vm0 = vcmp.eq.s32.totalorder %v2607_v23, 1 }
 0x8e0   : > { %v5031_v24 = vsel %vm2608_vm0, %v2569_v46, %v5014_v12 }
 0x8e1   : > { %2680 = vmatmul.f32.vlgmr.msrb.gmra.mxu2 %v5031_v24  ;;  %2700 = vmatmul.f32.vlgmr.msrb.gmra.mxu3 %v5031_v24 }
 0x947   : > { %v2597_v6 = vpop.xlane.xlu0 %2596 }
 0x948   : > { %3143 = vlog2.f32 %v2597_v6 }
 0x94e   : > { %v3144_v9 = vpop.eup %3143 }
 0x94f   : > { %v2599_v25 = vmul.f32 0.6931472, %v3144_v9 }
 0x950   : > { %v2744_v29 = vpop.f32.mrf.mxu1 }
 0x951   : > { %v2600_v28 = vsub.f32 %v2593_v27, %v2599_v25 }
 0x953   : > { %3006 = vst [vmem:[%s3992_s16 + $0x70] sm:$0xff] %v2600_v28 }
 0x964   : > { %v2701_v35 = vpop.f32.mrf.mxu3 }
 0x965   : > { %v2745_v57 = vadd.f32 %v2744_v29, %v2701_v35 }
 0x967   : > { %2747 = vmax.xlane.f32.xlu0 %v2745_v57 }
 0x9da   : > { %v2748_v14 = vpop.xlane.xlu0 %2747 }
 0x9db   : > { %v2749_v15 = vsub.f32 %v2745_v57, %v2748_v14 }
 0x9dd   : > { %v2750_v50 = vmul.f32 1.442695, %v2749_v15 }
 0x9df   : > { %3145 = vpow2.f32 %v2750_v50 }
 0x9e5   : > { %v3146_v51 = vpop.eup %3145 }
 0x9e6   : > { %2752 = vadd.xlane.f32.xlu0 %v3146_v51 }
 0x9fa   : > { %2762 = vperm.xlu0 %3082, %v2760_v32  }
 0xa59   : > { %v2753_v19 = vpop.xlane.xlu0 %2752 }
 0xa5a   : > { %3147 = vlog2.f32 %v2753_v19 }
 0xa60   : > { %v3148_v20 = vpop.eup %3147 }
 0xa61   : > { %v2755_v45 = vmul.f32 0.6931472, %v3148_v20 }
 0xa63   : > { %v2756_v10 = vsub.f32 %v2749_v15, %v2755_v45 }
 0xa65   : > { %3011 = vst [vmem:[%s3992_s16 + $0x78] sm:$0xff] %v2756_v10 }
 0xa66   : > { %3207 = shalt.err (!%p3204_p8)
}
 0xa67   : > { %s3285_s22 = smov 128   ;;  %s3286_s16 = smov 8   ;;  %v2681_v13 = vpop.f32.mrf.mxu2  ;;  %v2724_v43 = vpop.f32.mrf.mxu0 }
 0xa68   : > { %3025 = dma.vmem_to_hbm [thread:$0]  (%p3355_p5), %s2786_s14, 2048, %s2788_s15, %s2768_s30, %s3285_s22, %s3285_s22, %s3286_s16   ;;  %v2725_v11 = vadd.f32 %v2724_v43, %v2681_v13 }
 0xa69   : > { %s2800_s0 = scalar_lea.hbm %s5094_s5, %s3016_s25  ;;  %s258_s8 = scalar_lea.vmem [#allocation6], %s2928_s23 }
 0xa6a   : > { %s2802_s9 = sshll.u32 %s258_s8, 4  ;;  %s2804_s17 = sshll.u32 %s2800_s0, 4  ;;  %s2803_s9 = int_to_ptr.vmem [resolvable:$true] %s2802_s9  ;;  %s2805_s17 = int_to_ptr.hbm [resolvable:$true] %s2804_s17 }
 0xa6b   : > { %s2773_s6 = scalar_lea.sflag [#allocation7], %s3937_s11  ;;  %s3222_s14 = sshra.s32 %s2805_s17, 4  ;;  %s3223_s14 = int_to_ptr.hbm [resolvable:$true] %s3222_s14 }
 0xa6c   : > { %v2763_v12 = vpop.permute.xlu0 %2762  ;;  %s3224_s15 = scalar_lea.hbm %s3223_s14, 8  ;;  %s3228_s0 = scalar_lea.hbm %s5094_s5, 16 }
 0xa6d   : > { %vm2764_vm1 = vcmp.eq.s32.totalorder %v2763_v12, 1  ;;  %p3225_p9 = scmp.ne.s32.totalorder %s3223_s14, %s3224_s15  ;;  %p3229_p12 = scmp.lt.s32.totalorder %s3223_s14, %s5094_s5 }
 0xa6e   : > { %v2765_v37 = vsel %vm2764_vm1, %v2725_v11, %v5031_v24  ;;  %p3230_p13 = scmp.lt.s32.totalorder %s3228_s0, %s3224_s15 }
 0xa6f   : > { %2766 = vst [vmem:[%s258_s8] sm:$0xff] %v2765_v37  ;;  %p3226_p10 = pnand %p3225_p9, %p3355_p5 }
 0xa70   : > { %p3231_p0 = por %p3230_p13, %p3229_p12 }
 0xa71   : > { %p3227_p11 = pneg %p3226_p10 }
 0xa73   : > { %p3232_p1 = pnand %p3231_p0, %p3227_p11 }
 0xa75   : > { %3235 = shalt.err (!%p3232_p1)
}
 0xa76   : > { %3026 = dma.vmem_to_hbm [thread:$0]  (%p3355_p5), %s2803_s9, 128, %s2805_s17, %s2773_s6  }
 0xa77 PF: > { %p3042_p2 = scmp.ge.s32.totalorder %s3278_s21, 2  ;;  %s2816_s11 = sand.u32 1, %s3266_s18  }
 0xa78   : > { %s2817_s10 = scalar_lea.sflag [#allocation4], %s2816_s11 }
 0xa79   : > { %p3034_p3 = pnand %p3042_p2, %p3359_p6 }
 0xa7b   : > { %p3035_p4 = pneg %p3034_p3 }
 0xa7d   : > { %3257 = dma.done.wait (%p3035_p4), %s2817_s10, 2048  }
 0xa7e   : > { %3259 = vsyncadd (%p3035_p4), %s2817_s10, 4294965248  ;;  %s2827_s26 = scalar_lea.sflag [#allocation7], %s2816_s11 }
 0xa7f   : > { %3261 = dma.done.wait (%p3035_p4), %s2827_s26, 128  }
 0xa80   : > { %3263 = vsyncadd (%p3035_p4), %s2827_s26, 4294967168  ;;  %p20_p5 = scmp.ge.s32.totalorder %s3342_s24, 4   ;;  %s5155_s18 = smov %s3270_s19 }
 0xa81   : > { %s5156_s19 = smov %s3274_s20  ;;  %s5157_s20 = smov %s3353_s27 }
 0xa82   : > { %s5158_s21 = smov %s3342_s24  ;;  %22 = sbr.rel (!%p20_p5) target bundleno = 8 (0x8), region = 126 }
 0xa87   :  { %2833 = vsyncpa [#allocation3], 1 }
 0xa88   :  { %2835 = vsyncpa [#allocation3 + $0x1], 1 }
 0xa89   :  { %2836 = vsyncpa [#allocation4], 1 }
 0xa8a   :  { %2838 = vsyncpa [#allocation4 + $0x1], 1 }
 0xa8b   :  { %2839 = vsyncpa [#allocation7], 1 }
 0xa8c   :  { %2841 = vsyncpa [#allocation7 + $0x1], 1 }

</bundles_post_ra>
